<compile_context>
chip_gen: v6e
topology: v6e:2x2x1
jax: 0.10.0
libtpu: 0.0.40
codegen_flags: <defaults>
</compile_context>

<pallas_src>
import functools

import jax
import jax.numpy as jnp
from jax.experimental import pallas as pl
from jax.experimental.pallas import tpu as pltpu

H1, H2, OUT = 1024, 512, 2
OUT_PAD = 128  # lane-dense padded fc3 output width


def _round_up(x, m):
    return (x + m - 1) // m * m


def mlp_kernel(x_ref, w1_ref, b1_ref, m1_ref,
               w2_ref, b2_ref, m2_ref,
               w3_ref, b3_ref, o_ref):
    """One batch tile: fc1->relu->dropout->fc2->relu->dropout->fc3."""
    x = x_ref[...]                                              # (TB, D) bf16

    # fc1 + relu + dropout (mask is pre-scaled: keep -> 2.0, drop -> 0.0)
    h1 = jnp.dot(x, w1_ref[...], preferred_element_type=jnp.float32)
    h1 = jnp.maximum(h1 + b1_ref[...], 0.0)
    h1 = (h1 * m1_ref[...]).astype(jnp.bfloat16)                # bf16 for next MXU op

    # fc2 + relu + dropout
    h2 = jnp.dot(h1, w2_ref[...], preferred_element_type=jnp.float32)
    h2 = jnp.maximum(h2 + b2_ref[...], 0.0)
    h2 = (h2 * m2_ref[...]).astype(jnp.bfloat16)

    # fc3 (output padded to 128 lanes; real logits are columns 0..1)
    o_ref[...] = jnp.dot(h2, w3_ref[...],
                         preferred_element_type=jnp.float32) + b3_ref[...]


@functools.partial(jax.jit, static_argnames=("input_size",))
def mlp_forward(x, params, key, *, input_size):
    """Matches PyTorch MLP.forward with F.dropout defaults (p=0.5, training)."""
    w1, b1, w2, b2, w3, b3 = params

    # x.view(-1, input_size)
    x2d = jnp.reshape(x, (-1, input_size)).astype(jnp.float32)
    batch = x2d.shape[0]

    # Batch tiling: 128-row tiles for large batches, single >=8-row tile otherwise.
    b8 = _round_up(batch, 8)
    if b8 <= 128:
        tb = b8
        b_pad = b8
    else:
        tb = 128
        b_pad = _round_up(b8, tb)

    # Pad batch rows; cast x / weights to bf16 (f32 accumulation on the MXU).
    x_p = jnp.pad(x2d, ((0, b_pad - batch), (0, 0))).astype(jnp.bfloat16)
    w1b = w1.astype(jnp.bfloat16)
    w2b = w2.astype(jnp.bfloat16)
    w3b = jnp.pad(w3, ((0, 0), (0, OUT_PAD - OUT))).astype(jnp.bfloat16)
    b3p = jnp.pad(b3, (0, OUT_PAD - OUT)).astype(jnp.float32)

    # Dropout masks via the standard JAX PRNG (portable: TPU + interpret mode),
    # pre-scaled so the kernel does a single multiply per element.
    k1, k2 = jax.random.split(key)
    m1 = jax.random.bernoulli(k1, 0.5, (b_pad, H1)).astype(jnp.float32) * 2.0
    m2 = jax.random.bernoulli(k2, 0.5, (b_pad, H2)).astype(jnp.float32) * 2.0

    out = pl.pallas_call(
        mlp_kernel,
        out_shape=jax.ShapeDtypeStruct((b_pad, OUT_PAD), jnp.float32),
        grid=(b_pad // tb,),
        in_specs=[
            pl.BlockSpec((tb, input_size), lambda i: (i, 0)),   # x tile
            pl.BlockSpec((input_size, H1), lambda i: (0, 0)),   # w1 (resident)
            pl.BlockSpec((1, H1), lambda i: (0, 0)),            # b1
            pl.BlockSpec((tb, H1), lambda i: (i, 0)),           # dropout mask 1
            pl.BlockSpec((H1, H2), lambda i: (0, 0)),           # w2 (resident)
            pl.BlockSpec((1, H2), lambda i: (0, 0)),            # b2
            pl.BlockSpec((tb, H2), lambda i: (i, 0)),           # dropout mask 2
            pl.BlockSpec((H2, OUT_PAD), lambda i: (0, 0)),      # w3 (padded, resident)
            pl.BlockSpec((1, OUT_PAD), lambda i: (0, 0)),       # b3 (padded)
        ],
        out_specs=pl.BlockSpec((tb, OUT_PAD), lambda i: (i, 0)),
        compiler_params=pltpu.CompilerParams(
            dimension_semantics=("parallel",),     # megacore sharding on v7x
            vmem_limit_bytes=32 << 20,             # ~3.3 MiB bf16 weights + tiles
        ),
    )(x_p, w1b, b1.reshape(1, H1).astype(jnp.float32), m1,
      w2b, b2.reshape(1, H2).astype(jnp.float32), m2,
      w3b, b3p.reshape(1, OUT_PAD))

    return out[:batch, :OUT]


def init_params(key, input_size):
    """Mimics nn.Linear default init (uniform +/- 1/sqrt(fan_in)).

    Weights stored (in_features, out_features) so the kernel computes x @ W + b.
    """
    def linear(key, fan_in, fan_out):
        kw, kb = jax.random.split(key)
        bound = 1.0 / jnp.sqrt(fan_in)
        w = jax.random.uniform(kw, (fan_in, fan_out), jnp.float32, -bound, bound)
        b = jax.random.uniform(kb, (fan_out,), jnp.float32, -bound, bound)
        return w, b

    k1, k2, k3 = jax.random.split(key, 3)
    w1, b1 = linear(k1, input_size, H1)
    w2, b2 = linear(k2, H1, H2)
    w3, b3 = linear(k3, H2, OUT)
    return (w1, b1, w2, b2, w3, b3)


if __name__ == "__main__":
    key = jax.random.PRNGKey(0)
    k_x, k_p, k_drop = jax.random.split(key, 3)

    # Small NCHW input: (batch=2, channels=4, H=16, W=16) -> input_size = 1024.
    B, C, Hs, Ws = 2, 4, 16, 16
    input_size = C * Hs * Ws
    x = jax.random.normal(k_x, (B, C, Hs, Ws), jnp.float32)

    params = init_params(k_p, input_size)

    out = mlp_forward(x, params, k_drop, input_size=input_size)
    out = jax.block_until_ready(out)

    assert out.shape == (B, 2), out.shape
    assert out.dtype == jnp.float32, out.dtype
    print("KERNEL_OK")
</pallas_src>

<mosaic_0001>
module attributes {stable_mosaic.version = 11 : i64} {
  func.func @mlp_kernel(%arg0: i32, %arg1: memref<8x1024xbf16, #tpu.memory_space<vmem>>, %arg2: memref<1024x1024xbf16, #tpu.memory_space<vmem>>, %arg3: memref<1x1024xf32, #tpu.memory_space<vmem>>, %arg4: memref<8x1024xf32, #tpu.memory_space<vmem>>, %arg5: memref<1024x512xbf16, #tpu.memory_space<vmem>>, %arg6: memref<1x512xf32, #tpu.memory_space<vmem>>, %arg7: memref<8x512xf32, #tpu.memory_space<vmem>>, %arg8: memref<512x128xbf16, #tpu.memory_space<vmem>>, %arg9: memref<1x128xf32, #tpu.memory_space<vmem>>, %arg10: memref<8x128xf32, #tpu.memory_space<vmem>>) attributes {dimension_semantics = [#tpu.dimension_semantics<parallel>], iteration_bounds = array<i64: 1>, scalar_prefetch = 0 : i64, scratch_operands = 0 : i64, tpu.core_type = #tpu.core_type<tc>, window_params = [{transform_indices = @transform_0, window_bounds = array<i64: 8, 1024>}, {pipeline_mode = #tpu.pipeline_mode<synchronous>, transform_indices = @transform_1, window_bounds = array<i64: 1024, 1024>}, {pipeline_mode = #tpu.pipeline_mode<synchronous>, transform_indices = @transform_2, window_bounds = array<i64: 1, 1024>}, {transform_indices = @transform_3, window_bounds = array<i64: 8, 1024>}, {pipeline_mode = #tpu.pipeline_mode<synchronous>, transform_indices = @transform_4, window_bounds = array<i64: 1024, 512>}, {pipeline_mode = #tpu.pipeline_mode<synchronous>, transform_indices = @transform_5, window_bounds = array<i64: 1, 512>}, {transform_indices = @transform_6, window_bounds = array<i64: 8, 512>}, {pipeline_mode = #tpu.pipeline_mode<synchronous>, transform_indices = @transform_7, window_bounds = array<i64: 512, 128>}, {pipeline_mode = #tpu.pipeline_mode<synchronous>, transform_indices = @transform_8, window_bounds = array<i64: 1, 128>}, {transform_indices = @transform_9, window_bounds = array<i64: 8, 128>}]} {
    %c0 = arith.constant 0 : index
    %c0_0 = arith.constant 0 : index
    %0 = vector.load %arg1[%c0, %c0_0] : memref<8x1024xbf16, #tpu.memory_space<vmem>>, vector<8x1024xbf16>
    %c0_1 = arith.constant 0 : index
    %c0_2 = arith.constant 0 : index
    %1 = vector.load %arg2[%c0_1, %c0_2] : memref<1024x1024xbf16, #tpu.memory_space<vmem>>, vector<1024x1024xbf16>
    %cst = arith.constant dense<0.000000e+00> : vector<8x1024xf32>
    %2 = tpu.matmul %0, %1, %cst {dimension_numbers = #tpu.dot_dimension_numbers<[1], [0], [0], [1], [0, 0, 1, 1], [], []>} : vector<8x1024xbf16>, vector<1024x1024xbf16>, vector<8x1024xf32> -> vector<8x1024xf32>
    %c0_3 = arith.constant 0 : index
    %c0_4 = arith.constant 0 : index
    %3 = vector.load %arg3[%c0_3, %c0_4] : memref<1x1024xf32, #tpu.memory_space<vmem>>, vector<1x1024xf32>
    %4 = vector.broadcast %3 : vector<1x1024xf32> to vector<8x1024xf32>
    %5 = arith.addf %2, %4 : vector<8x1024xf32>
    %cst_5 = arith.constant 0.000000e+00 : f32
    %6 = vector.broadcast %cst_5 : f32 to vector<8x1024xf32>
    %7 = arith.maximumf %5, %6 : vector<8x1024xf32>
    %c0_6 = arith.constant 0 : index
    %c0_7 = arith.constant 0 : index
    %8 = vector.load %arg4[%c0_6, %c0_7] : memref<8x1024xf32, #tpu.memory_space<vmem>>, vector<8x1024xf32>
    %9 = arith.mulf %7, %8 : vector<8x1024xf32>
    %10 = arith.truncf %9 : vector<8x1024xf32> to vector<8x1024xbf16>
    %c0_8 = arith.constant 0 : index
    %c0_9 = arith.constant 0 : index
    %11 = vector.load %arg5[%c0_8, %c0_9] : memref<1024x512xbf16, #tpu.memory_space<vmem>>, vector<1024x512xbf16>
    %cst_10 = arith.constant dense<0.000000e+00> : vector<8x512xf32>
    %12 = tpu.matmul %10, %11, %cst_10 {dimension_numbers = #tpu.dot_dimension_numbers<[1], [0], [0], [1], [0, 0, 1, 1], [], []>} : vector<8x1024xbf16>, vector<1024x512xbf16>, vector<8x512xf32> -> vector<8x512xf32>
    %c0_11 = arith.constant 0 : index
    %c0_12 = arith.constant 0 : index
    %13 = vector.load %arg6[%c0_11, %c0_12] : memref<1x512xf32, #tpu.memory_space<vmem>>, vector<1x512xf32>
    %14 = vector.broadcast %13 : vector<1x512xf32> to vector<8x512xf32>
    %15 = arith.addf %12, %14 : vector<8x512xf32>
    %cst_13 = arith.constant 0.000000e+00 : f32
    %16 = vector.broadcast %cst_13 : f32 to vector<8x512xf32>
    %17 = arith.maximumf %15, %16 : vector<8x512xf32>
    %c0_14 = arith.constant 0 : index
    %c0_15 = arith.constant 0 : index
    %18 = vector.load %arg7[%c0_14, %c0_15] : memref<8x512xf32, #tpu.memory_space<vmem>>, vector<8x512xf32>
    %19 = arith.mulf %17, %18 : vector<8x512xf32>
    %20 = arith.truncf %19 : vector<8x512xf32> to vector<8x512xbf16>
    %c0_16 = arith.constant 0 : index
    %c0_17 = arith.constant 0 : index
    %21 = vector.load %arg8[%c0_16, %c0_17] : memref<512x128xbf16, #tpu.memory_space<vmem>>, vector<512x128xbf16>
    %cst_18 = arith.constant dense<0.000000e+00> : vector<8x128xf32>
    %22 = tpu.matmul %20, %21, %cst_18 {dimension_numbers = #tpu.dot_dimension_numbers<[1], [0], [0], [1], [0, 0, 1, 1], [], []>} : vector<8x512xbf16>, vector<512x128xbf16>, vector<8x128xf32> -> vector<8x128xf32>
    %c0_19 = arith.constant 0 : index
    %c0_20 = arith.constant 0 : index
    %23 = vector.load %arg9[%c0_19, %c0_20] : memref<1x128xf32, #tpu.memory_space<vmem>>, vector<1x128xf32>
    %24 = vector.broadcast %23 : vector<1x128xf32> to vector<8x128xf32>
    %25 = arith.addf %22, %24 : vector<8x128xf32>
    %c0_21 = arith.constant 0 : index
    %c0_22 = arith.constant 0 : index
    %26 = vector.load %arg10[%c0_21, %c0_22] : memref<8x128xf32, #tpu.memory_space<vmem>>, vector<8x128xf32>
    tpu.vector_store %arg10[%c0_21, %c0_22], %25 {strides = array<i32>} : memref<8x128xf32, #tpu.memory_space<vmem>>, vector<8x128xf32>,
    return
  }
  func.func @transform_0(%arg0: i32) -> (i32, i32) {
    %c0_i32 = arith.constant 0 : i32
    %c0_i32_0 = arith.constant 0 : i32
    return %arg0, %c0_i32 : i32, i32
  }
  func.func @transform_1(%arg0: i32) -> (i32, i32) {
    %c0_i32 = arith.constant 0 : i32
    %c0_i32_0 = arith.constant 0 : i32
    %c0_i32_1 = arith.constant 0 : i32
    return %c0_i32, %c0_i32_0 : i32, i32
  }
  func.func @transform_2(%arg0: i32) -> (i32, i32) {
    %c0_i32 = arith.constant 0 : i32
    %c0_i32_0 = arith.constant 0 : i32
    %c0_i32_1 = arith.constant 0 : i32
    return %c0_i32, %c0_i32_0 : i32, i32
  }
  func.func @transform_3(%arg0: i32) -> (i32, i32) {
    %c0_i32 = arith.constant 0 : i32
    %c0_i32_0 = arith.constant 0 : i32
    return %arg0, %c0_i32 : i32, i32
  }
  func.func @transform_4(%arg0: i32) -> (i32, i32) {
    %c0_i32 = arith.constant 0 : i32
    %c0_i32_0 = arith.constant 0 : i32
    %c0_i32_1 = arith.constant 0 : i32
    return %c0_i32, %c0_i32_0 : i32, i32
  }
  func.func @transform_5(%arg0: i32) -> (i32, i32) {
    %c0_i32 = arith.constant 0 : i32
    %c0_i32_0 = arith.constant 0 : i32
    %c0_i32_1 = arith.constant 0 : i32
    return %c0_i32, %c0_i32_0 : i32, i32
  }
  func.func @transform_6(%arg0: i32) -> (i32, i32) {
    %c0_i32 = arith.constant 0 : i32
    %c0_i32_0 = arith.constant 0 : i32
    return %arg0, %c0_i32 : i32, i32
  }
  func.func @transform_7(%arg0: i32) -> (i32, i32) {
    %c0_i32 = arith.constant 0 : i32
    %c0_i32_0 = arith.constant 0 : i32
    %c0_i32_1 = arith.constant 0 : i32
    return %c0_i32, %c0_i32_0 : i32, i32
  }
  func.func @transform_8(%arg0: i32) -> (i32, i32) {
    %c0_i32 = arith.constant 0 : i32
    %c0_i32_0 = arith.constant 0 : i32
    %c0_i32_1 = arith.constant 0 : i32
    return %c0_i32, %c0_i32_0 : i32, i32
  }
  func.func @transform_9(%arg0: i32) -> (i32, i32) {
    %c0_i32 = arith.constant 0 : i32
    %c0_i32_0 = arith.constant 0 : i32
    return %arg0, %c0_i32 : i32, i32
  }
}

</mosaic_0001>

<bundles_post_ra>
// kernel: mlp_forward.3
= control target key start
LH: loop header
LB: loop body
LE: loop exit
PB: predicated region body
PF: predicated region fallthrough
CT: control target
= control target key end

     0   :  { %s10116_s1 = inlined_call_operand.vmem [shape: bf16[1024,1024], index: 1, kind: input, shape index: {}]   ;;  %s10117_s0 = inlined_call_operand.vmem [shape: bf16[8,1024], index: 0, kind: input, shape index: {}]   ;;  %s10118_s2 = inlined_call_operand.vmem [shape: f32[1,1024], index: 2, kind: input, shape index: {}]   ;;  %s10119_s4 = inlined_call_operand.vmem [shape: bf16[1024,512], index: 4, kind: input, shape index: {}]   ;;  %s10120_s3 = inlined_call_operand.vmem [shape: f32[8,1024], index: 3, kind: input, shape index: {}]   ;;  %s10121_s7 = inlined_call_operand.vmem [shape: bf16[512,128], index: 7, kind: input, shape index: {}]   ;;  %s10122_s5 = inlined_call_operand.vmem [shape: f32[1,512], index: 5, kind: input, shape index: {}]   ;;  %s10123_s6 = inlined_call_operand.vmem [shape: f32[8,512], index: 6, kind: input, shape index: {}]   ;;  %s10124_s8 = inlined_call_operand.vmem [shape: f32[1,128], index: 8, kind: input, shape index: {}]   ;;  %s10125_s9 = inlined_call_operand.vmem [shape: f32[8,128], index: 9, kind: output, shape index: {}]  }
   0x1   :  { %v93_v0 = vld [vmem:[%s10116_s1 + $0x1c0] sm:$0xff]  ;;  %v7537_v54 = vld [vmem:[%s10117_s0 + $0x8] sm:$0xff] }
   0x2   :  { %v97_v1 = vld [vmem:[%s10116_s1 + $0x1e0] sm:$0xff]  ;;  %v7551_v59 = vcombine.high %v7537_v54, %v7537_v54 }
   0x3   :  { %v221_v2 = vld [vmem:[%s10116_s1 + $0x5c0] sm:$0xff]  ;;  %v6182_v3 = vcombine.high %v93_v0, %v97_v1  ;;  %v6181_v5 = vcombine.low %v93_v0, %v97_v1 }
   0x4   :  { %v225_v4 = vld [vmem:[%s10116_s1 + $0x5e0] sm:$0xff]  ;;  %3252 = vmatprep.mubr.bf16.mxu1 %v7551_v59 }
   0x5   :  { %v85_v6 = vld [vmem:[%s10116_s1 + $0x180] sm:$0xff]  ;;  %v6310_v8 = vcombine.high %v221_v2, %v225_v4  ;;  %v6309_v9 = vcombine.low %v221_v2, %v225_v4  ;;  %3179 = vmatprep.subr.bf16.mxu0 %v6182_v3 }
   0x6   :  { %v89_v7 = vld [vmem:[%s10116_s1 + $0x1a0] sm:$0xff]  ;;  %3180 = vmatpush1.bf16.msra.mxu0 %v6181_v5 }
   0x7   :  { %v6174_v10 = vcombine.high %v85_v6, %v89_v7  ;;  %v213_v11 = vld [vmem:[%s10116_s1 + $0x580] sm:$0xff]  ;;  %3220 = vmatprep.subr.bf16.mxu1 %v6310_v8  ;;  %v6173_v18 = vcombine.low %v85_v6, %v89_v7 }
   0x8   :  { %v217_v12 = vld [vmem:[%s10116_s1 + $0x5a0] sm:$0xff]  ;;  %3221 = vmatpush1.bf16.msra.mxu1 %v6309_v9 }
   0x9   :  { %v77_v13 = vld [vmem:[%s10116_s1 + $0x140] sm:$0xff]  ;;  %v6302_v14 = vcombine.high %v213_v11, %v217_v12  ;;  %3181 = vmatprep.subr.bf16.mxu0 %v6174_v10  ;;  %v6301_v19 = vcombine.low %v213_v11, %v217_v12 }
   0xa   :  { %v81_v15 = vld [vmem:[%s10116_s1 + $0x160] sm:$0xff]  ;;  %3182 = vmatpush1.bf16.msra.mxu0 %v6173_v18 }
   0xb   :  { %v205_v16 = vld [vmem:[%s10116_s1 + $0x540] sm:$0xff]  ;;  %v6166_v20 = vcombine.high %v77_v13, %v81_v15  ;;  %3222 = vmatprep.subr.bf16.mxu1 %v6302_v14  ;;  %v6165_v26 = vcombine.low %v77_v13, %v81_v15 }
   0xc   :  { %v209_v17 = vld [vmem:[%s10116_s1 + $0x560] sm:$0xff]  ;;  %3223 = vmatpush1.bf16.msra.mxu1 %v6301_v19 }
   0xd   :  { %v6294_v21 = vcombine.high %v205_v16, %v209_v17  ;;  %v69_v22 = vld [vmem:[%s10116_s1 + $0x100] sm:$0xff]  ;;  %3183 = vmatprep.subr.bf16.mxu0 %v6166_v20  ;;  %v6293_v27 = vcombine.low %v205_v16, %v209_v17 }
   0xe   :  { %v73_v23 = vld [vmem:[%s10116_s1 + $0x120] sm:$0xff]  ;;  %3184 = vmatpush1.bf16.msra.mxu0 %v6165_v26 }
   0xf   :  { %v197_v24 = vld [vmem:[%s10116_s1 + $0x500] sm:$0xff]  ;;  %v6158_v28 = vcombine.high %v69_v22, %v73_v23  ;;  %3224 = vmatprep.subr.bf16.mxu1 %v6294_v21  ;;  %v6157_v34 = vcombine.low %v69_v22, %v73_v23 }
  0x10   :  { %v201_v25 = vld [vmem:[%s10116_s1 + $0x520] sm:$0xff]  ;;  %3225 = vmatpush1.bf16.msra.mxu1 %v6293_v27 }
  0x11   :  { %v6286_v29 = vcombine.high %v197_v24, %v201_v25  ;;  %v61_v30 = vld [vmem:[%s10116_s1 + $0xc0] sm:$0xff]  ;;  %3185 = vmatprep.subr.bf16.mxu0 %v6158_v28  ;;  %v6285_v35 = vcombine.low %v197_v24, %v201_v25 }
  0x12   :  { %v65_v31 = vld [vmem:[%s10116_s1 + $0xe0] sm:$0xff]  ;;  %3186 = vmatpush1.bf16.msra.mxu0 %v6157_v34 }
  0x13   :  { %v189_v32 = vld [vmem:[%s10116_s1 + $0x4c0] sm:$0xff]  ;;  %v6150_v36 = vcombine.high %v61_v30, %v65_v31  ;;  %3226 = vmatprep.subr.bf16.mxu1 %v6286_v29  ;;  %v6149_v42 = vcombine.low %v61_v30, %v65_v31 }
  0x14   :  { %v193_v33 = vld [vmem:[%s10116_s1 + $0x4e0] sm:$0xff]  ;;  %3227 = vmatpush1.bf16.msra.mxu1 %v6285_v35 }
  0x15   :  { %v6278_v37 = vcombine.high %v189_v32, %v193_v33  ;;  %v53_v38 = vld [vmem:[%s10116_s1 + $0x80] sm:$0xff]  ;;  %3187 = vmatprep.subr.bf16.mxu0 %v6150_v36  ;;  %v6277_v43 = vcombine.low %v189_v32, %v193_v33 }
  0x16   :  { %v57_v39 = vld [vmem:[%s10116_s1 + $0xa0] sm:$0xff]  ;;  %3188 = vmatpush1.bf16.msra.mxu0 %v6149_v42 }
  0x17   :  { %v181_v40 = vld [vmem:[%s10116_s1 + $0x480] sm:$0xff]  ;;  %v6142_v44 = vcombine.high %v53_v38, %v57_v39  ;;  %3228 = vmatprep.subr.bf16.mxu1 %v6278_v37  ;;  %v6141_v50 = vcombine.low %v53_v38, %v57_v39 }
  0x18   :  { %v185_v41 = vld [vmem:[%s10116_s1 + $0x4a0] sm:$0xff]  ;;  %3229 = vmatpush1.bf16.msra.mxu1 %v6277_v43 }
  0x19   :  { %v6270_v45 = vcombine.high %v181_v40, %v185_v41  ;;  %v45_v46 = vld [vmem:[%s10116_s1 + $0x40] sm:$0xff]  ;;  %3189 = vmatprep.subr.bf16.mxu0 %v6142_v44  ;;  %v6269_v51 = vcombine.low %v181_v40, %v185_v41 }
  0x1a   :  { %v49_v47 = vld [vmem:[%s10116_s1 + $0x60] sm:$0xff]  ;;  %3190 = vmatpush1.bf16.msra.mxu0 %v6141_v50 }
  0x1b   :  { %v173_v48 = vld [vmem:[%s10116_s1 + $0x440] sm:$0xff]  ;;  %v6134_v52 = vcombine.high %v45_v46, %v49_v47  ;;  %3230 = vmatprep.subr.bf16.mxu1 %v6270_v45  ;;  %v6133_v62 = vcombine.low %v45_v46, %v49_v47 }
  0x1c   :  { %v177_v49 = vld [vmem:[%s10116_s1 + $0x460] sm:$0xff]  ;;  %3231 = vmatpush1.bf16.msra.mxu1 %v6269_v51 }
  0x1d   :  { %v7532_v53 = vld [vmem:[%s10117_s0] sm:$0xff]  ;;  %v6262_v55 = vcombine.high %v173_v48, %v177_v49  ;;  %3191 = vmatprep.subr.bf16.mxu0 %v6134_v52  ;;  %v6261_v63 = vcombine.low %v173_v48, %v177_v49 }
  0x1e   :  { %v37_v56 = vld [vmem:[%s10116_s1] sm:$0xff]  ;;  %v7547_v58 = vcombine.high %v7532_v53, %v7532_v53  ;;  %3192 = vmatpush1.bf16.msra.mxu0 %v6133_v62 }
  0x1f   :  { %v41_v57 = vld [vmem:[%s10116_s1 + $0x20] sm:$0xff]  ;;  %3232 = vmatprep.subr.bf16.mxu1 %v6262_v55 }
  0x20   :  { %v165_v60 = vld [vmem:[%s10116_s1 + $0x400] sm:$0xff]  ;;  %3211 = vmatprep.mubr.bf16.mxu0 %v7547_v58  ;;  %v6126_v0 = vcombine.high %v37_v56, %v41_v57  ;;  %v6125_v6 = vcombine.low %v37_v56, %v41_v57  ;;  %3233 = vmatpush1.bf16.msra.mxu1 %v6261_v63 }
  0x21   :  { %v169_v61 = vld [vmem:[%s10116_s1 + $0x420] sm:$0xff] }
  0x22   :  { %v6254_v1 = vcombine.high %v165_v60, %v169_v61  ;;  %v157_v2 = vld [vmem:[%s10116_s1 + $0x3c0] sm:$0xff]  ;;  %3193 = vmatprep.subr.bf16.mxu0 %v6126_v0  ;;  %v6253_v7 = vcombine.low %v165_v60, %v169_v61 }
  0x23   :  { %v161_v3 = vld [vmem:[%s10116_s1 + $0x3e0] sm:$0xff]  ;;  %3194 = vmatpush1.bf16.msra.mxu0 %v6125_v6 }
  0x24   :  { %v285_v4 = vld [vmem:[%s10116_s1 + $0x7c0] sm:$0xff]  ;;  %v6246_v8 = vcombine.high %v157_v2, %v161_v3  ;;  %3234 = vmatprep.subr.bf16.mxu1 %v6254_v1  ;;  %v6245_v14 = vcombine.low %v157_v2, %v161_v3 }
  0x25   :  { %v289_v5 = vld [vmem:[%s10116_s1 + $0x7e0] sm:$0xff]  ;;  %3235 = vmatpush1.bf16.msra.mxu1 %v6253_v7 }
  0x26   :  { %v6374_v9 = vcombine.high %v285_v4, %v289_v5  ;;  %v149_v10 = vld [vmem:[%s10116_s1 + $0x380] sm:$0xff]  ;;  %3195 = vmatprep.subr.bf16.mxu0 %v6246_v8  ;;  %v6373_v15 = vcombine.low %v285_v4, %v289_v5 }
  0x27   :  { %v153_v11 = vld [vmem:[%s10116_s1 + $0x3a0] sm:$0xff]  ;;  %3196 = vmatpush2.bf16.msra.mxu0 %v6245_v14 }
  0x28   :  { %v277_v12 = vld [vmem:[%s10116_s1 + $0x780] sm:$0xff]  ;;  %v6238_v16 = vcombine.high %v149_v10, %v153_v11  ;;  %3236 = vmatprep.subr.bf16.mxu1 %v6374_v9  ;;  %v6237_v22 = vcombine.low %v149_v10, %v153_v11 }
  0x29   :  { %v281_v13 = vld [vmem:[%s10116_s1 + $0x7a0] sm:$0xff]  ;;  %3237 = vmatpush2.bf16.msra.mxu1 %v6373_v15 }
  0x2a   :  { %v6366_v17 = vcombine.high %v277_v12, %v281_v13  ;;  %v141_v18 = vld [vmem:[%s10116_s1 + $0x340] sm:$0xff]  ;;  %3197 = vmatprep.subr.bf16.mxu0 %v6238_v16  ;;  %v6365_v23 = vcombine.low %v277_v12, %v281_v13  ;;  %v7677_v16 = vcombine.low %v7532_v53, %v7532_v53 }
  0x2b   :  { %v145_v19 = vld [vmem:[%s10116_s1 + $0x360] sm:$0xff]  ;;  %3198 = vmatpush2.bf16.msra.mxu0 %v6237_v22 }
  0x2c   :  { %v269_v20 = vld [vmem:[%s10116_s1 + $0x740] sm:$0xff]  ;;  %v6230_v24 = vcombine.high %v141_v18, %v145_v19  ;;  %3238 = vmatprep.subr.bf16.mxu1 %v6366_v17  ;;  %v6229_v30 = vcombine.low %v141_v18, %v145_v19  ;;  %v7688_v19 = vld [vmem:[%s10117_s0 + $0x10] sm:$0xff] }
  0x2d   :  { %v273_v21 = vld [vmem:[%s10116_s1 + $0x760] sm:$0xff]  ;;  %3239 = vmatpush2.bf16.msra.mxu1 %v6365_v23 }
  0x2e   :  { %v6358_v25 = vcombine.high %v269_v20, %v273_v21  ;;  %v133_v26 = vld [vmem:[%s10116_s1 + $0x300] sm:$0xff]  ;;  %3199 = vmatprep.subr.bf16.mxu0 %v6230_v24  ;;  %v6357_v31 = vcombine.low %v269_v20, %v273_v21  ;;  %v7692_v20 = vcombine.low %v7537_v54, %v7537_v54  ;;  %v7697_v21 = vld [vmem:[%s10117_s0 + $0x18] sm:$0xff] }
  0x2f   :  { %v137_v27 = vld [vmem:[%s10116_s1 + $0x320] sm:$0xff]  ;;  %3200 = vmatpush2.bf16.msra.mxu0 %v6229_v30 }
  0x30   :  { %v261_v28 = vld [vmem:[%s10116_s1 + $0x700] sm:$0xff]  ;;  %v6222_v32 = vcombine.high %v133_v26, %v137_v27  ;;  %3240 = vmatprep.subr.bf16.mxu1 %v6358_v25  ;;  %v6221_v38 = vcombine.low %v133_v26, %v137_v27  ;;  %v7707_v26 = vcombine.high %v7688_v19, %v7688_v19 }
  0x31   :  { %v265_v29 = vld [vmem:[%s10116_s1 + $0x720] sm:$0xff]  ;;  %3241 = vmatpush2.bf16.msra.mxu1 %v6357_v31 }
  0x32   :  { %v6350_v33 = vcombine.high %v261_v28, %v265_v29  ;;  %v125_v34 = vld [vmem:[%s10116_s1 + $0x2c0] sm:$0xff]  ;;  %3201 = vmatprep.subr.bf16.mxu0 %v6222_v32  ;;  %v6349_v39 = vcombine.low %v261_v28, %v265_v29  ;;  %v7718_v29 = vcombine.high %v7697_v21, %v7697_v21 }
  0x33   :  { %v129_v35 = vld [vmem:[%s10116_s1 + $0x2e0] sm:$0xff]  ;;  %3202 = vmatpush2.bf16.msra.mxu0 %v6221_v38 }
  0x34   :  { %v253_v36 = vld [vmem:[%s10116_s1 + $0x6c0] sm:$0xff]  ;;  %v6214_v40 = vcombine.high %v125_v34, %v129_v35  ;;  %3242 = vmatprep.subr.bf16.mxu1 %v6350_v33  ;;  %v6213_v46 = vcombine.low %v125_v34, %v129_v35 }
  0x35   :  { %v257_v37 = vld [vmem:[%s10116_s1 + $0x6e0] sm:$0xff]  ;;  %3243 = vmatpush2.bf16.msra.mxu1 %v6349_v39 }
  0x36   :  { %v6342_v41 = vcombine.high %v253_v36, %v257_v37  ;;  %v117_v42 = vld [vmem:[%s10116_s1 + $0x280] sm:$0xff]  ;;  %3203 = vmatprep.subr.bf16.mxu0 %v6214_v40  ;;  %v6341_v47 = vcombine.low %v253_v36, %v257_v37 }
  0x37   :  { %v121_v43 = vld [vmem:[%s10116_s1 + $0x2a0] sm:$0xff]  ;;  %3204 = vmatpush2.bf16.msra.mxu0 %v6213_v46 }
  0x38   :  { %v245_v44 = vld [vmem:[%s10116_s1 + $0x680] sm:$0xff]  ;;  %v6206_v48 = vcombine.high %v117_v42, %v121_v43  ;;  %3244 = vmatprep.subr.bf16.mxu1 %v6342_v41  ;;  %v6205_v56 = vcombine.low %v117_v42, %v121_v43 }
  0x39   :  { %v249_v45 = vld [vmem:[%s10116_s1 + $0x6a0] sm:$0xff]  ;;  %3245 = vmatpush2.bf16.msra.mxu1 %v6341_v47 }
  0x3a   :  { %v6334_v49 = vcombine.high %v245_v44, %v249_v45  ;;  %v109_v50 = vld [vmem:[%s10116_s1 + $0x240] sm:$0xff]  ;;  %3205 = vmatprep.subr.bf16.mxu0 %v6206_v48  ;;  %v6333_v57 = vcombine.low %v245_v44, %v249_v45 }
  0x3b   :  { %v113_v51 = vld [vmem:[%s10116_s1 + $0x260] sm:$0xff]  ;;  %3206 = vmatpush2.bf16.msra.mxu0 %v6205_v56 }
  0x3c   :  { %v237_v52 = vld [vmem:[%s10116_s1 + $0x640] sm:$0xff]  ;;  %v6198_v60 = vcombine.high %v109_v50, %v113_v51  ;;  %3246 = vmatprep.subr.bf16.mxu1 %v6334_v49  ;;  %v6197_v2 = vcombine.low %v109_v50, %v113_v51 }
  0x3d   :  { %v241_v55 = vld [vmem:[%s10116_s1 + $0x660] sm:$0xff]  ;;  %3247 = vmatpush2.bf16.msra.mxu1 %v6333_v57 }
  0x3e   :  { %v6326_v61 = vcombine.high %v237_v52, %v241_v55  ;;  %v101_v62 = vld [vmem:[%s10116_s1 + $0x200] sm:$0xff]  ;;  %3207 = vmatprep.subr.bf16.mxu0 %v6198_v60  ;;  %v6325_v3 = vcombine.low %v237_v52, %v241_v55 }
  0x3f   :  { %v105_v63 = vld [vmem:[%s10116_s1 + $0x220] sm:$0xff]  ;;  %3208 = vmatpush2.bf16.msra.mxu0 %v6197_v2 }
  0x40   :  { %v229_v0 = vld [vmem:[%s10116_s1 + $0x600] sm:$0xff]  ;;  %v6190_v4 = vcombine.high %v101_v62, %v105_v63  ;;  %3248 = vmatprep.subr.bf16.mxu1 %v6326_v61  ;;  %v6189_v10 = vcombine.low %v101_v62, %v105_v63 }
  0x41   :  { %v233_v1 = vld [vmem:[%s10116_s1 + $0x620] sm:$0xff]  ;;  %3249 = vmatpush2.bf16.msra.mxu1 %v6325_v3 }
  0x42   :  { %v6318_v5 = vcombine.high %v229_v0, %v233_v1  ;;  %v349_v6 = vld [vmem:[%s10116_s1 + $0x9c0] sm:$0xff]  ;;  %3209 = vmatprep.subr.bf16.mxu0 %v6190_v4  ;;  %v6317_v11 = vcombine.low %v229_v0, %v233_v1 }
  0x43   :  { %v353_v7 = vld [vmem:[%s10116_s1 + $0x9e0] sm:$0xff]  ;;  %3210 = vmatpush2.bf16.msra.mxu0 %v6189_v10 }
  0x44   :  { %v477_v8 = vld [vmem:[%s10116_s1 + $0xdc0] sm:$0xff]  ;;  %v6438_v12 = vcombine.high %v349_v6, %v353_v7  ;;  %3250 = vmatprep.subr.bf16.mxu1 %v6318_v5  ;;  %v6437_v53 = vcombine.low %v349_v6, %v353_v7 }
  0x45   :  { %v481_v9 = vld [vmem:[%s10116_s1 + $0xde0] sm:$0xff]  ;;  %3251 = vmatpush2.bf16.msra.mxu1 %v6317_v11 }
  0x46   :  { %v6566_v13 = vcombine.high %v477_v8, %v481_v9  ;;  %v341_v14 = vld [vmem:[%s10116_s1 + $0x980] sm:$0xff]  ;;  %3261 = vmatprep.subr.bf16.mxu0 %v6438_v12  ;;  %v6565_v22 = vcombine.low %v477_v8, %v481_v9  ;;  %3212 = vmatmul.mubr.bf16.vlgmr.msra.gmra.mxu0 %v7677_v16 }
  0x47   :  { %v345_v15 = vld [vmem:[%s10116_s1 + $0x9a0] sm:$0xff]  ;;  %3262 = vmatpush1.bf16.msra.mxu0 %v6437_v53  ;;  %3293 = vmatprep.mubr.bf16.mxu0 %v7707_v26 }
  0x48   :  { %v469_v17 = vld [vmem:[%s10116_s1 + $0xd80] sm:$0xff]  ;;  %v6430_v23 = vcombine.high %v341_v14, %v345_v15  ;;  %3302 = vmatprep.subr.bf16.mxu1 %v6566_v13  ;;  %3253 = vmatmul.mubr.bf16.vlgmr.msra.gmra.mxu1 %v7692_v20  ;;  %v6429_v30 = vcombine.low %v341_v14, %v345_v15 }
  0x49   :  { %v473_v18 = vld [vmem:[%s10116_s1 + $0xda0] sm:$0xff]  ;;  %3303 = vmatpush1.bf16.msra.mxu1 %v6565_v22  ;;  %3334 = vmatprep.mubr.bf16.mxu1 %v7718_v29 }
  0x4a   :  { %v6558_v24 = vcombine.high %v469_v17, %v473_v18  ;;  %v333_v25 = vld [vmem:[%s10116_s1 + $0x940] sm:$0xff]  ;;  %3263 = vmatprep.subr.bf16.mxu0 %v6430_v23  ;;  %v6557_v31 = vcombine.low %v469_v17, %v473_v18 }
  0x4b   :  { %v337_v54 = vld [vmem:[%s10116_s1 + $0x960] sm:$0xff]  ;;  %3264 = vmatpush1.bf16.msra.mxu0 %v6429_v30 }
  0x4c   :  { %v461_v27 = vld [vmem:[%s10116_s1 + $0xd40] sm:$0xff]  ;;  %v6422_v32 = vcombine.high %v333_v25, %v337_v54  ;;  %3304 = vmatprep.subr.bf16.mxu1 %v6558_v24  ;;  %v6421_v38 = vcombine.low %v333_v25, %v337_v54 }
  0x4d   :  { %v465_v28 = vld [vmem:[%s10116_s1 + $0xd60] sm:$0xff]  ;;  %3305 = vmatpush1.bf16.msra.mxu1 %v6557_v31 }
  0x4e   :  { %v6550_v33 = vcombine.high %v461_v27, %v465_v28  ;;  %v325_v34 = vld [vmem:[%s10116_s1 + $0x900] sm:$0xff]  ;;  %3265 = vmatprep.subr.bf16.mxu0 %v6422_v32  ;;  %v6549_v39 = vcombine.low %v461_v27, %v465_v28 }
  0x4f   :  { %v329_v35 = vld [vmem:[%s10116_s1 + $0x920] sm:$0xff]  ;;  %3266 = vmatpush1.bf16.msra.mxu0 %v6421_v38 }
  0x50   :  { %v453_v36 = vld [vmem:[%s10116_s1 + $0xd00] sm:$0xff]  ;;  %v6414_v40 = vcombine.high %v325_v34, %v329_v35  ;;  %3306 = vmatprep.subr.bf16.mxu1 %v6550_v33  ;;  %v6413_v46 = vcombine.low %v325_v34, %v329_v35 }
  0x51   :  { %v457_v37 = vld [vmem:[%s10116_s1 + $0xd20] sm:$0xff]  ;;  %3307 = vmatpush1.bf16.msra.mxu1 %v6549_v39 }
  0x52   :  { %v6542_v41 = vcombine.high %v453_v36, %v457_v37  ;;  %v317_v42 = vld [vmem:[%s10116_s1 + $0x8c0] sm:$0xff]  ;;  %3267 = vmatprep.subr.bf16.mxu0 %v6414_v40  ;;  %v6541_v47 = vcombine.low %v453_v36, %v457_v37 }
  0x53   :  { %v321_v43 = vld [vmem:[%s10116_s1 + $0x8e0] sm:$0xff]  ;;  %3268 = vmatpush1.bf16.msra.mxu0 %v6413_v46 }
  0x54   :  { %v445_v44 = vld [vmem:[%s10116_s1 + $0xcc0] sm:$0xff]  ;;  %v6406_v48 = vcombine.high %v317_v42, %v321_v43  ;;  %3308 = vmatprep.subr.bf16.mxu1 %v6542_v41  ;;  %v6405_v56 = vcombine.low %v317_v42, %v321_v43 }
  0x55   :  { %v449_v45 = vld [vmem:[%s10116_s1 + $0xce0] sm:$0xff]  ;;  %3309 = vmatpush1.bf16.msra.mxu1 %v6541_v47 }
  0x56   :  { %v6534_v49 = vcombine.high %v445_v44, %v449_v45  ;;  %v309_v50 = vld [vmem:[%s10116_s1 + $0x880] sm:$0xff]  ;;  %3269 = vmatprep.subr.bf16.mxu0 %v6406_v48  ;;  %v6533_v57 = vcombine.low %v445_v44, %v449_v45 }
  0x57   :  { %v313_v51 = vld [vmem:[%s10116_s1 + $0x8a0] sm:$0xff]  ;;  %3270 = vmatpush1.bf16.msra.mxu0 %v6405_v56 }
  0x58   :  { %v437_v52 = vld [vmem:[%s10116_s1 + $0xc80] sm:$0xff]  ;;  %v6398_v60 = vcombine.high %v309_v50, %v313_v51  ;;  %3310 = vmatprep.subr.bf16.mxu1 %v6534_v49  ;;  %v6397_v2 = vcombine.low %v309_v50, %v313_v51 }
  0x59   :  { %v441_v55 = vld [vmem:[%s10116_s1 + $0xca0] sm:$0xff]  ;;  %3311 = vmatpush1.bf16.msra.mxu1 %v6533_v57 }
  0x5a   :  { %v6526_v61 = vcombine.high %v437_v52, %v441_v55  ;;  %v301_v62 = vld [vmem:[%s10116_s1 + $0x840] sm:$0xff]  ;;  %3271 = vmatprep.subr.bf16.mxu0 %v6398_v60  ;;  %v6525_v3 = vcombine.low %v437_v52, %v441_v55 }
  0x5b   :  { %v305_v63 = vld [vmem:[%s10116_s1 + $0x860] sm:$0xff]  ;;  %3272 = vmatpush1.bf16.msra.mxu0 %v6397_v2 }
  0x5c   :  { %v429_v0 = vld [vmem:[%s10116_s1 + $0xc40] sm:$0xff]  ;;  %v6390_v4 = vcombine.high %v301_v62, %v305_v63  ;;  %3312 = vmatprep.subr.bf16.mxu1 %v6526_v61  ;;  %v6389_v10 = vcombine.low %v301_v62, %v305_v63 }
  0x5d   :  { %v433_v1 = vld [vmem:[%s10116_s1 + $0xc60] sm:$0xff]  ;;  %3313 = vmatpush1.bf16.msra.mxu1 %v6525_v3 }
  0x5e   :  { %v6518_v5 = vcombine.high %v429_v0, %v433_v1  ;;  %v293_v6 = vld [vmem:[%s10116_s1 + $0x800] sm:$0xff]  ;;  %3273 = vmatprep.subr.bf16.mxu0 %v6390_v4  ;;  %v6517_v11 = vcombine.low %v429_v0, %v433_v1 }
  0x5f   :  { %v297_v7 = vld [vmem:[%s10116_s1 + $0x820] sm:$0xff]  ;;  %3274 = vmatpush1.bf16.msra.mxu0 %v6389_v10 }
  0x60   :  { %v421_v8 = vld [vmem:[%s10116_s1 + $0xc00] sm:$0xff]  ;;  %v6382_v12 = vcombine.high %v293_v6, %v297_v7  ;;  %3314 = vmatprep.subr.bf16.mxu1 %v6518_v5  ;;  %v6381_v53 = vcombine.low %v293_v6, %v297_v7 }
  0x61   :  { %v425_v9 = vld [vmem:[%s10116_s1 + $0xc20] sm:$0xff]  ;;  %3315 = vmatpush1.bf16.msra.mxu1 %v6517_v11 }
  0x62   :  { %v6510_v13 = vcombine.high %v421_v8, %v425_v9  ;;  %v413_v14 = vld [vmem:[%s10116_s1 + $0xbc0] sm:$0xff]  ;;  %3275 = vmatprep.subr.bf16.mxu0 %v6382_v12  ;;  %v6509_v22 = vcombine.low %v421_v8, %v425_v9 }
  0x63   :  { %v417_v15 = vld [vmem:[%s10116_s1 + $0xbe0] sm:$0xff]  ;;  %3276 = vmatpush1.bf16.msra.mxu0 %v6381_v53 }
  0x64   :  { %v541_v17 = vld [vmem:[%s10116_s1 + $0xfc0] sm:$0xff]  ;;  %v6502_v23 = vcombine.high %v413_v14, %v417_v15  ;;  %3316 = vmatprep.subr.bf16.mxu1 %v6510_v13  ;;  %v6501_v30 = vcombine.low %v413_v14, %v417_v15 }
  0x65   :  { %v545_v18 = vld [vmem:[%s10116_s1 + $0xfe0] sm:$0xff]  ;;  %3317 = vmatpush1.bf16.msra.mxu1 %v6509_v22 }
  0x66   :  { %v6630_v24 = vcombine.high %v541_v17, %v545_v18  ;;  %v405_v25 = vld [vmem:[%s10116_s1 + $0xb80] sm:$0xff]  ;;  %3277 = vmatprep.subr.bf16.mxu0 %v6502_v23  ;;  %v6629_v31 = vcombine.low %v541_v17, %v545_v18 }
  0x67   :  { %v409_v54 = vld [vmem:[%s10116_s1 + $0xba0] sm:$0xff]  ;;  %3278 = vmatpush2.bf16.msra.mxu0 %v6501_v30 }
  0x68   :  { %v533_v27 = vld [vmem:[%s10116_s1 + $0xf80] sm:$0xff]  ;;  %v6494_v32 = vcombine.high %v405_v25, %v409_v54  ;;  %3318 = vmatprep.subr.bf16.mxu1 %v6630_v24  ;;  %v6493_v38 = vcombine.low %v405_v25, %v409_v54  ;;  %v94_v25 = vld [vmem:[%s10116_s1 + $0x1c8] sm:$0xff] }
  0x69   :  { %v537_v28 = vld [vmem:[%s10116_s1 + $0xfa0] sm:$0xff]  ;;  %3319 = vmatpush2.bf16.msra.mxu1 %v6629_v31  ;;  %v98_v54 = vld [vmem:[%s10116_s1 + $0x1e8] sm:$0xff] }
  0x6a   :  { %v6622_v33 = vcombine.high %v533_v27, %v537_v28  ;;  %v397_v34 = vld [vmem:[%s10116_s1 + $0xb40] sm:$0xff]  ;;  %3279 = vmatprep.subr.bf16.mxu0 %v6494_v32  ;;  %v6621_v39 = vcombine.low %v533_v27, %v537_v28  ;;  %v222_v27 = vld [vmem:[%s10116_s1 + $0x5c8] sm:$0xff]  ;;  %v6184_v32 = vcombine.high %v94_v25, %v98_v54 }
  0x6b   :  { %v401_v35 = vld [vmem:[%s10116_s1 + $0xb60] sm:$0xff]  ;;  %3280 = vmatpush2.bf16.msra.mxu0 %v6493_v38  ;;  %v226_v28 = vld [vmem:[%s10116_s1 + $0x5e8] sm:$0xff] }
  0x6c   :  { %v525_v36 = vld [vmem:[%s10116_s1 + $0xf40] sm:$0xff]  ;;  %v6486_v40 = vcombine.high %v397_v34, %v401_v35  ;;  %3320 = vmatprep.subr.bf16.mxu1 %v6622_v33  ;;  %v6485_v46 = vcombine.low %v397_v34, %v401_v35  ;;  %v6312_v33 = vcombine.high %v222_v27, %v226_v28  ;;  %v86_v34 = vld [vmem:[%s10116_s1 + $0x188] sm:$0xff] }
  0x6d   :  { %v529_v37 = vld [vmem:[%s10116_s1 + $0xf60] sm:$0xff]  ;;  %3321 = vmatpush2.bf16.msra.mxu1 %v6621_v39  ;;  %v90_v35 = vld [vmem:[%s10116_s1 + $0x1a8] sm:$0xff]  ;;  %v7909_v39 = vcombine.low %v7697_v21, %v7697_v21 }
  0x6e   :  { %v6614_v41 = vcombine.high %v525_v36, %v529_v37  ;;  %v389_v42 = vld [vmem:[%s10116_s1 + $0xb00] sm:$0xff]  ;;  %3281 = vmatprep.subr.bf16.mxu0 %v6486_v40  ;;  %v6613_v47 = vcombine.low %v525_v36, %v529_v37  ;;  %v7899_v36 = vcombine.low %v7688_v19, %v7688_v19  ;;  %v214_v37 = vld [vmem:[%s10116_s1 + $0x588] sm:$0xff]  ;;  %v6183_v40 = vcombine.low %v94_v25, %v98_v54 }
  0x6f   :  { %v393_v43 = vld [vmem:[%s10116_s1 + $0xb20] sm:$0xff]  ;;  %3282 = vmatpush2.bf16.msra.mxu0 %v6485_v46  ;;  %v218_v38 = vld [vmem:[%s10116_s1 + $0x5a8] sm:$0xff]  ;;  %v6175_v46 = vcombine.low %v86_v34, %v90_v35 }
  0x70   :  { %v517_v44 = vld [vmem:[%s10116_s1 + $0xf00] sm:$0xff]  ;;  %v6478_v48 = vcombine.high %v389_v42, %v393_v43  ;;  %3322 = vmatprep.subr.bf16.mxu1 %v6614_v41  ;;  %v6477_v56 = vcombine.low %v389_v42, %v393_v43  ;;  %v6311_v41 = vcombine.low %v222_v27, %v226_v28  ;;  %v6176_v42 = vcombine.high %v86_v34, %v90_v35  ;;  %v78_v43 = vld [vmem:[%s10116_s1 + $0x148] sm:$0xff] }
  0x71   :  { %v521_v45 = vld [vmem:[%s10116_s1 + $0xf20] sm:$0xff]  ;;  %3323 = vmatpush2.bf16.msra.mxu1 %v6613_v47  ;;  %v6304_v19 = vcombine.high %v214_v37, %v218_v38  ;;  %v206_v21 = vld [vmem:[%s10116_s1 + $0x548] sm:$0xff]  ;;  %v6303_v47 = vcombine.low %v214_v37, %v218_v38 }
  0x72   :  { %v6606_v49 = vcombine.high %v517_v44, %v521_v45  ;;  %v381_v50 = vld [vmem:[%s10116_s1 + $0xac0] sm:$0xff]  ;;  %3283 = vmatprep.subr.bf16.mxu0 %v6478_v48  ;;  %v6605_v57 = vcombine.low %v517_v44, %v521_v45  ;;  %v82_v44 = vld [vmem:[%s10116_s1 + $0x168] sm:$0xff] }
  0x73   :  { %v385_v51 = vld [vmem:[%s10116_s1 + $0xae0] sm:$0xff]  ;;  %3284 = vmatpush2.bf16.msra.mxu0 %v6477_v56  ;;  %v210_v45 = vld [vmem:[%s10116_s1 + $0x568] sm:$0xff]  ;;  %v6168_v48 = vcombine.high %v78_v43, %v82_v44  ;;  %v6167_v56 = vcombine.low %v78_v43, %v82_v44 }
  0x74   :  { %v509_v52 = vld [vmem:[%s10116_s1 + $0xec0] sm:$0xff]  ;;  %v6470_v60 = vcombine.high %v381_v50, %v385_v51  ;;  %3324 = vmatprep.subr.bf16.mxu1 %v6606_v49  ;;  %v6469_v2 = vcombine.low %v381_v50, %v385_v51  ;;  %v6296_v49 = vcombine.high %v206_v21, %v210_v45  ;;  %v70_v50 = vld [vmem:[%s10116_s1 + $0x108] sm:$0xff] }
  0x75   :  { %v513_v55 = vld [vmem:[%s10116_s1 + $0xee0] sm:$0xff]  ;;  %3325 = vmatpush2.bf16.msra.mxu1 %v6605_v57  ;;  %v74_v51 = vld [vmem:[%s10116_s1 + $0x128] sm:$0xff]  ;;  %v6295_v57 = vcombine.low %v206_v21, %v210_v45 }
  0x76   :  { %v6598_v61 = vcombine.high %v509_v52, %v513_v55  ;;  %v373_v62 = vld [vmem:[%s10116_s1 + $0xa80] sm:$0xff]  ;;  %3285 = vmatprep.subr.bf16.mxu0 %v6470_v60  ;;  %v6597_v3 = vcombine.low %v509_v52, %v513_v55  ;;  %v198_v52 = vld [vmem:[%s10116_s1 + $0x508] sm:$0xff]  ;;  %v6160_v60 = vcombine.high %v70_v50, %v74_v51 }
  0x77   :  { %v377_v63 = vld [vmem:[%s10116_s1 + $0xaa0] sm:$0xff]  ;;  %3286 = vmatpush2.bf16.msra.mxu0 %v6469_v2  ;;  %v202_v55 = vld [vmem:[%s10116_s1 + $0x528] sm:$0xff]  ;;  %v6159_v2 = vcombine.low %v70_v50, %v74_v51 }
  0x78   :  { %v501_v0 = vld [vmem:[%s10116_s1 + $0xe80] sm:$0xff]  ;;  %v6462_v4 = vcombine.high %v373_v62, %v377_v63  ;;  %3326 = vmatprep.subr.bf16.mxu1 %v6598_v61  ;;  %v6461_v10 = vcombine.low %v373_v62, %v377_v63  ;;  %v6288_v61 = vcombine.high %v198_v52, %v202_v55  ;;  %v62_v62 = vld [vmem:[%s10116_s1 + $0xc8] sm:$0xff] }
  0x79   :  { %v505_v1 = vld [vmem:[%s10116_s1 + $0xea0] sm:$0xff]  ;;  %3327 = vmatpush2.bf16.msra.mxu1 %v6597_v3  ;;  %v66_v63 = vld [vmem:[%s10116_s1 + $0xe8] sm:$0xff]  ;;  %v6287_v3 = vcombine.low %v198_v52, %v202_v55 }
  0x7a   :  { %v6590_v5 = vcombine.high %v501_v0, %v505_v1  ;;  %v365_v6 = vld [vmem:[%s10116_s1 + $0xa40] sm:$0xff]  ;;  %3287 = vmatprep.subr.bf16.mxu0 %v6462_v4  ;;  %v6589_v11 = vcombine.low %v501_v0, %v505_v1  ;;  %v190_v0 = vld [vmem:[%s10116_s1 + $0x4c8] sm:$0xff]  ;;  %v6152_v4 = vcombine.high %v62_v62, %v66_v63 }
  0x7b   :  { %v369_v7 = vld [vmem:[%s10116_s1 + $0xa60] sm:$0xff]  ;;  %3288 = vmatpush2.bf16.msra.mxu0 %v6461_v10  ;;  %v194_v1 = vld [vmem:[%s10116_s1 + $0x4e8] sm:$0xff]  ;;  %v6151_v10 = vcombine.low %v62_v62, %v66_v63 }
  0x7c   :  { %v493_v8 = vld [vmem:[%s10116_s1 + $0xe40] sm:$0xff]  ;;  %v6454_v12 = vcombine.high %v365_v6, %v369_v7  ;;  %3328 = vmatprep.subr.bf16.mxu1 %v6590_v5  ;;  %v6453_v53 = vcombine.low %v365_v6, %v369_v7  ;;  %v6280_v5 = vcombine.high %v190_v0, %v194_v1  ;;  %v54_v6 = vld [vmem:[%s10116_s1 + $0x88] sm:$0xff] }
  0x7d   :  { %v497_v9 = vld [vmem:[%s10116_s1 + $0xe60] sm:$0xff]  ;;  %3329 = vmatpush2.bf16.msra.mxu1 %v6589_v11  ;;  %v58_v7 = vld [vmem:[%s10116_s1 + $0xa8] sm:$0xff]  ;;  %v6279_v11 = vcombine.low %v190_v0, %v194_v1 }
  0x7e   :  { %v6582_v13 = vcombine.high %v493_v8, %v497_v9  ;;  %v357_v14 = vld [vmem:[%s10116_s1 + $0xa00] sm:$0xff]  ;;  %3289 = vmatprep.subr.bf16.mxu0 %v6454_v12  ;;  %v6581_v22 = vcombine.low %v493_v8, %v497_v9  ;;  %v182_v8 = vld [vmem:[%s10116_s1 + $0x488] sm:$0xff]  ;;  %v6144_v12 = vcombine.high %v54_v6, %v58_v7 }
  0x7f   :  { %v361_v15 = vld [vmem:[%s10116_s1 + $0xa20] sm:$0xff]  ;;  %3290 = vmatpush2.bf16.msra.mxu0 %v6453_v53  ;;  %v186_v9 = vld [vmem:[%s10116_s1 + $0x4a8] sm:$0xff]  ;;  %v6143_v53 = vcombine.low %v54_v6, %v58_v7 }
  0x80   :  { %v485_v17 = vld [vmem:[%s10116_s1 + $0xe00] sm:$0xff]  ;;  %v6446_v23 = vcombine.high %v357_v14, %v361_v15  ;;  %3330 = vmatprep.subr.bf16.mxu1 %v6582_v13  ;;  %v6445_v30 = vcombine.low %v357_v14, %v361_v15  ;;  %v6272_v13 = vcombine.high %v182_v8, %v186_v9  ;;  %v46_v14 = vld [vmem:[%s10116_s1 + $0x48] sm:$0xff] }
  0x81   :  { %v489_v18 = vld [vmem:[%s10116_s1 + $0xe20] sm:$0xff]  ;;  %3331 = vmatpush2.bf16.msra.mxu1 %v6581_v22  ;;  %v50_v15 = vld [vmem:[%s10116_s1 + $0x68] sm:$0xff]  ;;  %v6271_v22 = vcombine.low %v182_v8, %v186_v9 }
  0x82   :  { %v6574_v24 = vcombine.high %v485_v17, %v489_v18  ;;  %3291 = vmatprep.subr.bf16.mxu0 %v6446_v23  ;;  %v6573_v31 = vcombine.low %v485_v17, %v489_v18  ;;  %v174_v17 = vld [vmem:[%s10116_s1 + $0x448] sm:$0xff]  ;;  %v6136_v23 = vcombine.high %v46_v14, %v50_v15 }
  0x83   :  { %3292 = vmatpush2.bf16.msra.mxu0 %v6445_v30  ;;  %v178_v18 = vld [vmem:[%s10116_s1 + $0x468] sm:$0xff]  ;;  %v6135_v30 = vcombine.low %v46_v14, %v50_v15 }
  0x84   :  { %3332 = vmatprep.subr.bf16.mxu1 %v6574_v24  ;;  %3343 = vmatprep.subr.bf16.mxu0 %v6184_v32  ;;  %v6264_v24 = vcombine.high %v174_v17, %v178_v18  ;;  %v38_v25 = vld [vmem:[%s10116_s1 + $0x8] sm:$0xff] }
  0x85   :  { %3333 = vmatpush2.bf16.msra.mxu1 %v6573_v31  ;;  %v42_v54 = vld [vmem:[%s10116_s1 + $0x28] sm:$0xff]  ;;  %v6263_v31 = vcombine.low %v174_v17, %v178_v18 }
  0x86   :  { %3384 = vmatprep.subr.bf16.mxu1 %v6312_v33  ;;  %3294 = vmatmul.mubr.bf16.vlgmr.msra.gmra.mxu0 %v7899_v36  ;;  %v166_v27 = vld [vmem:[%s10116_s1 + $0x408] sm:$0xff]  ;;  %v6128_v32 = vcombine.high %v38_v25, %v42_v54 }
  0x87   :  { %3344 = vmatpush1.bf16.msra.mxu0 %v6183_v40  ;;  %3375 = vmatprep.mubr.bf16.mxu0 %v7547_v58  ;;  %v170_v28 = vld [vmem:[%s10116_s1 + $0x428] sm:$0xff]  ;;  %v6127_v40 = vcombine.low %v38_v25, %v42_v54 }
  0x88   :  { %3335 = vmatmul.mubr.bf16.vlgmr.msra.gmra.mxu1 %v7909_v39  ;;  %3345 = vmatprep.subr.bf16.mxu0 %v6176_v42  ;;  %v6256_v33 = vcombine.high %v166_v27, %v170_v28  ;;  %v158_v34 = vld [vmem:[%s10116_s1 + $0x3c8] sm:$0xff] }
  0x89   :  { %3385 = vmatpush1.bf16.msra.mxu1 %v6311_v41  ;;  %3416 = vmatprep.mubr.bf16.mxu1 %v7551_v59  ;;  %v162_v35 = vld [vmem:[%s10116_s1 + $0x3e8] sm:$0xff]  ;;  %v6255_v41 = vcombine.low %v166_v27, %v170_v28 }
  0x8a   :  { %3386 = vmatprep.subr.bf16.mxu1 %v6304_v19  ;;  %v286_v37 = vld [vmem:[%s10116_s1 + $0x7c8] sm:$0xff]  ;;  %v6248_v42 = vcombine.high %v158_v34, %v162_v35 }
  0x8b   :  { %3346 = vmatpush1.bf16.msra.mxu0 %v6175_v46  ;;  %v290_v38 = vld [vmem:[%s10116_s1 + $0x7e8] sm:$0xff]  ;;  %v6247_v46 = vcombine.low %v158_v34, %v162_v35 }
  0x8c   :  { %3347 = vmatprep.subr.bf16.mxu0 %v6168_v48  ;;  %v6376_v19 = vcombine.high %v286_v37, %v290_v38  ;;  %v150_v43 = vld [vmem:[%s10116_s1 + $0x388] sm:$0xff] }
  0x8d   :  { %3387 = vmatpush1.bf16.msra.mxu1 %v6303_v47  ;;  %v154_v44 = vld [vmem:[%s10116_s1 + $0x3a8] sm:$0xff]  ;;  %v6375_v47 = vcombine.low %v286_v37, %v290_v38 }
  0x8e   :  { %3388 = vmatprep.subr.bf16.mxu1 %v6296_v49  ;;  %v278_v21 = vld [vmem:[%s10116_s1 + $0x788] sm:$0xff]  ;;  %v6240_v48 = vcombine.high %v150_v43, %v154_v44 }
  0x8f   :  { %3348 = vmatpush1.bf16.msra.mxu0 %v6167_v56  ;;  %v282_v45 = vld [vmem:[%s10116_s1 + $0x7a8] sm:$0xff]  ;;  %v6239_v56 = vcombine.low %v150_v43, %v154_v44 }
  0x90   :  { %3349 = vmatprep.subr.bf16.mxu0 %v6160_v60  ;;  %v6368_v49 = vcombine.high %v278_v21, %v282_v45  ;;  %v142_v50 = vld [vmem:[%s10116_s1 + $0x348] sm:$0xff] }
  0x91   :  { %3389 = vmatpush1.bf16.msra.mxu1 %v6295_v57  ;;  %v146_v51 = vld [vmem:[%s10116_s1 + $0x368] sm:$0xff]  ;;  %v6367_v57 = vcombine.low %v278_v21, %v282_v45 }
  0x92   :  { %3390 = vmatprep.subr.bf16.mxu1 %v6288_v61  ;;  %v270_v52 = vld [vmem:[%s10116_s1 + $0x748] sm:$0xff]  ;;  %v6232_v60 = vcombine.high %v142_v50, %v146_v51 }
  0x93   :  { %3350 = vmatpush1.bf16.msra.mxu0 %v6159_v2  ;;  %v274_v55 = vld [vmem:[%s10116_s1 + $0x768] sm:$0xff]  ;;  %v6231_v2 = vcombine.low %v142_v50, %v146_v51 }
  0x94   :  { %3351 = vmatprep.subr.bf16.mxu0 %v6152_v4  ;;  %v6360_v61 = vcombine.high %v270_v52, %v274_v55  ;;  %v134_v62 = vld [vmem:[%s10116_s1 + $0x308] sm:$0xff] }
  0x95   :  { %3391 = vmatpush1.bf16.msra.mxu1 %v6287_v3  ;;  %v138_v63 = vld [vmem:[%s10116_s1 + $0x328] sm:$0xff]  ;;  %v6359_v3 = vcombine.low %v270_v52, %v274_v55 }
  0x96   :  { %3392 = vmatprep.subr.bf16.mxu1 %v6280_v5  ;;  %v262_v0 = vld [vmem:[%s10116_s1 + $0x708] sm:$0xff]  ;;  %v6224_v4 = vcombine.high %v134_v62, %v138_v63 }
  0x97   :  { %3352 = vmatpush1.bf16.msra.mxu0 %v6151_v10  ;;  %v266_v1 = vld [vmem:[%s10116_s1 + $0x728] sm:$0xff]  ;;  %v6223_v10 = vcombine.low %v134_v62, %v138_v63 }
  0x98   :  { %3353 = vmatprep.subr.bf16.mxu0 %v6144_v12  ;;  %v6352_v5 = vcombine.high %v262_v0, %v266_v1  ;;  %v126_v6 = vld [vmem:[%s10116_s1 + $0x2c8] sm:$0xff] }
  0x99   :  { %3393 = vmatpush1.bf16.msra.mxu1 %v6279_v11  ;;  %v130_v7 = vld [vmem:[%s10116_s1 + $0x2e8] sm:$0xff]  ;;  %v6351_v11 = vcombine.low %v262_v0, %v266_v1 }
  0x9a   :  { %3394 = vmatprep.subr.bf16.mxu1 %v6272_v13  ;;  %v254_v8 = vld [vmem:[%s10116_s1 + $0x6c8] sm:$0xff]  ;;  %v6216_v12 = vcombine.high %v126_v6, %v130_v7 }
  0x9b   :  { %3354 = vmatpush1.bf16.msra.mxu0 %v6143_v53  ;;  %v258_v9 = vld [vmem:[%s10116_s1 + $0x6e8] sm:$0xff]  ;;  %v6215_v53 = vcombine.low %v126_v6, %v130_v7 }
  0x9c   :  { %3355 = vmatprep.subr.bf16.mxu0 %v6136_v23  ;;  %v6344_v13 = vcombine.high %v254_v8, %v258_v9  ;;  %v118_v14 = vld [vmem:[%s10116_s1 + $0x288] sm:$0xff] }
  0x9d   :  { %3395 = vmatpush1.bf16.msra.mxu1 %v6271_v22  ;;  %v122_v15 = vld [vmem:[%s10116_s1 + $0x2a8] sm:$0xff]  ;;  %v6343_v22 = vcombine.low %v254_v8, %v258_v9 }
  0x9e   :  { %3396 = vmatprep.subr.bf16.mxu1 %v6264_v24  ;;  %v246_v17 = vld [vmem:[%s10116_s1 + $0x688] sm:$0xff]  ;;  %v6208_v23 = vcombine.high %v118_v14, %v122_v15 }
  0x9f   :  { %3356 = vmatpush1.bf16.msra.mxu0 %v6135_v30  ;;  %v250_v18 = vld [vmem:[%s10116_s1 + $0x6a8] sm:$0xff]  ;;  %v6207_v30 = vcombine.low %v118_v14, %v122_v15 }
  0xa0   :  { %3357 = vmatprep.subr.bf16.mxu0 %v6128_v32  ;;  %v6336_v24 = vcombine.high %v246_v17, %v250_v18  ;;  %v110_v25 = vld [vmem:[%s10116_s1 + $0x248] sm:$0xff] }
  0xa1   :  { %3397 = vmatpush1.bf16.msra.mxu1 %v6263_v31  ;;  %v114_v54 = vld [vmem:[%s10116_s1 + $0x268] sm:$0xff]  ;;  %v6335_v31 = vcombine.low %v246_v17, %v250_v18 }
  0xa2   :  { %3398 = vmatprep.subr.bf16.mxu1 %v6256_v33  ;;  %v238_v27 = vld [vmem:[%s10116_s1 + $0x648] sm:$0xff]  ;;  %v6200_v32 = vcombine.high %v110_v25, %v114_v54 }
  0xa3   :  { %3358 = vmatpush1.bf16.msra.mxu0 %v6127_v40  ;;  %v242_v28 = vld [vmem:[%s10116_s1 + $0x668] sm:$0xff]  ;;  %v6199_v40 = vcombine.low %v110_v25, %v114_v54 }
  0xa4   :  { %3359 = vmatprep.subr.bf16.mxu0 %v6248_v42  ;;  %v6328_v33 = vcombine.high %v238_v27, %v242_v28  ;;  %v102_v34 = vld [vmem:[%s10116_s1 + $0x208] sm:$0xff] }
  0xa5   :  { %3399 = vmatpush1.bf16.msra.mxu1 %v6255_v41  ;;  %v106_v35 = vld [vmem:[%s10116_s1 + $0x228] sm:$0xff]  ;;  %v6327_v41 = vcombine.low %v238_v27, %v242_v28 }
  0xa6   :  { %3400 = vmatprep.subr.bf16.mxu1 %v6376_v19  ;;  %v230_v37 = vld [vmem:[%s10116_s1 + $0x608] sm:$0xff]  ;;  %v6192_v42 = vcombine.high %v102_v34, %v106_v35 }
  0xa7   :  { %3360 = vmatpush2.bf16.msra.mxu0 %v6247_v46  ;;  %v234_v38 = vld [vmem:[%s10116_s1 + $0x628] sm:$0xff]  ;;  %v6191_v46 = vcombine.low %v102_v34, %v106_v35 }
  0xa8   :  { %3361 = vmatprep.subr.bf16.mxu0 %v6240_v48  ;;  %v6320_v19 = vcombine.high %v230_v37, %v234_v38  ;;  %v350_v43 = vld [vmem:[%s10116_s1 + $0x9c8] sm:$0xff] }
  0xa9   :  { %3401 = vmatpush2.bf16.msra.mxu1 %v6375_v47  ;;  %v354_v44 = vld [vmem:[%s10116_s1 + $0x9e8] sm:$0xff]  ;;  %v6319_v47 = vcombine.low %v230_v37, %v234_v38 }
  0xaa   :  { %3402 = vmatprep.subr.bf16.mxu1 %v6368_v49  ;;  %v478_v21 = vld [vmem:[%s10116_s1 + $0xdc8] sm:$0xff]  ;;  %v6440_v48 = vcombine.high %v350_v43, %v354_v44 }
  0xab   :  { %3362 = vmatpush2.bf16.msra.mxu0 %v6239_v56  ;;  %v482_v45 = vld [vmem:[%s10116_s1 + $0xde8] sm:$0xff]  ;;  %v6439_v56 = vcombine.low %v350_v43, %v354_v44 }
  0xac   :  { %3363 = vmatprep.subr.bf16.mxu0 %v6232_v60  ;;  %v6568_v49 = vcombine.high %v478_v21, %v482_v45  ;;  %v342_v50 = vld [vmem:[%s10116_s1 + $0x988] sm:$0xff] }
  0xad   :  { %3403 = vmatpush2.bf16.msra.mxu1 %v6367_v57  ;;  %v346_v51 = vld [vmem:[%s10116_s1 + $0x9a8] sm:$0xff]  ;;  %v6567_v57 = vcombine.low %v478_v21, %v482_v45 }
  0xae   :  { %3404 = vmatprep.subr.bf16.mxu1 %v6360_v61  ;;  %v470_v52 = vld [vmem:[%s10116_s1 + $0xd88] sm:$0xff]  ;;  %v6432_v60 = vcombine.high %v342_v50, %v346_v51 }
  0xaf   :  { %3364 = vmatpush2.bf16.msra.mxu0 %v6231_v2  ;;  %v474_v55 = vld [vmem:[%s10116_s1 + $0xda8] sm:$0xff]  ;;  %v6431_v2 = vcombine.low %v342_v50, %v346_v51 }
  0xb0   :  { %3365 = vmatprep.subr.bf16.mxu0 %v6224_v4  ;;  %v6560_v61 = vcombine.high %v470_v52, %v474_v55  ;;  %v334_v62 = vld [vmem:[%s10116_s1 + $0x948] sm:$0xff] }
  0xb1   :  { %3405 = vmatpush2.bf16.msra.mxu1 %v6359_v3  ;;  %v338_v63 = vld [vmem:[%s10116_s1 + $0x968] sm:$0xff]  ;;  %v6559_v3 = vcombine.low %v470_v52, %v474_v55 }
  0xb2   :  { %3406 = vmatprep.subr.bf16.mxu1 %v6352_v5  ;;  %v462_v0 = vld [vmem:[%s10116_s1 + $0xd48] sm:$0xff]  ;;  %v6424_v4 = vcombine.high %v334_v62, %v338_v63 }
  0xb3   :  { %3366 = vmatpush2.bf16.msra.mxu0 %v6223_v10  ;;  %v466_v1 = vld [vmem:[%s10116_s1 + $0xd68] sm:$0xff]  ;;  %v6423_v10 = vcombine.low %v334_v62, %v338_v63 }
  0xb4   :  { %3367 = vmatprep.subr.bf16.mxu0 %v6216_v12  ;;  %v6552_v5 = vcombine.high %v462_v0, %v466_v1  ;;  %v326_v6 = vld [vmem:[%s10116_s1 + $0x908] sm:$0xff] }
  0xb5   :  { %3407 = vmatpush2.bf16.msra.mxu1 %v6351_v11  ;;  %v330_v7 = vld [vmem:[%s10116_s1 + $0x928] sm:$0xff]  ;;  %v6551_v11 = vcombine.low %v462_v0, %v466_v1 }
  0xb6   :  { %3408 = vmatprep.subr.bf16.mxu1 %v6344_v13  ;;  %v454_v8 = vld [vmem:[%s10116_s1 + $0xd08] sm:$0xff]  ;;  %v6416_v12 = vcombine.high %v326_v6, %v330_v7 }
  0xb7   :  { %3368 = vmatpush2.bf16.msra.mxu0 %v6215_v53  ;;  %v458_v9 = vld [vmem:[%s10116_s1 + $0xd28] sm:$0xff]  ;;  %v6415_v53 = vcombine.low %v326_v6, %v330_v7 }
  0xb8   :  { %3369 = vmatprep.subr.bf16.mxu0 %v6208_v23  ;;  %v6544_v13 = vcombine.high %v454_v8, %v458_v9  ;;  %v318_v14 = vld [vmem:[%s10116_s1 + $0x8c8] sm:$0xff] }
  0xb9   :  { %3409 = vmatpush2.bf16.msra.mxu1 %v6343_v22  ;;  %v322_v15 = vld [vmem:[%s10116_s1 + $0x8e8] sm:$0xff]  ;;  %v6543_v22 = vcombine.low %v454_v8, %v458_v9 }
  0xba   :  { %3410 = vmatprep.subr.bf16.mxu1 %v6336_v24  ;;  %v446_v17 = vld [vmem:[%s10116_s1 + $0xcc8] sm:$0xff]  ;;  %v6408_v23 = vcombine.high %v318_v14, %v322_v15 }
  0xbb   :  { %3370 = vmatpush2.bf16.msra.mxu0 %v6207_v30  ;;  %v450_v18 = vld [vmem:[%s10116_s1 + $0xce8] sm:$0xff]  ;;  %v6407_v30 = vcombine.low %v318_v14, %v322_v15 }
  0xbc   :  { %3371 = vmatprep.subr.bf16.mxu0 %v6200_v32  ;;  %v6536_v24 = vcombine.high %v446_v17, %v450_v18  ;;  %v310_v25 = vld [vmem:[%s10116_s1 + $0x888] sm:$0xff] }
  0xbd   :  { %3411 = vmatpush2.bf16.msra.mxu1 %v6335_v31  ;;  %v314_v54 = vld [vmem:[%s10116_s1 + $0x8a8] sm:$0xff]  ;;  %v6535_v31 = vcombine.low %v446_v17, %v450_v18 }
  0xbe   :  { %3412 = vmatprep.subr.bf16.mxu1 %v6328_v33  ;;  %v438_v27 = vld [vmem:[%s10116_s1 + $0xc88] sm:$0xff]  ;;  %v6400_v32 = vcombine.high %v310_v25, %v314_v54 }
  0xbf   :  { %3372 = vmatpush2.bf16.msra.mxu0 %v6199_v40  ;;  %v442_v28 = vld [vmem:[%s10116_s1 + $0xca8] sm:$0xff]  ;;  %v6399_v40 = vcombine.low %v310_v25, %v314_v54 }
  0xc0   :  { %3373 = vmatprep.subr.bf16.mxu0 %v6192_v42  ;;  %v6528_v33 = vcombine.high %v438_v27, %v442_v28  ;;  %v302_v34 = vld [vmem:[%s10116_s1 + $0x848] sm:$0xff] }
  0xc1   :  { %3413 = vmatpush2.bf16.msra.mxu1 %v6327_v41  ;;  %v306_v35 = vld [vmem:[%s10116_s1 + $0x868] sm:$0xff]  ;;  %v6527_v41 = vcombine.low %v438_v27, %v442_v28 }
  0xc2   :  { %3414 = vmatprep.subr.bf16.mxu1 %v6320_v19  ;;  %v430_v37 = vld [vmem:[%s10116_s1 + $0xc48] sm:$0xff]  ;;  %v6392_v42 = vcombine.high %v302_v34, %v306_v35 }
  0xc3   :  { %3374 = vmatpush2.bf16.msra.mxu0 %v6191_v46  ;;  %v434_v38 = vld [vmem:[%s10116_s1 + $0xc68] sm:$0xff]  ;;  %v6391_v46 = vcombine.low %v302_v34, %v306_v35 }
  0xc4   :  { %3425 = vmatprep.subr.bf16.mxu0 %v6440_v48  ;;  %v6520_v19 = vcombine.high %v430_v37, %v434_v38  ;;  %v294_v43 = vld [vmem:[%s10116_s1 + $0x808] sm:$0xff] }
  0xc5   :  { %3415 = vmatpush2.bf16.msra.mxu1 %v6319_v47  ;;  %v298_v44 = vld [vmem:[%s10116_s1 + $0x828] sm:$0xff]  ;;  %v6519_v47 = vcombine.low %v430_v37, %v434_v38 }
  0xc6   :  { %3466 = vmatprep.subr.bf16.mxu1 %v6568_v49  ;;  %3376 = vmatmul.mubr.bf16.vlgmr.msra.gmra.mxu0 %v7677_v16  ;;  %v422_v21 = vld [vmem:[%s10116_s1 + $0xc08] sm:$0xff]  ;;  %v6384_v48 = vcombine.high %v294_v43, %v298_v44 }
  0xc7   :  { %3426 = vmatpush1.bf16.msra.mxu0 %v6439_v56  ;;  %3457 = vmatprep.mubr.bf16.mxu0 %v7707_v26  ;;  %v426_v45 = vld [vmem:[%s10116_s1 + $0xc28] sm:$0xff]  ;;  %v6383_v56 = vcombine.low %v294_v43, %v298_v44 }
  0xc8   :  { %3417 = vmatmul.mubr.bf16.vlgmr.msra.gmra.mxu1 %v7692_v20  ;;  %3427 = vmatprep.subr.bf16.mxu0 %v6432_v60  ;;  %v6512_v49 = vcombine.high %v422_v21, %v426_v45  ;;  %v414_v50 = vld [vmem:[%s10116_s1 + $0xbc8] sm:$0xff] }
  0xc9   :  { %3467 = vmatpush1.bf16.msra.mxu1 %v6567_v57  ;;  %3498 = vmatprep.mubr.bf16.mxu1 %v7718_v29  ;;  %v418_v51 = vld [vmem:[%s10116_s1 + $0xbe8] sm:$0xff]  ;;  %v6511_v57 = vcombine.low %v422_v21, %v426_v45 }
  0xca   :  { %3468 = vmatprep.subr.bf16.mxu1 %v6560_v61  ;;  %v542_v52 = vld [vmem:[%s10116_s1 + $0xfc8] sm:$0xff]  ;;  %v6504_v60 = vcombine.high %v414_v50, %v418_v51 }
  0xcb   :  { %3428 = vmatpush1.bf16.msra.mxu0 %v6431_v2  ;;  %v546_v55 = vld [vmem:[%s10116_s1 + $0xfe8] sm:$0xff]  ;;  %v6503_v2 = vcombine.low %v414_v50, %v418_v51 }
  0xcc   :  { %3429 = vmatprep.subr.bf16.mxu0 %v6424_v4  ;;  %v6632_v61 = vcombine.high %v542_v52, %v546_v55  ;;  %v406_v62 = vld [vmem:[%s10116_s1 + $0xb88] sm:$0xff] }
  0xcd   :  { %3469 = vmatpush1.bf16.msra.mxu1 %v6559_v3  ;;  %v410_v63 = vld [vmem:[%s10116_s1 + $0xba8] sm:$0xff]  ;;  %v6631_v3 = vcombine.low %v542_v52, %v546_v55 }
  0xce   :  { %3470 = vmatprep.subr.bf16.mxu1 %v6552_v5  ;;  %v534_v0 = vld [vmem:[%s10116_s1 + $0xf88] sm:$0xff]  ;;  %v6496_v4 = vcombine.high %v406_v62, %v410_v63 }
  0xcf   :  { %3430 = vmatpush1.bf16.msra.mxu0 %v6423_v10  ;;  %v538_v1 = vld [vmem:[%s10116_s1 + $0xfa8] sm:$0xff]  ;;  %v6495_v10 = vcombine.low %v406_v62, %v410_v63 }
  0xd0   :  { %3431 = vmatprep.subr.bf16.mxu0 %v6416_v12  ;;  %v6624_v5 = vcombine.high %v534_v0, %v538_v1  ;;  %v398_v6 = vld [vmem:[%s10116_s1 + $0xb48] sm:$0xff] }
  0xd1   :  { %3471 = vmatpush1.bf16.msra.mxu1 %v6551_v11  ;;  %v402_v7 = vld [vmem:[%s10116_s1 + $0xb68] sm:$0xff]  ;;  %v6623_v11 = vcombine.low %v534_v0, %v538_v1  ;;  %v95_v0 = vld [vmem:[%s10116_s1 + $0x1d0] sm:$0xff] }
  0xd2   :  { %3472 = vmatprep.subr.bf16.mxu1 %v6544_v13  ;;  %v526_v8 = vld [vmem:[%s10116_s1 + $0xf48] sm:$0xff]  ;;  %v6488_v12 = vcombine.high %v398_v6, %v402_v7  ;;  %v99_v1 = vld [vmem:[%s10116_s1 + $0x1f0] sm:$0xff] }
  0xd3   :  { %3432 = vmatpush1.bf16.msra.mxu0 %v6415_v53  ;;  %v530_v9 = vld [vmem:[%s10116_s1 + $0xf68] sm:$0xff]  ;;  %v6487_v53 = vcombine.low %v398_v6, %v402_v7  ;;  %v8297_v7 = vld [vmem:[%s10118_s2] sm:$0xff] }
  0xd4   :  { %3433 = vmatprep.subr.bf16.mxu0 %v6408_v23  ;;  %v6616_v13 = vcombine.high %v526_v8, %v530_v9  ;;  %v390_v14 = vld [vmem:[%s10116_s1 + $0xb08] sm:$0xff] }
  0xd5   :  { %3473 = vmatpush1.bf16.msra.mxu1 %v6543_v22  ;;  %v394_v15 = vld [vmem:[%s10116_s1 + $0xb28] sm:$0xff]  ;;  %v6615_v22 = vcombine.low %v526_v8, %v530_v9  ;;  %v6186_v8 = vcombine.high %v95_v0, %v99_v1 }
  0xd6   :  { %3474 = vmatprep.subr.bf16.mxu1 %v6536_v24  ;;  %v518_v17 = vld [vmem:[%s10116_s1 + $0xf08] sm:$0xff]  ;;  %v6480_v23 = vcombine.high %v390_v14, %v394_v15 }
  0xd7   :  { %3434 = vmatpush1.bf16.msra.mxu0 %v6407_v30  ;;  %v522_v18 = vld [vmem:[%s10116_s1 + $0xf28] sm:$0xff]  ;;  %v6479_v30 = vcombine.low %v390_v14, %v394_v15  ;;  %v219_v14 = vld [vmem:[%s10116_s1 + $0x5b0] sm:$0xff] }
  0xd8   :  { %3435 = vmatprep.subr.bf16.mxu0 %v6400_v32  ;;  %v6608_v24 = vcombine.high %v518_v17, %v522_v18  ;;  %v382_v25 = vld [vmem:[%s10116_s1 + $0xac8] sm:$0xff] }
  0xd9   :  { %3475 = vmatpush1.bf16.msra.mxu1 %v6535_v31  ;;  %v386_v54 = vld [vmem:[%s10116_s1 + $0xae8] sm:$0xff]  ;;  %v6607_v31 = vcombine.low %v518_v17, %v522_v18  ;;  %v6185_v17 = vcombine.low %v95_v0, %v99_v1 }
  0xda   :  { %3476 = vmatprep.subr.bf16.mxu1 %v6528_v33  ;;  %v510_v27 = vld [vmem:[%s10116_s1 + $0xec8] sm:$0xff]  ;;  %v6472_v32 = vcombine.high %v382_v25, %v386_v54 }
  0xdb   :  { %3436 = vmatpush1.bf16.msra.mxu0 %v6399_v40  ;;  %v514_v28 = vld [vmem:[%s10116_s1 + $0xee8] sm:$0xff]  ;;  %v6471_v40 = vcombine.low %v382_v25, %v386_v54  ;;  %v83_v25 = vld [vmem:[%s10116_s1 + $0x170] sm:$0xff] }
  0xdc   :  { %3437 = vmatprep.subr.bf16.mxu0 %v6392_v42  ;;  %v6600_v33 = vcombine.high %v510_v27, %v514_v28  ;;  %v374_v34 = vld [vmem:[%s10116_s1 + $0xa88] sm:$0xff] }
  0xdd   :  { %3477 = vmatpush1.bf16.msra.mxu1 %v6527_v41  ;;  %v378_v35 = vld [vmem:[%s10116_s1 + $0xaa8] sm:$0xff]  ;;  %v6599_v41 = vcombine.low %v510_v27, %v514_v28  ;;  %v207_v27 = vld [vmem:[%s10116_s1 + $0x550] sm:$0xff] }
  0xde   :  { %3478 = vmatprep.subr.bf16.mxu1 %v6520_v19  ;;  %v502_v37 = vld [vmem:[%s10116_s1 + $0xe88] sm:$0xff]  ;;  %v6464_v42 = vcombine.high %v374_v34, %v378_v35  ;;  %v211_v28 = vld [vmem:[%s10116_s1 + $0x570] sm:$0xff] }
  0xdf   :  { %3438 = vmatpush1.bf16.msra.mxu0 %v6391_v46  ;;  %v506_v38 = vld [vmem:[%s10116_s1 + $0xea8] sm:$0xff]  ;;  %v6463_v46 = vcombine.low %v374_v34, %v378_v35 }
  0xe0   :  { %3439 = vmatprep.subr.bf16.mxu0 %v6384_v48  ;;  %v6592_v19 = vcombine.high %v502_v37, %v506_v38  ;;  %v366_v43 = vld [vmem:[%s10116_s1 + $0xa48] sm:$0xff]  ;;  %v6591_v48 = vcombine.low %v502_v37, %v506_v38 }
  0xe1   :  { %3479 = vmatpush1.bf16.msra.mxu1 %v6519_v47  ;;  %v370_v44 = vld [vmem:[%s10116_s1 + $0xa68] sm:$0xff]  ;;  %v551_v47 = vlaneseq }
  0xe2   :  { %3480 = vmatprep.subr.bf16.mxu1 %v6512_v49  ;;  %v494_v21 = vld [vmem:[%s10116_s1 + $0xe48] sm:$0xff]  ;;  %v6456_v49 = vcombine.high %v366_v43, %v370_v44 }
  0xe3   :  { %3440 = vmatpush1.bf16.msra.mxu0 %v6383_v56  ;;  %v498_v45 = vld [vmem:[%s10116_s1 + $0xe68] sm:$0xff] }
  0xe4   :  { %3441 = vmatprep.subr.bf16.mxu0 %v6504_v60  ;;  %v6584_v50 = vcombine.high %v494_v21, %v498_v45  ;;  %v358_v51 = vld [vmem:[%s10116_s1 + $0xa08] sm:$0xff]  ;;  %v8279_v60 = vshrl.u32 %v551_v47, 7 }
  0xe5   :  { %3481 = vmatpush1.bf16.msra.mxu1 %v6511_v57  ;;  %v362_v52 = vld [vmem:[%s10116_s1 + $0xa28] sm:$0xff]  ;;  %v6455_v57 = vcombine.low %v366_v43, %v370_v44  ;;  %v199_v44 = vld [vmem:[%s10116_s1 + $0x510] sm:$0xff] }
  0xe6   :  { %3482 = vmatprep.subr.bf16.mxu1 %v6632_v61  ;;  %v486_v55 = vld [vmem:[%s10116_s1 + $0xe08] sm:$0xff]  ;;  %v6583_v61 = vcombine.low %v494_v21, %v498_v45  ;;  %v6448_v62 = vcombine.high %v358_v51, %v362_v52  ;;  %v203_v21 = vld [vmem:[%s10116_s1 + $0x530] sm:$0xff] }
  0xe7   :  { %3442 = vmatpush2.bf16.msra.mxu0 %v6503_v2  ;;  %v490_v56 = vld [vmem:[%s10116_s1 + $0xe28] sm:$0xff]  ;;  %v223_v2 = vld [vmem:[%s10116_s1 + $0x5d0] sm:$0xff] }
  0xe8   :  { %3443 = vmatprep.subr.bf16.mxu0 %v6496_v4  ;;  %v6576_v63 = vcombine.high %v486_v55, %v490_v56  ;;  %v6447_v4 = vcombine.low %v358_v51, %v362_v52  ;;  %v6575_v6 = vcombine.low %v486_v55, %v490_v56  ;;  %v6290_v52 = vcombine.high %v199_v44, %v203_v21  ;;  %v63_v55 = vld [vmem:[%s10116_s1 + $0xd0] sm:$0xff] }
  0xe9   :  { %3483 = vmatpush2.bf16.msra.mxu1 %v6631_v3  ;;  %v227_v3 = vld [vmem:[%s10116_s1 + $0x5f0] sm:$0xff] }
  0xea   :  { %3484 = vmatprep.subr.bf16.mxu1 %v6624_v5  ;;  %v553_v5 = vsub.s32 0, %v8279_v60  ;;  %v6314_v9 = vcombine.high %v223_v2, %v227_v3  ;;  %v6313_v18 = vcombine.low %v223_v2, %v227_v3  ;;  %v67_v56 = vld [vmem:[%s10116_s1 + $0xf0] sm:$0xff] }
  0xeb   :  { %3444 = vmatpush2.bf16.msra.mxu0 %v6495_v10  ;;  %v557_v10 = vsub.s32 1, %v8279_v60  ;;  %v6154_v0 = vcombine.high %v63_v55, %v67_v56  ;;  %v55_v2 = vld [vmem:[%s10116_s1 + $0x90] sm:$0xff] }
  0xec   :  { %3445 = vmatprep.subr.bf16.mxu0 %v6488_v12  ;;  %v91_v12 = vld [vmem:[%s10116_s1 + $0x1b0] sm:$0xff]  ;;  %v554_v15 = vrot.slane %v8297_v7, %v553_v5 }
  0xed   :  { %3485 = vmatpush2.bf16.msra.mxu1 %v6623_v11  ;;  %v87_v11 = vld [vmem:[%s10116_s1 + $0x190] sm:$0xff] }
  0xee   :  { %3486 = vmatprep.subr.bf16.mxu1 %v6616_v13  ;;  %v215_v13 = vld [vmem:[%s10116_s1 + $0x590] sm:$0xff] }
  0xef   :  { %3446 = vmatpush2.bf16.msra.mxu0 %v6487_v53  ;;  %v6178_v53 = vcombine.high %v87_v11, %v91_v12  ;;  %v6305_v34 = vcombine.low %v215_v13, %v219_v14  ;;  %v59_v3 = vld [vmem:[%s10116_s1 + $0xb0] sm:$0xff] }
  0xf0   :  { %3447 = vmatprep.subr.bf16.mxu0 %v6480_v23  ;;  %v6306_v23 = vcombine.high %v215_v13, %v219_v14  ;;  %v47_v13 = vld [vmem:[%s10116_s1 + $0x50] sm:$0xff] }
  0xf1   :  { %3487 = vmatpush2.bf16.msra.mxu1 %v6615_v22  ;;  %v558_v22 = vrot.slane %v8297_v7, %v557_v10  ;;  %v51_v14 = vld [vmem:[%s10116_s1 + $0x70] sm:$0xff] }
  0xf2   :  { %3488 = vmatprep.subr.bf16.mxu1 %v6608_v24  ;;  %v79_v24 = vld [vmem:[%s10116_s1 + $0x150] sm:$0xff] }
  0xf3   :  { %3448 = vmatpush2.bf16.msra.mxu0 %v6479_v30  ;;  %v6170_v35 = vcombine.high %v79_v24, %v83_v25  ;;  %v6169_v47 = vcombine.low %v79_v24, %v83_v25  ;;  %v39_v24 = vld [vmem:[%s10116_s1 + $0x10] sm:$0xff] }
  0xf4   :  { %3449 = vmatprep.subr.bf16.mxu0 %v6472_v32  ;;  %v6177_v32 = vcombine.low %v87_v11, %v91_v12  ;;  %v6146_v11 = vcombine.high %v55_v2, %v59_v3  ;;  %v43_v25 = vld [vmem:[%s10116_s1 + $0x30] sm:$0xff] }
  0xf5   :  { %3489 = vmatpush2.bf16.msra.mxu1 %v6607_v31 }
  0xf6   :  { %3490 = vmatprep.subr.bf16.mxu1 %v6600_v33 }
  0xf7   :  { %3450 = vmatpush2.bf16.msra.mxu0 %v6471_v40 }
  0xf8   :  { %3451 = vmatprep.subr.bf16.mxu0 %v6464_v42  ;;  %v71_v42 = vld [vmem:[%s10116_s1 + $0x110] sm:$0xff] }
  0xf9   :  { %3491 = vmatpush2.bf16.msra.mxu1 %v6599_v41  ;;  %v6298_v41 = vcombine.high %v207_v27, %v211_v28 }
  0xfa   :  { %3492 = vmatprep.subr.bf16.mxu1 %v6592_v19  ;;  %v75_v19 = vld [vmem:[%s10116_s1 + $0x130] sm:$0xff] }
  0xfb   :  { %3452 = vmatpush2.bf16.msra.mxu0 %v6463_v46 }
  0xfc   :  { %3453 = vmatprep.subr.bf16.mxu0 %v6456_v49  ;;  %v6297_v49 = vcombine.low %v207_v27, %v211_v28  ;;  %v171_v27 = vld [vmem:[%s10116_s1 + $0x430] sm:$0xff]  ;;  %v6137_v28 = vcombine.low %v47_v13, %v51_v14 }
  0xfd   :  { %3493 = vmatpush2.bf16.msra.mxu1 %v6591_v48 }
  0xfe   :  { %3494 = vmatprep.subr.bf16.mxu1 %v6584_v50  ;;  %v6162_v50 = vcombine.high %v71_v42, %v75_v19 }
  0xff   :  { %3454 = vmatpush2.bf16.msra.mxu0 %v6455_v57  ;;  %v191_v57 = vld [vmem:[%s10116_s1 + $0x4d0] sm:$0xff] }
 0x100   :  { %3455 = vmatprep.subr.bf16.mxu0 %v6448_v62  ;;  %v6161_v62 = vcombine.low %v71_v42, %v75_v19 }
 0x101   :  { %3495 = vmatpush2.bf16.msra.mxu1 %v6583_v61  ;;  %v195_v61 = vld [vmem:[%s10116_s1 + $0x4f0] sm:$0xff] }
 0x102   :  { %3496 = vmatprep.subr.bf16.mxu1 %v6576_v63  ;;  %v6289_v63 = vcombine.low %v199_v44, %v203_v21  ;;  %v6282_v1 = vcombine.high %v191_v57, %v195_v61  ;;  %v155_v44 = vld [vmem:[%s10116_s1 + $0x3b0] sm:$0xff] }
 0x103   :  { %3456 = vmatpush2.bf16.msra.mxu0 %v6447_v4  ;;  %v183_v4 = vld [vmem:[%s10116_s1 + $0x490] sm:$0xff] }
 0x104   :  { %3507 = vmatprep.subr.bf16.mxu0 %v6186_v8  ;;  %v6153_v8 = vcombine.low %v63_v55, %v67_v56  ;;  %v279_v21 = vld [vmem:[%s10116_s1 + $0x790] sm:$0xff] }
 0x105   :  { %3497 = vmatpush2.bf16.msra.mxu1 %v6575_v6  ;;  %v187_v6 = vld [vmem:[%s10116_s1 + $0x4b0] sm:$0xff] }
 0x106   :  { %3548 = vmatprep.subr.bf16.mxu1 %v6314_v9  ;;  %v3213_v54 = vpop.f32.mrf.mxu0  ;;  %3458 = vmatmul.mubr.bf16.vlgmr.msra.gmra.mxu0 %v7899_v36  ;;  %v6281_v9 = vcombine.low %v191_v57, %v195_v61  ;;  %v6274_v12 = vcombine.high %v183_v4, %v187_v6  ;;  %v271_v55 = vld [vmem:[%s10116_s1 + $0x750] sm:$0xff] }
 0x107   :  { %v3214_v30 = vadd.f32 %v3213_v54, %v554_v15  ;;  %3508 = vmatpush1.bf16.msra.mxu0 %v6185_v17  ;;  %3539 = vmatprep.mubr.bf16.mxu0 %v7547_v58  ;;  %v175_v15 = vld [vmem:[%s10116_s1 + $0x450] sm:$0xff] }
 0x108   :  { %v3254_v31 = vpop.f32.mrf.mxu1  ;;  %3499 = vmatmul.mubr.bf16.vlgmr.msra.gmra.mxu1 %v7909_v39  ;;  %v3215_v33 = vpop.f32.mrf.mxu0  ;;  %3509 = vmatprep.subr.bf16.mxu0 %v6178_v53  ;;  %v179_v17 = vld [vmem:[%s10116_s1 + $0x470] sm:$0xff]  ;;  %v6273_v53 = vcombine.low %v183_v4, %v187_v6 }
 0x109   :  { %3549 = vmatpush1.bf16.msra.mxu1 %v6313_v18  ;;  %v8332_v37 = vadd.f32 %v3254_v31, %v3214_v30  ;;  %v3216_v38 = vadd.f32 %v3215_v33, %v558_v22  ;;  %3580 = vmatprep.mubr.bf16.mxu1 %v7551_v59  ;;  %v6145_v18 = vcombine.low %v55_v2, %v59_v3  ;;  %v167_v54 = vld [vmem:[%s10116_s1 + $0x410] sm:$0xff] }
 0x10a   :  { %v3256_v40 = vpop.f32.mrf.mxu1  ;;  %3550 = vmatprep.subr.bf16.mxu1 %v6306_v23  ;;  %v3217_v43 = vpop.f32.mrf.mxu0  ;;  %v6138_v22 = vcombine.high %v47_v13, %v51_v14  ;;  %v6266_v23 = vcombine.high %v175_v15, %v179_v17  ;;  %v6265_v30 = vcombine.low %v175_v15, %v179_v17  ;;  %v6130_v31 = vcombine.high %v39_v24, %v43_v25  ;;  %v159_v33 = vld [vmem:[%s10116_s1 + $0x3d0] sm:$0xff] }
 0x10b   :  { %v8348_v45 = vadd.f32 %v3256_v40, %v3216_v38  ;;  %3510 = vmatpush1.bf16.msra.mxu0 %v6177_v32  ;;  %v6258_v32 = vcombine.high %v167_v54, %v171_v27  ;;  %v291_v38 = vld [vmem:[%s10116_s1 + $0x7f0] sm:$0xff]  ;;  %v6129_v40 = vcombine.low %v39_v24, %v43_v25 }
 0x10c   :  { %v3258_v46 = vpop.f32.mrf.mxu1  ;;  %v3218_v48 = vpop.f32.mrf.mxu0  ;;  %3511 = vmatprep.subr.bf16.mxu0 %v6170_v35  ;;  %v287_v35 = vld [vmem:[%s10116_s1 + $0x7d0] sm:$0xff] }
 0x10d   :  { %3551 = vmatpush1.bf16.msra.mxu1 %v6305_v34  ;;  %v163_v34 = vld [vmem:[%s10116_s1 + $0x3f0] sm:$0xff]  ;;  %v6378_v19 = vcombine.high %v287_v35, %v291_v38  ;;  %v6377_v48 = vcombine.low %v287_v35, %v291_v38 }
 0x10e   :  { %v3259_v51 = vpop.f32.mrf.mxu1  ;;  %3552 = vmatprep.subr.bf16.mxu1 %v6298_v41  ;;  %v6257_v41 = vcombine.low %v167_v54, %v171_v27  ;;  %v6250_v42 = vcombine.high %v159_v33, %v163_v34  ;;  %v151_v43 = vld [vmem:[%s10116_s1 + $0x390] sm:$0xff] }
 0x10f   :  { %3512 = vmatpush1.bf16.msra.mxu0 %v6169_v47  ;;  %v283_v46 = vld [vmem:[%s10116_s1 + $0x7b0] sm:$0xff]  ;;  %v6249_v47 = vcombine.low %v159_v33, %v163_v34  ;;  %v6241_v57 = vcombine.low %v151_v43, %v155_v44 }
 0x110   :  { %3513 = vmatprep.subr.bf16.mxu0 %v6162_v50  ;;  %v6370_v50 = vcombine.high %v279_v21, %v283_v46  ;;  %v143_v51 = vld [vmem:[%s10116_s1 + $0x350] sm:$0xff]  ;;  %v6369_v61 = vcombine.low %v279_v21, %v283_v46 }
 0x111   :  { %3553 = vmatpush1.bf16.msra.mxu1 %v6297_v49  ;;  %v6242_v49 = vcombine.high %v151_v43, %v155_v44  ;;  %v275_v56 = vld [vmem:[%s10116_s1 + $0x770] sm:$0xff] }
 0x112   :  { %3554 = vmatprep.subr.bf16.mxu1 %v6290_v52  ;;  %v147_v52 = vld [vmem:[%s10116_s1 + $0x370] sm:$0xff]  ;;  %v6361_v6 = vcombine.low %v271_v55, %v275_v56 }
 0x113   :  { %3514 = vmatpush1.bf16.msra.mxu0 %v6161_v62  ;;  %v6234_v62 = vcombine.high %v143_v51, %v147_v52  ;;  %v263_v2 = vld [vmem:[%s10116_s1 + $0x710] sm:$0xff]  ;;  %v6233_v4 = vcombine.low %v143_v51, %v147_v52 }
 0x114   :  { %3515 = vmatprep.subr.bf16.mxu0 %v6154_v0  ;;  %v135_v0 = vld [vmem:[%s10116_s1 + $0x310] sm:$0xff] }
 0x115   :  { %3555 = vmatpush1.bf16.msra.mxu1 %v6289_v63  ;;  %v6362_v63 = vcombine.high %v271_v55, %v275_v56  ;;  %v267_v3 = vld [vmem:[%s10116_s1 + $0x730] sm:$0xff] }
 0x116   :  { %3556 = vmatprep.subr.bf16.mxu1 %v6282_v1  ;;  %v139_v1 = vld [vmem:[%s10116_s1 + $0x330] sm:$0xff]  ;;  %v6353_v17 = vcombine.low %v263_v2, %v267_v3 }
 0x117   :  { %3516 = vmatpush1.bf16.msra.mxu0 %v6153_v8  ;;  %v6226_v8 = vcombine.high %v135_v0, %v139_v1  ;;  %v255_v13 = vld [vmem:[%s10116_s1 + $0x6d0] sm:$0xff]  ;;  %v6225_v15 = vcombine.low %v135_v0, %v139_v1 }
 0x118   :  { %3517 = vmatprep.subr.bf16.mxu0 %v6146_v11  ;;  %v127_v11 = vld [vmem:[%s10116_s1 + $0x2d0] sm:$0xff] }
 0x119   :  { %3557 = vmatpush1.bf16.msra.mxu1 %v6281_v9  ;;  %v6354_v9 = vcombine.high %v263_v2, %v267_v3  ;;  %v259_v14 = vld [vmem:[%s10116_s1 + $0x6f0] sm:$0xff] }
 0x11a   :  { %3558 = vmatprep.subr.bf16.mxu1 %v6274_v12  ;;  %v131_v12 = vld [vmem:[%s10116_s1 + $0x2f0] sm:$0xff]  ;;  %v6345_v27 = vcombine.low %v255_v13, %v259_v14 }
 0x11b   :  { %3518 = vmatpush1.bf16.msra.mxu0 %v6145_v18  ;;  %v6218_v18 = vcombine.high %v127_v11, %v131_v12  ;;  %v247_v24 = vld [vmem:[%s10116_s1 + $0x690] sm:$0xff]  ;;  %v6217_v54 = vcombine.low %v127_v11, %v131_v12 }
 0x11c   :  { %3519 = vmatprep.subr.bf16.mxu0 %v6138_v22  ;;  %v119_v22 = vld [vmem:[%s10116_s1 + $0x290] sm:$0xff] }
 0x11d   :  { %3559 = vmatpush1.bf16.msra.mxu1 %v6273_v53  ;;  %v6346_v53 = vcombine.high %v255_v13, %v259_v14  ;;  %v251_v25 = vld [vmem:[%s10116_s1 + $0x6b0] sm:$0xff] }
 0x11e   :  { %3560 = vmatprep.subr.bf16.mxu1 %v6266_v23  ;;  %v123_v23 = vld [vmem:[%s10116_s1 + $0x2b0] sm:$0xff]  ;;  %v6337_v38 = vcombine.low %v247_v24, %v251_v25 }
 0x11f   :  { %3520 = vmatpush1.bf16.msra.mxu0 %v6137_v28  ;;  %v6210_v28 = vcombine.high %v119_v22, %v123_v23  ;;  %v239_v33 = vld [vmem:[%s10116_s1 + $0x650] sm:$0xff]  ;;  %v6209_v35 = vcombine.low %v119_v22, %v123_v23 }
 0x120   :  { %3521 = vmatprep.subr.bf16.mxu0 %v6130_v31  ;;  %v111_v31 = vld [vmem:[%s10116_s1 + $0x250] sm:$0xff] }
 0x121   :  { %3561 = vmatpush1.bf16.msra.mxu1 %v6265_v30  ;;  %v6338_v30 = vcombine.high %v247_v24, %v251_v25  ;;  %v243_v34 = vld [vmem:[%s10116_s1 + $0x670] sm:$0xff] }
 0x122   :  { %3562 = vmatprep.subr.bf16.mxu1 %v6258_v32  ;;  %v115_v32 = vld [vmem:[%s10116_s1 + $0x270] sm:$0xff]  ;;  %v6329_v46 = vcombine.low %v239_v33, %v243_v34 }
 0x123   :  { %3522 = vmatpush1.bf16.msra.mxu0 %v6129_v40  ;;  %v6202_v40 = vcombine.high %v111_v31, %v115_v32  ;;  %v231_v43 = vld [vmem:[%s10116_s1 + $0x610] sm:$0xff]  ;;  %v6201_v21 = vcombine.low %v111_v31, %v115_v32 }
 0x124   :  { %3523 = vmatprep.subr.bf16.mxu0 %v6250_v42  ;;  %v103_v42 = vld [vmem:[%s10116_s1 + $0x210] sm:$0xff] }
 0x125   :  { %3563 = vmatpush1.bf16.msra.mxu1 %v6257_v41  ;;  %v6330_v41 = vcombine.high %v239_v33, %v243_v34  ;;  %v235_v44 = vld [vmem:[%s10116_s1 + $0x630] sm:$0xff] }
 0x126   :  { %3564 = vmatprep.subr.bf16.mxu1 %v6378_v19  ;;  %v107_v19 = vld [vmem:[%s10116_s1 + $0x230] sm:$0xff]  ;;  %v6321_v56 = vcombine.low %v231_v43, %v235_v44 }
 0x127   :  { %3524 = vmatpush2.bf16.msra.mxu0 %v6249_v47  ;;  %v6194_v47 = vcombine.high %v103_v42, %v107_v19  ;;  %v479_v51 = vld [vmem:[%s10116_s1 + $0xdd0] sm:$0xff]  ;;  %v6193_v55 = vcombine.low %v103_v42, %v107_v19 }
 0x128   :  { %3525 = vmatprep.subr.bf16.mxu0 %v6242_v49  ;;  %v351_v49 = vld [vmem:[%s10116_s1 + $0x9d0] sm:$0xff] }
 0x129   :  { %3565 = vmatpush2.bf16.msra.mxu1 %v6377_v48  ;;  %v6322_v48 = vcombine.high %v231_v43, %v235_v44  ;;  %v483_v52 = vld [vmem:[%s10116_s1 + $0xdf0] sm:$0xff] }
 0x12a   :  { %3566 = vmatprep.subr.bf16.mxu1 %v6370_v50  ;;  %v355_v50 = vld [vmem:[%s10116_s1 + $0x9f0] sm:$0xff]  ;;  %v6569_v3 = vcombine.low %v479_v51, %v483_v52 }
 0x12b   :  { %3526 = vmatpush2.bf16.msra.mxu0 %v6241_v57  ;;  %v6442_v57 = vcombine.high %v351_v49, %v355_v50  ;;  %v471_v0 = vld [vmem:[%s10116_s1 + $0xd90] sm:$0xff]  ;;  %v6441_v2 = vcombine.low %v351_v49, %v355_v50 }
 0x12c   :  { %3527 = vmatprep.subr.bf16.mxu0 %v6234_v62  ;;  %v343_v62 = vld [vmem:[%s10116_s1 + $0x990] sm:$0xff] }
 0x12d   :  { %3567 = vmatpush2.bf16.msra.mxu1 %v6369_v61  ;;  %v6570_v61 = vcombine.high %v479_v51, %v483_v52  ;;  %v475_v1 = vld [vmem:[%s10116_s1 + $0xdb0] sm:$0xff] }
 0x12e   :  { %3568 = vmatprep.subr.bf16.mxu1 %v6362_v63  ;;  %v347_v63 = vld [vmem:[%s10116_s1 + $0x9b0] sm:$0xff] }
 0x12f   :  { %3528 = vmatpush2.bf16.msra.mxu0 %v6233_v4  ;;  %v6434_v4 = vcombine.high %v343_v62, %v347_v63  ;;  %v463_v12 = vld [vmem:[%s10116_s1 + $0xd50] sm:$0xff] }
 0x130   :  { %3529 = vmatprep.subr.bf16.mxu0 %v6226_v8  ;;  %v335_v8 = vld [vmem:[%s10116_s1 + $0x950] sm:$0xff] }
 0x131   :  { %3569 = vmatpush2.bf16.msra.mxu1 %v6361_v6  ;;  %v6562_v6 = vcombine.high %v471_v0, %v475_v1  ;;  %v467_v13 = vld [vmem:[%s10116_s1 + $0xd70] sm:$0xff] }
 0x132   :  { %3570 = vmatprep.subr.bf16.mxu1 %v6354_v9  ;;  %v339_v9 = vld [vmem:[%s10116_s1 + $0x970] sm:$0xff] }
 0x133   :  { %3530 = vmatpush2.bf16.msra.mxu0 %v6225_v15  ;;  %v6426_v22 = vcombine.high %v335_v8, %v339_v9  ;;  %v6425_v33 = vcombine.low %v335_v8, %v339_v9  ;;  %v319_v42 = vld [vmem:[%s10116_s1 + $0x8d0] sm:$0xff] }
 0x134   :  { %3531 = vmatprep.subr.bf16.mxu0 %v6218_v18  ;;  %v323_v19 = vld [vmem:[%s10116_s1 + $0x8f0] sm:$0xff] }
 0x135   :  { %3571 = vmatpush2.bf16.msra.mxu1 %v6353_v17  ;;  %v6433_v17 = vcombine.low %v343_v62, %v347_v63  ;;  %v447_v43 = vld [vmem:[%s10116_s1 + $0xcd0] sm:$0xff] }
 0x136   :  { %3572 = vmatprep.subr.bf16.mxu1 %v6346_v53  ;;  %v6561_v53 = vcombine.low %v471_v0, %v475_v1  ;;  %v451_v44 = vld [vmem:[%s10116_s1 + $0xcf0] sm:$0xff] }
 0x137   :  { %3532 = vmatpush2.bf16.msra.mxu0 %v6217_v54  ;;  %v6554_v54 = vcombine.high %v463_v12, %v467_v13  ;;  %v311_v49 = vld [vmem:[%s10116_s1 + $0x890] sm:$0xff] }
 0x138   :  { %3533 = vmatprep.subr.bf16.mxu0 %v6210_v28  ;;  %v315_v50 = vld [vmem:[%s10116_s1 + $0x8b0] sm:$0xff] }
 0x139   :  { %3573 = vmatpush2.bf16.msra.mxu1 %v6345_v27  ;;  %v331_v27 = vld [vmem:[%s10116_s1 + $0x930] sm:$0xff] }
 0x13a   :  { %3574 = vmatprep.subr.bf16.mxu1 %v6338_v30  ;;  %v455_v30 = vld [vmem:[%s10116_s1 + $0xd10] sm:$0xff] }
 0x13b   :  { %3534 = vmatpush2.bf16.msra.mxu0 %v6209_v35  ;;  %v6553_v35 = vcombine.low %v463_v12, %v467_v13  ;;  %v439_v51 = vld [vmem:[%s10116_s1 + $0xc90] sm:$0xff] }
 0x13c   :  { %3535 = vmatprep.subr.bf16.mxu0 %v6202_v40  ;;  %v443_v52 = vld [vmem:[%s10116_s1 + $0xcb0] sm:$0xff] }
 0x13d   :  { %3575 = vmatpush2.bf16.msra.mxu1 %v6337_v38  ;;  %v303_v62 = vld [vmem:[%s10116_s1 + $0x850] sm:$0xff] }
 0x13e   :  { %3576 = vmatprep.subr.bf16.mxu1 %v6330_v41  ;;  %v307_v63 = vld [vmem:[%s10116_s1 + $0x870] sm:$0xff] }
 0x13f   :  { %3536 = vmatpush2.bf16.msra.mxu0 %v6201_v21  ;;  %v431_v0 = vld [vmem:[%s10116_s1 + $0xc50] sm:$0xff]  ;;  %v6393_v13 = vcombine.low %v303_v62, %v307_v63 }
 0x140   :  { %3537 = vmatprep.subr.bf16.mxu0 %v6194_v47  ;;  %v6410_v47 = vcombine.high %v319_v42, %v323_v19  ;;  %v435_v1 = vld [vmem:[%s10116_s1 + $0xc70] sm:$0xff] }
 0x141   :  { %3577 = vmatpush2.bf16.msra.mxu1 %v6329_v46  ;;  %v295_v8 = vld [vmem:[%s10116_s1 + $0x810] sm:$0xff] }
 0x142   :  { %3578 = vmatprep.subr.bf16.mxu1 %v6322_v48  ;;  %v6538_v48 = vcombine.high %v447_v43, %v451_v44  ;;  %v299_v9 = vld [vmem:[%s10116_s1 + $0x830] sm:$0xff] }
 0x143   :  { %3538 = vmatpush2.bf16.msra.mxu0 %v6193_v55  ;;  %v6409_v55 = vcombine.low %v319_v42, %v323_v19  ;;  %v427_v12 = vld [vmem:[%s10116_s1 + $0xc30] sm:$0xff] }
 0x144   :  { %3589 = vmatprep.subr.bf16.mxu0 %v6442_v57  ;;  %v6402_v57 = vcombine.high %v311_v49, %v315_v50  ;;  %v527_v42 = vld [vmem:[%s10116_s1 + $0xf50] sm:$0xff] }
 0x145   :  { %3579 = vmatpush2.bf16.msra.mxu1 %v6321_v56  ;;  %v6537_v56 = vcombine.low %v447_v43, %v451_v44  ;;  %v531_v19 = vld [vmem:[%s10116_s1 + $0xf70] sm:$0xff] }
 0x146   :  { %3630 = vmatprep.subr.bf16.mxu1 %v6570_v61  ;;  %v3295_v11 = vpop.f32.mrf.mxu0  ;;  %3540 = vmatmul.mubr.bf16.vlgmr.msra.gmra.mxu0 %v7677_v16  ;;  %v6530_v61 = vcombine.high %v439_v51, %v443_v52 }
 0x147   :  { %v3296_v14 = vadd.f32 %v3295_v11, %v8332_v37  ;;  %3590 = vmatpush1.bf16.msra.mxu0 %v6441_v2  ;;  %v327_v37 = vld [vmem:[%s10116_s1 + $0x910] sm:$0xff]  ;;  %3621 = vmatprep.mubr.bf16.mxu0 %v7707_v26  ;;  %v6401_v2 = vcombine.low %v311_v49, %v315_v50 }
 0x148   :  { %v3336_v15 = vpop.f32.mrf.mxu1  ;;  %3581 = vmatmul.mubr.bf16.vlgmr.msra.gmra.mxu1 %v7692_v20  ;;  %v3297_v18 = vpop.f32.mrf.mxu0  ;;  %3591 = vmatprep.subr.bf16.mxu0 %v6434_v4  ;;  %v6418_v38 = vcombine.high %v327_v37, %v331_v27  ;;  %v6417_v21 = vcombine.low %v327_v37, %v331_v27  ;;  %v6394_v4 = vcombine.high %v303_v62, %v307_v63  ;;  %v423_v11 = vld [vmem:[%s10116_s1 + $0xc10] sm:$0xff] }
 0x149   :  { %3631 = vmatpush1.bf16.msra.mxu1 %v6569_v3  ;;  %v8533_v23 = vadd.f32 %v3336_v15, %v3296_v14  ;;  %v3298_v24 = vadd.f32 %v3297_v18, %v8348_v45  ;;  %v459_v45 = vld [vmem:[%s10116_s1 + $0xd30] sm:$0xff]  ;;  %3662 = vmatprep.mubr.bf16.mxu1 %v7718_v29  ;;  %v6529_v3 = vcombine.low %v439_v51, %v443_v52 }
 0x14a   :  { %v3338_v25 = vpop.f32.mrf.mxu1  ;;  %3632 = vmatprep.subr.bf16.mxu1 %v6562_v6  ;;  %v3299_v28 = vpop.f32.mrf.mxu0  ;;  %v6546_v41 = vcombine.high %v455_v30, %v459_v45  ;;  %v6545_v46 = vcombine.low %v455_v30, %v459_v45  ;;  %v6522_v6 = vcombine.high %v431_v0, %v435_v1  ;;  %v6521_v14 = vcombine.low %v431_v0, %v435_v1  ;;  %v415_v18 = vld [vmem:[%s10116_s1 + $0xbd0] sm:$0xff] }
 0x14b   :  { %v8550_v31 = vadd.f32 %v3338_v25, %v3298_v24  ;;  %3592 = vmatpush1.bf16.msra.mxu0 %v6433_v17  ;;  %v6386_v15 = vcombine.high %v295_v8, %v299_v9  ;;  %v6514_v17 = vcombine.high %v423_v11, %v427_v12  ;;  %v547_v24 = vld [vmem:[%s10116_s1 + $0xff0] sm:$0xff]  ;;  %v6385_v25 = vcombine.low %v295_v8, %v299_v9 }
 0x14c   :  { %v3340_v32 = vpop.f32.mrf.mxu1  ;;  %v3300_v34 = vpop.f32.mrf.mxu0  ;;  %3593 = vmatprep.subr.bf16.mxu0 %v6426_v22  ;;  %v543_v22 = vld [vmem:[%s10116_s1 + $0xfd0] sm:$0xff]  ;;  %v6617_v52 = vcombine.low %v527_v42, %v531_v19 }
 0x14d   :  { %3633 = vmatpush1.bf16.msra.mxu1 %v6561_v53  ;;  %v419_v53 = vld [vmem:[%s10116_s1 + $0xbf0] sm:$0xff]  ;;  %v6634_v27 = vcombine.high %v543_v22, %v547_v24  ;;  %v6633_v34 = vcombine.low %v543_v22, %v547_v24 }
 0x14e   :  { %v3341_v40 = vpop.f32.mrf.mxu1  ;;  %3634 = vmatprep.subr.bf16.mxu1 %v6554_v54  ;;  %v6513_v54 = vcombine.low %v423_v11, %v427_v12  ;;  %v6506_v37 = vcombine.high %v415_v18, %v419_v53  ;;  %v407_v28 = vld [vmem:[%s10116_s1 + $0xb90] sm:$0xff] }
 0x14f   :  { %3594 = vmatpush1.bf16.msra.mxu0 %v6425_v33  ;;  %v411_v30 = vld [vmem:[%s10116_s1 + $0xbb0] sm:$0xff]  ;;  %v6505_v33 = vcombine.low %v415_v18, %v419_v53 }
 0x150   :  { %3595 = vmatprep.subr.bf16.mxu0 %v6418_v38  ;;  %v535_v45 = vld [vmem:[%s10116_s1 + $0xf90] sm:$0xff]  ;;  %v6497_v43 = vcombine.low %v407_v28, %v411_v30 }
 0x151   :  { %3635 = vmatpush1.bf16.msra.mxu1 %v6553_v35  ;;  %v539_v32 = vld [vmem:[%s10116_s1 + $0xfb0] sm:$0xff]  ;;  %v6498_v35 = vcombine.high %v407_v28, %v411_v30 }
 0x152   :  { %3636 = vmatprep.subr.bf16.mxu1 %v6546_v41  ;;  %v6626_v38 = vcombine.high %v535_v45, %v539_v32  ;;  %v399_v40 = vld [vmem:[%s10116_s1 + $0xb50] sm:$0xff]  ;;  %v6625_v44 = vcombine.low %v535_v45, %v539_v32 }
 0x153   :  { %3596 = vmatpush1.bf16.msra.mxu0 %v6417_v21  ;;  %v403_v41 = vld [vmem:[%s10116_s1 + $0xb70] sm:$0xff] }
 0x154   :  { %3597 = vmatprep.subr.bf16.mxu0 %v6410_v47  ;;  %v6490_v21 = vcombine.high %v399_v40, %v403_v41  ;;  %v391_v47 = vld [vmem:[%s10116_s1 + $0xb10] sm:$0xff]  ;;  %v6489_v51 = vcombine.low %v399_v40, %v403_v41  ;;  %v224_v40 = vld [vmem:[%s10116_s1 + $0x5d8] sm:$0xff] }
 0x155   :  { %3637 = vmatpush1.bf16.msra.mxu1 %v6545_v46  ;;  %v6618_v46 = vcombine.high %v527_v42, %v531_v19  ;;  %v519_v49 = vld [vmem:[%s10116_s1 + $0xf10] sm:$0xff]  ;;  %v228_v41 = vld [vmem:[%s10116_s1 + $0x5f8] sm:$0xff]  ;;  %v561_v19 = vsub.s32 2, %v8279_v60 }
 0x156   :  { %3638 = vmatprep.subr.bf16.mxu1 %v6538_v48  ;;  %v395_v48 = vld [vmem:[%s10116_s1 + $0xb30] sm:$0xff] }
 0x157   :  { %3598 = vmatpush1.bf16.msra.mxu0 %v6409_v55  ;;  %v523_v50 = vld [vmem:[%s10116_s1 + $0xf30] sm:$0xff]  ;;  %v6482_v55 = vcombine.high %v391_v47, %v395_v48  ;;  %v6481_v0 = vcombine.low %v391_v47, %v395_v48  ;;  %v88_v47 = vld [vmem:[%s10116_s1 + $0x198] sm:$0xff] }
 0x158   :  { %3599 = vmatprep.subr.bf16.mxu0 %v6402_v57  ;;  %v383_v57 = vld [vmem:[%s10116_s1 + $0xad0] sm:$0xff]  ;;  %v6609_v1 = vcombine.low %v519_v49, %v523_v50  ;;  %v92_v48 = vld [vmem:[%s10116_s1 + $0x1b8] sm:$0xff] }
 0x159   :  { %3639 = vmatpush1.bf16.msra.mxu1 %v6537_v56  ;;  %v6610_v56 = vcombine.high %v519_v49, %v523_v50  ;;  %v511_v62 = vld [vmem:[%s10116_s1 + $0xed0] sm:$0xff]  ;;  %v216_v49 = vld [vmem:[%s10116_s1 + $0x598] sm:$0xff] }
 0x15a   :  { %3640 = vmatprep.subr.bf16.mxu1 %v6530_v61  ;;  %v387_v61 = vld [vmem:[%s10116_s1 + $0xaf0] sm:$0xff]  ;;  %v220_v50 = vld [vmem:[%s10116_s1 + $0x5b8] sm:$0xff] }
 0x15b   :  { %3600 = vmatpush1.bf16.msra.mxu0 %v6401_v2  ;;  %v515_v63 = vld [vmem:[%s10116_s1 + $0xef0] sm:$0xff]  ;;  %v6474_v2 = vcombine.high %v383_v57, %v387_v61  ;;  %v6473_v11 = vcombine.low %v383_v57, %v387_v61  ;;  %v80_v57 = vld [vmem:[%s10116_s1 + $0x158] sm:$0xff] }
 0x15c   :  { %3601 = vmatprep.subr.bf16.mxu0 %v6394_v4  ;;  %v375_v4 = vld [vmem:[%s10116_s1 + $0xa90] sm:$0xff]  ;;  %v6601_v12 = vcombine.low %v511_v62, %v515_v63  ;;  %v84_v61 = vld [vmem:[%s10116_s1 + $0x178] sm:$0xff] }
 0x15d   :  { %3641 = vmatpush1.bf16.msra.mxu1 %v6529_v3  ;;  %v6602_v3 = vcombine.high %v511_v62, %v515_v63  ;;  %v503_v8 = vld [vmem:[%s10116_s1 + $0xe90] sm:$0xff]  ;;  %v6308_v63 = vcombine.high %v216_v49, %v220_v50 }
 0x15e   :  { %3642 = vmatprep.subr.bf16.mxu1 %v6522_v6  ;;  %v379_v6 = vld [vmem:[%s10116_s1 + $0xab0] sm:$0xff] }
 0x15f   :  { %3602 = vmatpush1.bf16.msra.mxu0 %v6393_v13  ;;  %v507_v9 = vld [vmem:[%s10116_s1 + $0xeb0] sm:$0xff]  ;;  %v6466_v13 = vcombine.high %v375_v4, %v379_v6  ;;  %v6465_v22 = vcombine.low %v375_v4, %v379_v6  ;;  %v6179_v6 = vcombine.low %v88_v47, %v92_v48 }
 0x160   :  { %3603 = vmatprep.subr.bf16.mxu0 %v6386_v15  ;;  %v367_v15 = vld [vmem:[%s10116_s1 + $0xa50] sm:$0xff]  ;;  %v6593_v24 = vcombine.low %v503_v8, %v507_v9 }
 0x161   :  { %3643 = vmatpush1.bf16.msra.mxu1 %v6521_v14  ;;  %v6594_v14 = vcombine.high %v503_v8, %v507_v9  ;;  %v495_v18 = vld [vmem:[%s10116_s1 + $0xe50] sm:$0xff]  ;;  %v76_v8 = vld [vmem:[%s10116_s1 + $0x138] sm:$0xff] }
 0x162   :  { %3644 = vmatprep.subr.bf16.mxu1 %v6514_v17  ;;  %v371_v17 = vld [vmem:[%s10116_s1 + $0xa70] sm:$0xff] }
 0x163   :  { %3604 = vmatpush1.bf16.msra.mxu0 %v6385_v25  ;;  %v499_v53 = vld [vmem:[%s10116_s1 + $0xe70] sm:$0xff]  ;;  %v6458_v25 = vcombine.high %v367_v15, %v371_v17  ;;  %v6457_v45 = vcombine.low %v367_v15, %v371_v17 }
 0x164   :  { %3605 = vmatprep.subr.bf16.mxu0 %v6506_v37  ;;  %v359_v37 = vld [vmem:[%s10116_s1 + $0xa10] sm:$0xff]  ;;  %v6585_v32 = vcombine.low %v495_v18, %v499_v53 }
 0x165   :  { %3645 = vmatpush1.bf16.msra.mxu1 %v6513_v54  ;;  %v6586_v54 = vcombine.high %v495_v18, %v499_v53  ;;  %v487_v28 = vld [vmem:[%s10116_s1 + $0xe10] sm:$0xff]  ;;  %v200_v53 = vld [vmem:[%s10116_s1 + $0x518] sm:$0xff] }
 0x166   :  { %3646 = vmatprep.subr.bf16.mxu1 %v6634_v27  ;;  %v363_v27 = vld [vmem:[%s10116_s1 + $0xa30] sm:$0xff] }
 0x167   :  { %3606 = vmatpush2.bf16.msra.mxu0 %v6505_v33  ;;  %v491_v30 = vld [vmem:[%s10116_s1 + $0xe30] sm:$0xff]  ;;  %v6450_v33 = vcombine.high %v359_v37, %v363_v27  ;;  %v6449_v42 = vcombine.low %v359_v37, %v363_v27 }
 0x168   :  { %3607 = vmatprep.subr.bf16.mxu0 %v6498_v35  ;;  %v96_v35 = vld [vmem:[%s10116_s1 + $0x1d8] sm:$0xff] }
 0x169   :  { %3647 = vmatpush2.bf16.msra.mxu1 %v6633_v34  ;;  %v6578_v34 = vcombine.high %v487_v28, %v491_v30 }
 0x16a   :  { %3648 = vmatprep.subr.bf16.mxu1 %v6626_v38  ;;  %v100_v38 = vld [vmem:[%s10116_s1 + $0x1f8] sm:$0xff] }
 0x16b   :  { %3608 = vmatpush2.bf16.msra.mxu0 %v6497_v43  ;;  %v6577_v43 = vcombine.low %v487_v28, %v491_v30 }
 0x16c   :  { %3609 = vmatprep.subr.bf16.mxu0 %v6490_v21  ;;  %v6316_v21 = vcombine.high %v224_v40, %v228_v41 }
 0x16d   :  { %3649 = vmatpush2.bf16.msra.mxu1 %v6625_v44  ;;  %v6188_v44 = vcombine.high %v96_v35, %v100_v38 }
 0x16e   :  { %3650 = vmatprep.subr.bf16.mxu1 %v6618_v46  ;;  %v565_v46 = vsub.s32 3, %v8279_v60 }
 0x16f   :  { %3610 = vmatpush2.bf16.msra.mxu0 %v6489_v51  ;;  %v562_v51 = vrot.slane %v8297_v7, %v561_v19 }
 0x170   :  { %3611 = vmatprep.subr.bf16.mxu0 %v6482_v55  ;;  %v6315_v55 = vcombine.low %v224_v40, %v228_v41  ;;  %v566_v62 = vrot.slane %v8297_v7, %v565_v46  ;;  %v72_v7 = vld [vmem:[%s10116_s1 + $0x118] sm:$0xff] }
 0x171   :  { %3651 = vmatpush2.bf16.msra.mxu1 %v6617_v52  ;;  %v6187_v52 = vcombine.low %v96_v35, %v100_v38  ;;  %v6164_v27 = vcombine.high %v72_v7, %v76_v8  ;;  %v56_v40 = vld [vmem:[%s10116_s1 + $0x98] sm:$0xff] }
 0x172   :  { %3652 = vmatprep.subr.bf16.mxu1 %v6610_v56  ;;  %v6180_v56 = vcombine.high %v88_v47, %v92_v48  ;;  %v60_v41 = vld [vmem:[%s10116_s1 + $0xb8] sm:$0xff] }
 0x173   :  { %3612 = vmatpush2.bf16.msra.mxu0 %v6481_v0  ;;  %v208_v0 = vld [vmem:[%s10116_s1 + $0x558] sm:$0xff]  ;;  %v6148_v48 = vcombine.high %v56_v40, %v60_v41 }
 0x174   :  { %3613 = vmatprep.subr.bf16.mxu0 %v6474_v2  ;;  %v212_v2 = vld [vmem:[%s10116_s1 + $0x578] sm:$0xff] }
 0x175   :  { %3653 = vmatpush2.bf16.msra.mxu1 %v6609_v1  ;;  %v6300_v17 = vcombine.high %v208_v0, %v212_v2 }
 0x176   :  { %3654 = vmatprep.subr.bf16.mxu1 %v6602_v3 }
 0x177   :  { %3614 = vmatpush2.bf16.msra.mxu0 %v6473_v11  ;;  %v6307_v11 = vcombine.low %v216_v49, %v220_v50  ;;  %v48_v49 = vld [vmem:[%s10116_s1 + $0x58] sm:$0xff] }
 0x178   :  { %3615 = vmatprep.subr.bf16.mxu0 %v6466_v13  ;;  %v52_v50 = vld [vmem:[%s10116_s1 + $0x78] sm:$0xff] }
 0x179   :  { %3655 = vmatpush2.bf16.msra.mxu1 %v6601_v12  ;;  %v6172_v12 = vcombine.high %v80_v57, %v84_v61 }
 0x17a   :  { %3656 = vmatprep.subr.bf16.mxu1 %v6594_v14 }
 0x17b   :  { %3616 = vmatpush2.bf16.msra.mxu0 %v6465_v22  ;;  %v204_v22 = vld [vmem:[%s10116_s1 + $0x538] sm:$0xff] }
 0x17c   :  { %3617 = vmatprep.subr.bf16.mxu0 %v6458_v25  ;;  %v6292_v30 = vcombine.high %v200_v53, %v204_v22  ;;  %v6291_v35 = vcombine.low %v200_v53, %v204_v22  ;;  %v156_v53 = vld [vmem:[%s10116_s1 + $0x3b8] sm:$0xff] }
 0x17d   :  { %3657 = vmatpush2.bf16.msra.mxu1 %v6593_v24  ;;  %v280_v22 = vld [vmem:[%s10116_s1 + $0x798] sm:$0xff] }
 0x17e   :  { %3658 = vmatprep.subr.bf16.mxu1 %v6586_v54  ;;  %v6171_v54 = vcombine.low %v80_v57, %v84_v61  ;;  %v6140_v61 = vcombine.high %v48_v49, %v52_v50 }
 0x17f   :  { %3618 = vmatpush2.bf16.msra.mxu0 %v6457_v45  ;;  %v64_v45 = vld [vmem:[%s10116_s1 + $0xd8] sm:$0xff] }
 0x180   :  { %3619 = vmatprep.subr.bf16.mxu0 %v6450_v33  ;;  %v196_v33 = vld [vmem:[%s10116_s1 + $0x4f8] sm:$0xff] }
 0x181   :  { %3659 = vmatpush2.bf16.msra.mxu1 %v6585_v32  ;;  %v192_v32 = vld [vmem:[%s10116_s1 + $0x4d8] sm:$0xff] }
 0x182   :  { %3660 = vmatprep.subr.bf16.mxu1 %v6578_v34  ;;  %v6163_v34 = vcombine.low %v72_v7, %v76_v8  ;;  %v6283_v47 = vcombine.low %v192_v32, %v196_v33  ;;  %v160_v7 = vld [vmem:[%s10116_s1 + $0x3d8] sm:$0xff] }
 0x183   :  { %3620 = vmatpush2.bf16.msra.mxu0 %v6449_v42  ;;  %v184_v42 = vld [vmem:[%s10116_s1 + $0x498] sm:$0xff] }
 0x184   :  { %3671 = vmatprep.subr.bf16.mxu0 %v6188_v44  ;;  %v188_v44 = vld [vmem:[%s10116_s1 + $0x4b8] sm:$0xff] }
 0x185   :  { %3661 = vmatpush2.bf16.msra.mxu1 %v6577_v43  ;;  %v6284_v43 = vcombine.high %v192_v32, %v196_v33  ;;  %v6275_v57 = vcombine.low %v184_v42, %v188_v44  ;;  %v164_v8 = vld [vmem:[%s10116_s1 + $0x3f8] sm:$0xff] }
 0x186   :  { %3712 = vmatprep.subr.bf16.mxu1 %v6316_v21  ;;  %v3377_v1 = vpop.f32.mrf.mxu0  ;;  %3622 = vmatmul.mubr.bf16.vlgmr.msra.gmra.mxu0 %v7899_v36  ;;  %v276_v32 = vld [vmem:[%s10116_s1 + $0x778] sm:$0xff] }
 0x187   :  { %v3378_v3 = vadd.f32 %v3377_v1, %v562_v51  ;;  %3672 = vmatpush1.bf16.msra.mxu0 %v6187_v52  ;;  %3703 = vmatprep.mubr.bf16.mxu0 %v7547_v58  ;;  %v6299_v58 = vcombine.low %v208_v0, %v212_v2  ;;  %v176_v51 = vld [vmem:[%s10116_s1 + $0x458] sm:$0xff]  ;;  %v6276_v52 = vcombine.high %v184_v42, %v188_v44 }
 0x188   :  { %v3418_v4 = vpop.f32.mrf.mxu1  ;;  %3663 = vmatmul.mubr.bf16.vlgmr.msra.gmra.mxu1 %v7909_v39  ;;  %v3379_v9 = vpop.f32.mrf.mxu0  ;;  %3673 = vmatprep.subr.bf16.mxu0 %v6180_v56  ;;  %v6147_v56 = vcombine.low %v56_v40, %v60_v41  ;;  %v168_v0 = vld [vmem:[%s10116_s1 + $0x418] sm:$0xff] }
 0x189   :  { %3713 = vmatpush1.bf16.msra.mxu1 %v6315_v55  ;;  %v8748_v13 = vadd.f32 %v3418_v4, %v3378_v3  ;;  %v3380_v14 = vadd.f32 %v3379_v9, %v566_v62  ;;  %3744 = vmatprep.mubr.bf16.mxu1 %v7551_v59  ;;  %v68_v59 = vld [vmem:[%s10116_s1 + $0xf8] sm:$0xff]  ;;  %v6139_v3 = vcombine.low %v48_v49, %v52_v50 }
 0x18a   :  { %v3420_v15 = vpop.f32.mrf.mxu1  ;;  %3714 = vmatprep.subr.bf16.mxu1 %v6308_v63  ;;  %v3381_v18 = vpop.f32.mrf.mxu0  ;;  %v6156_v38 = vcombine.high %v64_v45, %v68_v59  ;;  %v6155_v21 = vcombine.low %v64_v45, %v68_v59  ;;  %v180_v55 = vld [vmem:[%s10116_s1 + $0x478] sm:$0xff] }
 0x18b   :  { %v8758_v24 = vadd.f32 %v3420_v15, %v3380_v14  ;;  %3674 = vmatpush1.bf16.msra.mxu0 %v6179_v6  ;;  %v40_v62 = vld [vmem:[%s10116_s1 + $0x18] sm:$0xff]  ;;  %v6268_v1 = vcombine.high %v176_v51, %v180_v55  ;;  %v6267_v4 = vcombine.low %v176_v51, %v180_v55 }
 0x18c   :  { %v3422_v25 = vpop.f32.mrf.mxu1  ;;  %v3382_v37 = vpop.f32.mrf.mxu0  ;;  %3675 = vmatprep.subr.bf16.mxu0 %v6172_v12  ;;  %v44_v63 = vld [vmem:[%s10116_s1 + $0x38] sm:$0xff] }
 0x18d   :  { %3715 = vmatpush1.bf16.msra.mxu1 %v6307_v11  ;;  %v172_v2 = vld [vmem:[%s10116_s1 + $0x438] sm:$0xff]  ;;  %v6132_v6 = vcombine.high %v40_v62, %v44_v63  ;;  %v6131_v14 = vcombine.low %v40_v62, %v44_v63  ;;  %v6251_v37 = vcombine.low %v160_v7, %v164_v8 }
 0x18e   :  { %v3423_v28 = vpop.f32.mrf.mxu1  ;;  %3716 = vmatprep.subr.bf16.mxu1 %v6300_v17  ;;  %v288_v9 = vld [vmem:[%s10116_s1 + $0x7d8] sm:$0xff]  ;;  %v6260_v11 = vcombine.high %v168_v0, %v172_v2  ;;  %v6259_v15 = vcombine.low %v168_v0, %v172_v2  ;;  %v6252_v17 = vcombine.high %v160_v7, %v164_v8 }
 0x18f   :  { %3676 = vmatpush1.bf16.msra.mxu0 %v6171_v54  ;;  %v292_v12 = vld [vmem:[%s10116_s1 + $0x7f8] sm:$0xff] }
 0x190   :  { %3677 = vmatprep.subr.bf16.mxu0 %v6164_v27  ;;  %v152_v18 = vld [vmem:[%s10116_s1 + $0x398] sm:$0xff]  ;;  %v6380_v25 = vcombine.high %v288_v9, %v292_v12 }
 0x191   :  { %3717 = vmatpush1.bf16.msra.mxu1 %v6299_v58  ;;  %v284_v54 = vld [vmem:[%s10116_s1 + $0x7b8] sm:$0xff]  ;;  %v6379_v58 = vcombine.low %v288_v9, %v292_v12  ;;  %v6244_v27 = vcombine.high %v152_v18, %v156_v53  ;;  %v6243_v33 = vcombine.low %v152_v18, %v156_v53 }
 0x192   :  { %3718 = vmatprep.subr.bf16.mxu1 %v6292_v30  ;;  %v144_v28 = vld [vmem:[%s10116_s1 + $0x358] sm:$0xff]  ;;  %v6372_v59 = vcombine.high %v280_v22, %v284_v54 }
 0x193   :  { %3678 = vmatpush1.bf16.msra.mxu0 %v6163_v34  ;;  %v148_v30 = vld [vmem:[%s10116_s1 + $0x378] sm:$0xff]  ;;  %v6371_v34 = vcombine.low %v280_v22, %v284_v54 }
 0x194   :  { %3679 = vmatprep.subr.bf16.mxu0 %v6156_v38  ;;  %v272_v45 = vld [vmem:[%s10116_s1 + $0x758] sm:$0xff]  ;;  %v6235_v44 = vcombine.low %v144_v28, %v148_v30 }
 0x195   :  { %3719 = vmatpush1.bf16.msra.mxu1 %v6291_v35  ;;  %v6236_v35 = vcombine.high %v144_v28, %v148_v30  ;;  %v136_v38 = vld [vmem:[%s10116_s1 + $0x318] sm:$0xff]  ;;  %v6364_v42 = vcombine.high %v272_v45, %v276_v32 }
 0x196   :  { %3720 = vmatprep.subr.bf16.mxu1 %v6284_v43  ;;  %v140_v40 = vld [vmem:[%s10116_s1 + $0x338] sm:$0xff] }
 0x197   :  { %3680 = vmatpush1.bf16.msra.mxu0 %v6155_v21  ;;  %v264_v41 = vld [vmem:[%s10116_s1 + $0x718] sm:$0xff]  ;;  %v6363_v21 = vcombine.low %v272_v45, %v276_v32  ;;  %v6227_v55 = vcombine.low %v136_v38, %v140_v40 }
 0x198   :  { %3681 = vmatprep.subr.bf16.mxu0 %v6148_v48  ;;  %v268_v43 = vld [vmem:[%s10116_s1 + $0x738] sm:$0xff] }
 0x199   :  { %3721 = vmatpush1.bf16.msra.mxu1 %v6283_v47  ;;  %v6228_v47 = vcombine.high %v136_v38, %v140_v40  ;;  %v128_v48 = vld [vmem:[%s10116_s1 + $0x2d8] sm:$0xff]  ;;  %v6356_v51 = vcombine.high %v264_v41, %v268_v43 }
 0x19a   :  { %3722 = vmatprep.subr.bf16.mxu1 %v6276_v52  ;;  %v132_v49 = vld [vmem:[%s10116_s1 + $0x2f8] sm:$0xff] }
 0x19b   :  { %3682 = vmatpush1.bf16.msra.mxu0 %v6147_v56  ;;  %v256_v50 = vld [vmem:[%s10116_s1 + $0x6d8] sm:$0xff]  ;;  %v6355_v56 = vcombine.low %v264_v41, %v268_v43  ;;  %v6219_v2 = vcombine.low %v128_v48, %v132_v49 }
 0x19c   :  { %3683 = vmatprep.subr.bf16.mxu0 %v6140_v61  ;;  %v260_v52 = vld [vmem:[%s10116_s1 + $0x6f8] sm:$0xff] }
 0x19d   :  { %3723 = vmatpush1.bf16.msra.mxu1 %v6275_v57  ;;  %v6220_v57 = vcombine.high %v128_v48, %v132_v49  ;;  %v120_v61 = vld [vmem:[%s10116_s1 + $0x298] sm:$0xff]  ;;  %v6348_v0 = vcombine.high %v256_v50, %v260_v52 }
 0x19e   :  { %3724 = vmatprep.subr.bf16.mxu1 %v6268_v1  ;;  %v124_v62 = vld [vmem:[%s10116_s1 + $0x2b8] sm:$0xff] }
 0x19f   :  { %3684 = vmatpush1.bf16.msra.mxu0 %v6139_v3  ;;  %v248_v63 = vld [vmem:[%s10116_s1 + $0x698] sm:$0xff]  ;;  %v6347_v3 = vcombine.low %v256_v50, %v260_v52  ;;  %v6211_v12 = vcombine.low %v120_v61, %v124_v62 }
 0x1a0   :  { %3685 = vmatprep.subr.bf16.mxu0 %v6132_v6  ;;  %v252_v1 = vld [vmem:[%s10116_s1 + $0x6b8] sm:$0xff] }
 0x1a1   :  { %3725 = vmatpush1.bf16.msra.mxu1 %v6267_v4  ;;  %v6212_v4 = vcombine.high %v120_v61, %v124_v62  ;;  %v112_v6 = vld [vmem:[%s10116_s1 + $0x258] sm:$0xff]  ;;  %v6340_v9 = vcombine.high %v248_v63, %v252_v1 }
 0x1a2   :  { %3726 = vmatprep.subr.bf16.mxu1 %v6260_v11  ;;  %v116_v7 = vld [vmem:[%s10116_s1 + $0x278] sm:$0xff] }
 0x1a3   :  { %3686 = vmatpush1.bf16.msra.mxu0 %v6131_v14  ;;  %v240_v8 = vld [vmem:[%s10116_s1 + $0x658] sm:$0xff]  ;;  %v6339_v14 = vcombine.low %v248_v63, %v252_v1  ;;  %v6203_v54 = vcombine.low %v112_v6, %v116_v7 }
 0x1a4   :  { %3687 = vmatprep.subr.bf16.mxu0 %v6252_v17  ;;  %v244_v11 = vld [vmem:[%s10116_s1 + $0x678] sm:$0xff] }
 0x1a5   :  { %3727 = vmatpush1.bf16.msra.mxu1 %v6259_v15  ;;  %v6204_v15 = vcombine.high %v112_v6, %v116_v7  ;;  %v104_v17 = vld [vmem:[%s10116_s1 + $0x218] sm:$0xff]  ;;  %v6332_v22 = vcombine.high %v240_v8, %v244_v11 }
 0x1a6   :  { %3728 = vmatprep.subr.bf16.mxu1 %v6380_v25  ;;  %v108_v18 = vld [vmem:[%s10116_s1 + $0x238] sm:$0xff] }
 0x1a7   :  { %3688 = vmatpush2.bf16.msra.mxu0 %v6251_v37  ;;  %v232_v53 = vld [vmem:[%s10116_s1 + $0x618] sm:$0xff]  ;;  %v6331_v37 = vcombine.low %v240_v8, %v244_v11  ;;  %v6195_v32 = vcombine.low %v104_v17, %v108_v18 }
 0x1a8   :  { %3689 = vmatprep.subr.bf16.mxu0 %v6244_v27  ;;  %v236_v25 = vld [vmem:[%s10116_s1 + $0x638] sm:$0xff] }
 0x1a9   :  { %3729 = vmatpush2.bf16.msra.mxu1 %v6379_v58  ;;  %v6196_v58 = vcombine.high %v104_v17, %v108_v18  ;;  %v352_v27 = vld [vmem:[%s10116_s1 + $0x9d8] sm:$0xff]  ;;  %v6324_v45 = vcombine.high %v232_v53, %v236_v25 }
 0x1aa   :  { %3730 = vmatprep.subr.bf16.mxu1 %v6372_v59  ;;  %v356_v28 = vld [vmem:[%s10116_s1 + $0x9f8] sm:$0xff] }
 0x1ab   :  { %3690 = vmatpush2.bf16.msra.mxu0 %v6243_v33  ;;  %v480_v30 = vld [vmem:[%s10116_s1 + $0xdd8] sm:$0xff]  ;;  %v6323_v33 = vcombine.low %v232_v53, %v236_v25  ;;  %v6443_v43 = vcombine.low %v352_v27, %v356_v28 }
 0x1ac   :  { %3691 = vmatprep.subr.bf16.mxu0 %v6236_v35  ;;  %v484_v59 = vld [vmem:[%s10116_s1 + $0xdf8] sm:$0xff] }
 0x1ad   :  { %3731 = vmatpush2.bf16.msra.mxu1 %v6371_v34  ;;  %v6444_v34 = vcombine.high %v352_v27, %v356_v28  ;;  %v344_v35 = vld [vmem:[%s10116_s1 + $0x998] sm:$0xff]  ;;  %v6572_v41 = vcombine.high %v480_v30, %v484_v59 }
 0x1ae   :  { %3732 = vmatprep.subr.bf16.mxu1 %v6364_v42  ;;  %v348_v38 = vld [vmem:[%s10116_s1 + $0x9b8] sm:$0xff] }
 0x1af   :  { %3692 = vmatpush2.bf16.msra.mxu0 %v6235_v44  ;;  %v472_v40 = vld [vmem:[%s10116_s1 + $0xd98] sm:$0xff]  ;;  %v6436_v48 = vcombine.high %v344_v35, %v348_v38 }
 0x1b0   :  { %3693 = vmatprep.subr.bf16.mxu0 %v6228_v47  ;;  %v476_v42 = vld [vmem:[%s10116_s1 + $0xdb8] sm:$0xff]  ;;  %v6571_v47 = vcombine.low %v480_v30, %v484_v59 }
 0x1b1   :  { %3733 = vmatpush2.bf16.msra.mxu1 %v6363_v21  ;;  %v336_v44 = vld [vmem:[%s10116_s1 + $0x958] sm:$0xff]  ;;  %v6564_v50 = vcombine.high %v472_v40, %v476_v42  ;;  %v6563_v63 = vcombine.low %v472_v40, %v476_v42 }
 0x1b2   :  { %3734 = vmatprep.subr.bf16.mxu1 %v6356_v51  ;;  %v340_v21 = vld [vmem:[%s10116_s1 + $0x978] sm:$0xff] }
 0x1b3   :  { %3694 = vmatpush2.bf16.msra.mxu0 %v6227_v55  ;;  %v464_v49 = vld [vmem:[%s10116_s1 + $0xd58] sm:$0xff]  ;;  %v6427_v7 = vcombine.low %v336_v44, %v340_v21 }
 0x1b4   :  { %3695 = vmatprep.subr.bf16.mxu0 %v6220_v57  ;;  %v468_v52 = vld [vmem:[%s10116_s1 + $0xd78] sm:$0xff]  ;;  %v6435_v57 = vcombine.low %v344_v35, %v348_v38 }
 0x1b5   :  { %3735 = vmatpush2.bf16.msra.mxu1 %v6355_v56  ;;  %v328_v61 = vld [vmem:[%s10116_s1 + $0x918] sm:$0xff]  ;;  %v6555_v11 = vcombine.low %v464_v49, %v468_v52 }
 0x1b6   :  { %3736 = vmatprep.subr.bf16.mxu1 %v6348_v0  ;;  %v332_v62 = vld [vmem:[%s10116_s1 + $0x938] sm:$0xff]  ;;  %v6428_v0 = vcombine.high %v336_v44, %v340_v21 }
 0x1b7   :  { %3696 = vmatpush2.bf16.msra.mxu0 %v6219_v2  ;;  %v6556_v2 = vcombine.high %v464_v49, %v468_v52  ;;  %v320_v8 = vld [vmem:[%s10116_s1 + $0x8d8] sm:$0xff]  ;;  %v6419_v18 = vcombine.low %v328_v61, %v332_v62 }
 0x1b8   :  { %3697 = vmatprep.subr.bf16.mxu0 %v6212_v4  ;;  %v460_v4 = vld [vmem:[%s10116_s1 + $0xd38] sm:$0xff] }
 0x1b9   :  { %3737 = vmatpush2.bf16.msra.mxu1 %v6347_v3  ;;  %v452_v17 = vld [vmem:[%s10116_s1 + $0xcf8] sm:$0xff] }
 0x1ba   :  { %3738 = vmatprep.subr.bf16.mxu1 %v6340_v9  ;;  %v324_v9 = vld [vmem:[%s10116_s1 + $0x8f8] sm:$0xff] }
 0x1bb   :  { %3698 = vmatpush2.bf16.msra.mxu0 %v6211_v12  ;;  %v6420_v12 = vcombine.high %v328_v61, %v332_v62  ;;  %v312_v53 = vld [vmem:[%s10116_s1 + $0x898] sm:$0xff]  ;;  %v6411_v28 = vcombine.low %v320_v8, %v324_v9 }
 0x1bc   :  { %3699 = vmatprep.subr.bf16.mxu0 %v6204_v15  ;;  %v444_v27 = vld [vmem:[%s10116_s1 + $0xcb8] sm:$0xff] }
 0x1bd   :  { %3739 = vmatpush2.bf16.msra.mxu1 %v6339_v14  ;;  %v304_v30 = vld [vmem:[%s10116_s1 + $0x858] sm:$0xff] }
 0x1be   :  { %3740 = vmatprep.subr.bf16.mxu1 %v6332_v22  ;;  %v316_v22 = vld [vmem:[%s10116_s1 + $0x8b8] sm:$0xff] }
 0x1bf   :  { %3700 = vmatpush2.bf16.msra.mxu0 %v6203_v54  ;;  %v6412_v54 = vcombine.high %v320_v8, %v324_v9  ;;  %v6403_v38 = vcombine.low %v312_v53, %v316_v22  ;;  %v296_v40 = vld [vmem:[%s10116_s1 + $0x818] sm:$0xff] }
 0x1c0   :  { %3701 = vmatprep.subr.bf16.mxu0 %v6196_v58  ;;  %v440_v58 = vld [vmem:[%s10116_s1 + $0xc98] sm:$0xff] }
 0x1c1   :  { %3741 = vmatpush2.bf16.msra.mxu1 %v6331_v37  ;;  %v6532_v35 = vcombine.high %v440_v58, %v444_v27  ;;  %v6531_v42 = vcombine.low %v440_v58, %v444_v27  ;;  %v424_v44 = vld [vmem:[%s10116_s1 + $0xc18] sm:$0xff] }
 0x1c2   :  { %3742 = vmatprep.subr.bf16.mxu1 %v6324_v45  ;;  %v308_v45 = vld [vmem:[%s10116_s1 + $0x878] sm:$0xff] }
 0x1c3   :  { %3702 = vmatpush2.bf16.msra.mxu0 %v6195_v32  ;;  %v6404_v32 = vcombine.high %v312_v53, %v316_v22  ;;  %v428_v21 = vld [vmem:[%s10116_s1 + $0xc38] sm:$0xff] }
 0x1c4   :  { %3753 = vmatprep.subr.bf16.mxu0 %v6444_v34  ;;  %v436_v34 = vld [vmem:[%s10116_s1 + $0xc78] sm:$0xff] }
 0x1c5   :  { %3743 = vmatpush2.bf16.msra.mxu1 %v6323_v33  ;;  %v432_v33 = vld [vmem:[%s10116_s1 + $0xc58] sm:$0xff] }
 0x1c6   :  { %3794 = vmatprep.subr.bf16.mxu1 %v6572_v41  ;;  %v3459_v51 = vpop.f32.mrf.mxu0  ;;  %3704 = vmatmul.mubr.bf16.vlgmr.msra.gmra.mxu0 %v7677_v16  ;;  %v300_v41 = vld [vmem:[%s10116_s1 + $0x838] sm:$0xff] }
 0x1c7   :  { %v3460_v55 = vadd.f32 %v3459_v51, %v8748_v13  ;;  %3754 = vmatpush1.bf16.msra.mxu0 %v6443_v43  ;;  %3785 = vmatprep.mubr.bf16.mxu0 %v7707_v26  ;;  %v6396_v43 = vcombine.high %v304_v30, %v308_v45  ;;  %v416_v49 = vld [vmem:[%s10116_s1 + $0xbd8] sm:$0xff]  ;;  %v6523_v51 = vcombine.low %v432_v33, %v436_v34 }
 0x1c8   :  { %v3500_v56 = vpop.f32.mrf.mxu1  ;;  %3745 = vmatmul.mubr.bf16.vlgmr.msra.gmra.mxu1 %v7692_v20  ;;  %v8949_v16 = vpop.f32.mrf.mxu0  ;;  %3755 = vmatprep.subr.bf16.mxu0 %v6436_v48  ;;  %v456_v20 = vld [vmem:[%s10116_s1 + $0xd18] sm:$0xff]  ;;  %v6395_v48 = vcombine.low %v304_v30, %v308_v45  ;;  %v6388_v52 = vcombine.high %v296_v40, %v300_v41  ;;  %v6387_v61 = vcombine.low %v296_v40, %v300_v41 }
 0x1c9   :  { %3795 = vmatpush1.bf16.msra.mxu1 %v6571_v47  ;;  %v8954_v13 = vadd.f32 %v3500_v56, %v3460_v55  ;;  %3826 = vmatprep.mubr.bf16.mxu1 %v7718_v29  ;;  %v448_v29 = vld [vmem:[%s10116_s1 + $0xcd8] sm:$0xff]  ;;  %v6548_v15 = vcombine.high %v456_v20, %v460_v4  ;;  %v6547_v25 = vcombine.low %v456_v20, %v460_v4 }
 0x1ca   :  { %v8956_v1 = vpop.f32.mrf.mxu1  ;;  %3796 = vmatprep.subr.bf16.mxu1 %v6564_v50  ;;  %v3463_v3 = vpop.f32.mrf.mxu0  ;;  %v6540_v37 = vcombine.high %v448_v29, %v452_v17  ;;  %v6539_v59 = vcombine.low %v448_v29, %v452_v17  ;;  %v6524_v47 = vcombine.high %v432_v33, %v436_v34  ;;  %v420_v50 = vld [vmem:[%s10116_s1 + $0xbf8] sm:$0xff] }
 0x1cb   :  { %3756 = vmatpush1.bf16.msra.mxu0 %v6435_v57  ;;  %v544_v55 = vld [vmem:[%s10116_s1 + $0xfd8] sm:$0xff]  ;;  %v6516_v57 = vcombine.high %v424_v44, %v428_v21  ;;  %v6508_v20 = vcombine.high %v416_v49, %v420_v50 }
 0x1cc   :  { %v3504_v6 = vpop.f32.mrf.mxu1  ;;  %v3464_v26 = vpop.f32.mrf.mxu0  ;;  %3757 = vmatprep.subr.bf16.mxu0 %v6428_v0  ;;  %v548_v56 = vld [vmem:[%s10116_s1 + $0xff8] sm:$0xff]  ;;  %v6515_v0 = vcombine.low %v424_v44, %v428_v21 }
 0x1cd   :  { %3797 = vmatpush1.bf16.msra.mxu1 %v6563_v63  ;;  %v408_v62 = vld [vmem:[%s10116_s1 + $0xb98] sm:$0xff]  ;;  %v6636_v4 = vcombine.high %v544_v55, %v548_v56  ;;  %v6507_v6 = vcombine.low %v416_v49, %v420_v50  ;;  %v6635_v9 = vcombine.low %v544_v55, %v548_v56  ;;  %v3462_v55 = vadd.f32 %v8949_v16, %v8758_v24 }
 0x1ce   :  { %v3505_v14 = vpop.f32.mrf.mxu1  ;;  %3798 = vmatprep.subr.bf16.mxu1 %v6556_v2  ;;  %v412_v63 = vld [vmem:[%s10116_s1 + $0xbb8] sm:$0xff] }
 0x1cf   :  { %3758 = vmatpush1.bf16.msra.mxu0 %v6427_v7  ;;  %v536_v2 = vld [vmem:[%s10116_s1 + $0xf98] sm:$0xff]  ;;  %v6500_v26 = vcombine.high %v408_v62, %v412_v63  ;;  %v6499_v14 = vcombine.low %v408_v62, %v412_v63 }
 0x1d0   :  { %3759 = vmatprep.subr.bf16.mxu0 %v6420_v12  ;;  %v540_v3 = vld [vmem:[%s10116_s1 + $0xfb8] sm:$0xff] }
 0x1d1   :  { %3799 = vmatpush1.bf16.msra.mxu1 %v6555_v11  ;;  %v400_v7 = vld [vmem:[%s10116_s1 + $0xb58] sm:$0xff]  ;;  %v6628_v29 = vcombine.high %v536_v2, %v540_v3 }
 0x1d2   :  { %3800 = vmatprep.subr.bf16.mxu1 %v6548_v15  ;;  %v404_v8 = vld [vmem:[%s10116_s1 + $0xb78] sm:$0xff] }
 0x1d3   :  { %3760 = vmatpush1.bf16.msra.mxu0 %v6419_v18  ;;  %v528_v11 = vld [vmem:[%s10116_s1 + $0xf58] sm:$0xff]  ;;  %v6627_v18 = vcombine.low %v536_v2, %v540_v3  ;;  %v6492_v53 = vcombine.high %v400_v7, %v404_v8 }
 0x1d4   :  { %3761 = vmatprep.subr.bf16.mxu0 %v6412_v54  ;;  %v532_v12 = vld [vmem:[%s10116_s1 + $0xf78] sm:$0xff] }
 0x1d5   :  { %3801 = vmatpush1.bf16.msra.mxu1 %v6547_v25  ;;  %v392_v15 = vld [vmem:[%s10116_s1 + $0xb18] sm:$0xff]  ;;  %v6620_v54 = vcombine.high %v528_v11, %v532_v12 }
 0x1d6   :  { %3802 = vmatprep.subr.bf16.mxu1 %v6540_v37  ;;  %v396_v17 = vld [vmem:[%s10116_s1 + $0xb38] sm:$0xff]  ;;  %v6491_v37 = vcombine.low %v400_v7, %v404_v8  ;;  %v3836_v7 = vmax.f32 %v8550_v31, 0.0  ;;  %v3844_v8 = vld [vmem:[%s10120_s3 + $0x8] sm:$0xff]  ;;  %v6980_v31 = vld [vmem:[%s10119_s4 + $0xe4] ss:$16 sps:$4 sm:$0xff]  }
 0x1d7   :  { %3762 = vmatpush1.bf16.msra.mxu0 %v6411_v28  ;;  %v520_v22 = vld [vmem:[%s10116_s1 + $0xf18] sm:$0xff]  ;;  %v6619_v28 = vcombine.low %v528_v11, %v532_v12  ;;  %v6484_v30 = vcombine.high %v392_v15, %v396_v17  ;;  %v6483_v33 = vcombine.low %v392_v15, %v396_v17  ;;  %v569_v11 = vsub.s32 4, %v8279_v60  ;;  %v9127_v17 = vld [vmem:[%s10118_s2] sm:$0xff] }
 0x1d8   :  { %3763 = vmatprep.subr.bf16.mxu0 %v6404_v32  ;;  %v524_v25 = vld [vmem:[%s10116_s1 + $0xf38] sm:$0xff] }
 0x1d9   :  { %3803 = vmatpush1.bf16.msra.mxu1 %v6539_v59  ;;  %v384_v58 = vld [vmem:[%s10116_s1 + $0xad8] sm:$0xff]  ;;  %v6612_v32 = vcombine.high %v520_v22, %v524_v25 }
 0x1da   :  { %3804 = vmatprep.subr.bf16.mxu1 %v6532_v35  ;;  %v388_v27 = vld [vmem:[%s10116_s1 + $0xaf8] sm:$0xff] }
 0x1db   :  { %3764 = vmatpush1.bf16.msra.mxu0 %v6403_v38  ;;  %v512_v45 = vld [vmem:[%s10116_s1 + $0xed8] sm:$0xff]  ;;  %v6611_v38 = vcombine.low %v520_v22, %v524_v25  ;;  %v6476_v40 = vcombine.high %v384_v58, %v388_v27  ;;  %v6475_v44 = vcombine.low %v384_v58, %v388_v27  ;;  %v6981_v22 = vld [vmem:[%s10119_s4 + $0x2e0] ss:$16 sps:$4 sm:$0xff]   ;;  %v6986_v25 = vld [vmem:[%s10119_s4 + $0xc4] ss:$16 sps:$4 sm:$0xff]  }
 0x1dc   :  { %3765 = vmatprep.subr.bf16.mxu0 %v6396_v43  ;;  %v516_v59 = vld [vmem:[%s10116_s1 + $0xef8] sm:$0xff]  ;;  %v6989_v58 = vld [vmem:[%s10119_s4 + $0x2c4] ss:$16 sps:$4 sm:$0xff]  }
 0x1dd   :  { %3805 = vmatpush1.bf16.msra.mxu1 %v6531_v42  ;;  %v376_v34 = vld [vmem:[%s10116_s1 + $0xa98] sm:$0xff]  ;;  %v6604_v43 = vcombine.high %v512_v45, %v516_v59 }
 0x1de   :  { %3806 = vmatprep.subr.bf16.mxu1 %v6524_v47  ;;  %v380_v35 = vld [vmem:[%s10116_s1 + $0xab8] sm:$0xff] }
 0x1df   :  { %3766 = vmatpush1.bf16.msra.mxu0 %v6395_v48  ;;  %v504_v41 = vld [vmem:[%s10116_s1 + $0xe98] sm:$0xff]  ;;  %v6603_v48 = vcombine.low %v512_v45, %v516_v59  ;;  %v6468_v49 = vcombine.high %v376_v34, %v380_v35  ;;  %v6467_v56 = vcombine.low %v376_v34, %v380_v35  ;;  %v6984_v45 = vld [vmem:[%s10119_s4 + $0xc0] ss:$16 sps:$4 sm:$0xff]   ;;  %v6995_v34 = vld [vmem:[%s10119_s4 + $0x2a4] ss:$16 sps:$4 sm:$0xff]  }
 0x1e0   :  { %3767 = vmatprep.subr.bf16.mxu0 %v6388_v52  ;;  %v508_v42 = vld [vmem:[%s10116_s1 + $0xeb8] sm:$0xff] }
 0x1e1   :  { %3807 = vmatpush1.bf16.msra.mxu1 %v6523_v51  ;;  %v368_v21 = vld [vmem:[%s10116_s1 + $0xa58] sm:$0xff]  ;;  %v6596_v52 = vcombine.high %v504_v41, %v508_v42 }
 0x1e2   :  { %3808 = vmatprep.subr.bf16.mxu1 %v6516_v57  ;;  %v372_v47 = vld [vmem:[%s10116_s1 + $0xa78] sm:$0xff] }
 0x1e3   :  { %3768 = vmatpush1.bf16.msra.mxu0 %v6387_v61  ;;  %v496_v50 = vld [vmem:[%s10116_s1 + $0xe58] sm:$0xff]  ;;  %v6595_v61 = vcombine.low %v504_v41, %v508_v42  ;;  %v6460_v62 = vcombine.high %v368_v21, %v372_v47  ;;  %v6459_v2 = vcombine.low %v368_v21, %v372_v47  ;;  %v6993_v42 = vld [vmem:[%s10119_s4 + $0x2a0] ss:$16 sps:$4 sm:$0xff]   ;;  %v7001_v21 = vld [vmem:[%s10119_s4 + $0x284] ss:$16 sps:$4 sm:$0xff]  }
 0x1e4   :  { %3769 = vmatprep.subr.bf16.mxu0 %v6508_v20  ;;  %v500_v51 = vld [vmem:[%s10116_s1 + $0xe78] sm:$0xff]  ;;  %v3503_v20 = vadd.f32 %v8956_v1, %v3462_v55  ;;  %v6996_v47 = vld [vmem:[%s10119_s4 + $0x80] ss:$16 sps:$4 sm:$0xff]   ;;  %v7010_v55 = vld [vmem:[%s10119_s4 + $0x44] ss:$16 sps:$4 sm:$0xff]  }
 0x1e5   :  { %3809 = vmatpush1.bf16.msra.mxu1 %v6515_v0  ;;  %v360_v57 = vld [vmem:[%s10116_s1 + $0xa18] sm:$0xff]  ;;  %v6588_v63 = vcombine.high %v496_v50, %v500_v51  ;;  %v6587_v3 = vcombine.low %v496_v50, %v500_v51  ;;  %v7007_v50 = vld [vmem:[%s10119_s4 + $0x264] ss:$16 sps:$4 sm:$0xff]   ;;  %v7002_v51 = vld [vmem:[%s10119_s4 + $0x60] ss:$16 sps:$4 sm:$0xff]  }
 0x1e6   :  { %3810 = vmatprep.subr.bf16.mxu1 %v6636_v4  ;;  %v364_v0 = vld [vmem:[%s10116_s1 + $0xa38] sm:$0xff] }
 0x1e7   :  { %3770 = vmatpush2.bf16.msra.mxu0 %v6507_v6  ;;  %v488_v24 = vld [vmem:[%s10116_s1 + $0xe18] sm:$0xff]  ;;  %v6452_v4 = vcombine.high %v360_v57, %v364_v0 }
 0x1e8   :  { %3771 = vmatprep.subr.bf16.mxu0 %v6500_v26  ;;  %v492_v16 = vld [vmem:[%s10116_s1 + $0xe38] sm:$0xff]  ;;  %v6451_v26 = vcombine.low %v360_v57, %v364_v0  ;;  %v7008_v57 = vld [vmem:[%s10119_s4 + $0x40] ss:$16 sps:$4 sm:$0xff]  }
 0x1e9   :  { %3811 = vmatpush2.bf16.msra.mxu1 %v6635_v9  ;;  %v6580_v6 = vcombine.high %v488_v24, %v492_v16  ;;  %v3838_v9 = vmax.f32 %v3503_v20, 0.0  ;;  %v3846_v1 = vld [vmem:[%s10120_s3 + $0x18] sm:$0xff]  ;;  %v6579_v12 = vcombine.low %v488_v24, %v492_v16  ;;  %v7014_v0 = vld [vmem:[%s10119_s4 + $0x20] ss:$16 sps:$4 sm:$0xff]   ;;  %v7022_v16 = vld [vmem:[%s10119_s4 + $0x4] ss:$16 sps:$4 sm:$0xff]  }
 0x1ea   :  { %3812 = vmatprep.subr.bf16.mxu1 %v6628_v29  ;;  %v6983_v29 = vld [vmem:[%s10119_s4 + $0x2e4] ss:$16 sps:$4 sm:$0xff]   ;;  %v7017_v24 = vld [vmem:[%s10119_s4 + $0x220] ss:$16 sps:$4 sm:$0xff]  }
 0x1eb   :  { %3772 = vmatpush2.bf16.msra.mxu0 %v6499_v14  ;;  %v3852_v14 = vmul.f32 %v3844_v8, %v3836_v7  ;;  %v3854_v15 = vmul.f32 %v3846_v1, %v3838_v9  ;;  %v7025_v20 = vld [vmem:[%s10119_s4 + $0x204] ss:$16 sps:$4 sm:$0xff]   ;;  %v7026_v7 = vld [vmem:[%s10119_s4 + $0x1e0] ss:$16 sps:$4 sm:$0xff]  }
 0x1ec   :  { %3773 = vmatprep.subr.bf16.mxu0 %v6492_v53  ;;  %v6978_v53 = vld [vmem:[%s10119_s4 + $0xe0] ss:$16 sps:$4 sm:$0xff]   ;;  %v7034_v9 = vld [vmem:[%s10119_s4 + $0x1c4] ss:$16 sps:$4 sm:$0xff]  }
 0x1ed   :  { %3813 = vmatpush2.bf16.msra.mxu1 %v6627_v18  ;;  %v570_v18 = vrot.slane %v9127_v17, %v569_v11  ;;  %v9145_v27 = vpack.c.bf16 %v3854_v15, %v3854_v15  ;;  %v7029_v8 = vld [vmem:[%s10119_s4 + $0x3e0] ss:$16 sps:$4 sm:$0xff]   ;;  %v7046_v15 = vld [vmem:[%s10119_s4 + $0x184] ss:$16 sps:$4 sm:$0xff]  }
 0x1ee   :  { %3814 = vmatprep.subr.bf16.mxu1 %v6620_v54  ;;  %v9139_v54 = vpack.c.bf16 %v3852_v14, %v3852_v14  ;;  %v7032_v11 = vld [vmem:[%s10119_s4 + $0x1c0] ss:$16 sps:$4 sm:$0xff]  }
 0x1ef   :  { %3774 = vmatpush2.bf16.msra.mxu0 %v6491_v37  ;;  %v7035_v1 = vld [vmem:[%s10119_s4 + $0x3c0] ss:$16 sps:$4 sm:$0xff]  }
 0x1f0   :  { %3775 = vmatprep.subr.bf16.mxu0 %v6484_v30  ;;  %v7041_v14 = vld [vmem:[%s10119_s4 + $0x3a0] ss:$16 sps:$4 sm:$0xff]  }
 0x1f1   :  { %3815 = vmatpush2.bf16.msra.mxu1 %v6619_v28 }
 0x1f2   :  { %3816 = vmatprep.subr.bf16.mxu1 %v6612_v32  ;;  %v6992_v32 = vld [vmem:[%s10119_s4 + $0xa4] ss:$16 sps:$4 sm:$0xff]  }
 0x1f3   :  { %3776 = vmatpush2.bf16.msra.mxu0 %v6483_v33 }
 0x1f4   :  { %3777 = vmatprep.subr.bf16.mxu0 %v6476_v40  ;;  %v6990_v40 = vld [vmem:[%s10119_s4 + $0xa0] ss:$16 sps:$4 sm:$0xff]  }
 0x1f5   :  { %3817 = vmatpush2.bf16.msra.mxu1 %v6611_v38 }
 0x1f6   :  { %3818 = vmatprep.subr.bf16.mxu1 %v6604_v43  ;;  %v6998_v43 = vld [vmem:[%s10119_s4 + $0x84] ss:$16 sps:$4 sm:$0xff]  }
 0x1f7   :  { %3778 = vmatpush2.bf16.msra.mxu0 %v6475_v44 }
 0x1f8   :  { %3779 = vmatprep.subr.bf16.mxu0 %v6468_v49  ;;  %v7004_v49 = vld [vmem:[%s10119_s4 + $0x64] ss:$16 sps:$4 sm:$0xff]  }
 0x1f9   :  { %3819 = vmatpush2.bf16.msra.mxu1 %v6603_v48  ;;  %v6999_v48 = vld [vmem:[%s10119_s4 + $0x280] ss:$16 sps:$4 sm:$0xff]  }
 0x1fa   :  { %3820 = vmatprep.subr.bf16.mxu1 %v6596_v52  ;;  %v7005_v52 = vld [vmem:[%s10119_s4 + $0x260] ss:$16 sps:$4 sm:$0xff]  }
 0x1fb   :  { %3780 = vmatpush2.bf16.msra.mxu0 %v6467_v56  ;;  %v7013_v56 = vld [vmem:[%s10119_s4 + $0x244] ss:$16 sps:$4 sm:$0xff]  }
 0x1fc   :  { %3781 = vmatprep.subr.bf16.mxu0 %v6460_v62  ;;  %v7016_v62 = vld [vmem:[%s10119_s4 + $0x24] ss:$16 sps:$4 sm:$0xff]  }
 0x1fd   :  { %3821 = vmatpush2.bf16.msra.mxu1 %v6595_v61  ;;  %v7011_v61 = vld [vmem:[%s10119_s4 + $0x240] ss:$16 sps:$4 sm:$0xff]  }
 0x1fe   :  { %3822 = vmatprep.subr.bf16.mxu1 %v6588_v63  ;;  %v7019_v63 = vld [vmem:[%s10119_s4 + $0x224] ss:$16 sps:$4 sm:$0xff]  }
 0x1ff   :  { %3782 = vmatpush2.bf16.msra.mxu0 %v6459_v2  ;;  %v7020_v2 = vld [vmem:[%s10119_s4] ss:$16 sps:$4 sm:$0xff]  }
 0x200   :  { %3783 = vmatprep.subr.bf16.mxu0 %v6452_v4  ;;  %v7028_v4 = vld [vmem:[%s10119_s4 + $0x1e4] ss:$16 sps:$4 sm:$0xff]  }
 0x201   :  { %3823 = vmatpush2.bf16.msra.mxu1 %v6587_v3  ;;  %v7023_v3 = vld [vmem:[%s10119_s4 + $0x200] ss:$16 sps:$4 sm:$0xff]  }
 0x202   :  { %3824 = vmatprep.subr.bf16.mxu1 %v6580_v6  ;;  %v7031_v6 = vld [vmem:[%s10119_s4 + $0x3e4] ss:$16 sps:$4 sm:$0xff]  }
 0x203   :  { %3784 = vmatpush2.bf16.msra.mxu0 %v6451_v26  ;;  %v7037_v26 = vld [vmem:[%s10119_s4 + $0x3c4] ss:$16 sps:$4 sm:$0xff]  }
 0x204   :  { %5425 = vmatprep.subr.bf16.mxu0 %v6980_v31  ;;  %v7043_v31 = vld [vmem:[%s10119_s4 + $0x3a4] ss:$16 sps:$4 sm:$0xff]  }
 0x205   :  { %3825 = vmatpush2.bf16.msra.mxu1 %v6579_v12  ;;  %v7040_v12 = vld [vmem:[%s10119_s4 + $0x1a4] ss:$16 sps:$4 sm:$0xff]  }
 0x206   :  { %5466 = vmatprep.subr.bf16.mxu1 %v6983_v29  ;;  %v3541_v37 = vpop.f32.mrf.mxu0  ;;  %3786 = vmatmul.mubr.bf16.vlgmr.msra.gmra.mxu0 %v7899_v36  ;;  %v6987_v36 = vld [vmem:[%s10119_s4 + $0x2c0] ss:$16 sps:$4 sm:$0xff]  }
 0x207   :  { %v3542_v28 = vadd.f32 %v3541_v37, %v570_v18  ;;  %5426 = vmatpush1.bf16.msra.mxu0 %v6978_v53  ;;  %5457 = vmatprep.mubr.bf16.mxu0 %v9139_v54  ;;  %v7038_v29 = vld [vmem:[%s10119_s4 + $0x1a0] ss:$16 sps:$4 sm:$0xff]   ;;  %v7049_v18 = vld [vmem:[%s10119_s4 + $0x384] ss:$16 sps:$4 sm:$0xff]  }
 0x208   :  { %v3582_v30 = vpop.f32.mrf.mxu1  ;;  %3827 = vmatmul.mubr.bf16.vlgmr.msra.gmra.mxu1 %v7909_v39  ;;  %v9152_v59 = vpop.f32.mrf.mxu0  ;;  %5427 = vmatprep.subr.bf16.mxu0 %v6986_v25  ;;  %v7044_v53 = vld [vmem:[%s10119_s4 + $0x180] ss:$16 sps:$4 sm:$0xff]   ;;  %v7052_v25 = vld [vmem:[%s10119_s4 + $0x164] ss:$16 sps:$4 sm:$0xff]  }
 0x209   :  { %5467 = vmatpush1.bf16.msra.mxu1 %v6981_v22  ;;  %v9160_v33 = vadd.f32 %v3582_v30, %v3542_v28  ;;  %5498 = vmatprep.mubr.bf16.mxu1 %v9145_v27  ;;  %v7047_v22 = vld [vmem:[%s10119_s4 + $0x380] ss:$16 sps:$4 sm:$0xff]   ;;  %v7055_v37 = vld [vmem:[%s10119_s4 + $0x364] ss:$16 sps:$4 sm:$0xff]  }
 0x20a   :  { %v9163_v39 = vpop.f32.mrf.mxu1  ;;  %v3545_v35 = vpop.f32.mrf.mxu0  ;;  %5468 = vmatprep.subr.bf16.mxu1 %v6989_v58  ;;  %v7050_v58 = vld [vmem:[%s10119_s4 + $0x160] ss:$16 sps:$4 sm:$0xff]   ;;  %v7058_v30 = vld [vmem:[%s10119_s4 + $0x144] ss:$16 sps:$4 sm:$0xff]  }
 0x20b   :  { %5428 = vmatpush1.bf16.msra.mxu0 %v6984_v45  ;;  %v7053_v28 = vld [vmem:[%s10119_s4 + $0x360] ss:$16 sps:$4 sm:$0xff]   ;;  %v7061_v45 = vld [vmem:[%s10119_s4 + $0x344] ss:$16 sps:$4 sm:$0xff]  }
 0x20c   :  { %v3586_v38 = vpop.f32.mrf.mxu1  ;;  %v3546_v41 = vpop.f32.mrf.mxu0  ;;  %5429 = vmatprep.subr.bf16.mxu0 %v6992_v32  ;;  %v7059_v32 = vld [vmem:[%s10119_s4 + $0x340] ss:$16 sps:$4 sm:$0xff]   ;;  %v7067_v35 = vld [vmem:[%s10119_s4 + $0x324] ss:$16 sps:$4 sm:$0xff]  }
 0x20d   :  { %5469 = vmatpush1.bf16.msra.mxu1 %v6987_v36  ;;  %v7056_v36 = vld [vmem:[%s10119_s4 + $0x140] ss:$16 sps:$4 sm:$0xff]   ;;  %v573_v38 = vsub.s32 5, %v8279_v60  ;;  %v3835_v41 = vmax.f32 %v8533_v23, 0.0  ;;  %v7073_v23 = vld [vmem:[%s10119_s4 + $0x304] ss:$16 sps:$4 sm:$0xff]  }
 0x20e   :  { %v3587_v44 = vpop.f32.mrf.mxu1  ;;  %5470 = vmatprep.subr.bf16.mxu1 %v6995_v34  ;;  %v7064_v34 = vld [vmem:[%s10119_s4 + $0x124] ss:$16 sps:$4 sm:$0xff]  }
 0x20f   :  { %5430 = vmatpush1.bf16.msra.mxu0 %v6990_v40  ;;  %v7062_v40 = vld [vmem:[%s10119_s4 + $0x120] ss:$16 sps:$4 sm:$0xff]  }
 0x210   :  { %5431 = vmatprep.subr.bf16.mxu0 %v6998_v43  ;;  %v7070_v43 = vld [vmem:[%s10119_s4 + $0x104] ss:$16 sps:$4 sm:$0xff]  }
 0x211   :  { %5471 = vmatpush1.bf16.msra.mxu1 %v6993_v42  ;;  %v7065_v42 = vld [vmem:[%s10119_s4 + $0x320] ss:$16 sps:$4 sm:$0xff]  }
 0x212   :  { %5472 = vmatprep.subr.bf16.mxu1 %v7001_v21  ;;  %v3843_v44 = vld [vmem:[%s10120_s3] sm:$0xff]  ;;  %v3837_v21 = vmax.f32 %v8954_v13, 0.0 }
 0x213   :  { %5432 = vmatpush1.bf16.msra.mxu0 %v6996_v47  ;;  %v3845_v47 = vld [vmem:[%s10120_s3 + $0x10] sm:$0xff] }
 0x214   :  { %5433 = vmatprep.subr.bf16.mxu0 %v7004_v49  ;;  %v7068_v49 = vld [vmem:[%s10119_s4 + $0x100] ss:$16 sps:$4 sm:$0xff]  }
 0x215   :  { %5473 = vmatpush1.bf16.msra.mxu1 %v6999_v48  ;;  %v574_v48 = vrot.slane %v9127_v17, %v573_v38  ;;  %v7071_v13 = vld [vmem:[%s10119_s4 + $0x300] ss:$16 sps:$4 sm:$0xff]   ;;  %v7094_v38 = vld [vmem:[%s10119_s4 + $0x424] ss:$16 sps:$4 sm:$0xff]  }
 0x216   :  { %5474 = vmatprep.subr.bf16.mxu1 %v7007_v50  ;;  %v3851_v50 = vmul.f32 %v3843_v44, %v3835_v41  ;;  %v7172_v41 = vld [vmem:[%s10119_s4 + $0x624] ss:$16 sps:$4 sm:$0xff]   ;;  %v7170_v44 = vld [vmem:[%s10119_s4 + $0x620] ss:$16 sps:$4 sm:$0xff]  }
 0x217   :  { %5434 = vmatpush1.bf16.msra.mxu0 %v7002_v51  ;;  %v7076_v51 = vld [vmem:[%s10119_s4 + $0x4e4] ss:$16 sps:$4 sm:$0xff]  }
 0x218   :  { %5435 = vmatprep.subr.bf16.mxu0 %v7010_v55  ;;  %v7136_v55 = vld [vmem:[%s10119_s4 + $0x6e4] ss:$16 sps:$4 sm:$0xff]  }
 0x219   :  { %5475 = vmatpush1.bf16.msra.mxu1 %v7005_v52  ;;  %v3853_v52 = vmul.f32 %v3845_v47, %v3837_v21  ;;  %v7178_v21 = vld [vmem:[%s10119_s4 + $0x604] ss:$16 sps:$4 sm:$0xff]  }
 0x21a   :  { %5476 = vmatprep.subr.bf16.mxu1 %v7013_v56  ;;  %v3544_v56 = vadd.f32 %v9152_v59, %v574_v48  ;;  %v7142_v59 = vld [vmem:[%s10119_s4 + $0x6c4] ss:$16 sps:$4 sm:$0xff]   ;;  %v7176_v48 = vld [vmem:[%s10119_s4 + $0x600] ss:$16 sps:$4 sm:$0xff]  }
 0x21b   :  { %5436 = vmatpush1.bf16.msra.mxu0 %v7008_v57  ;;  %v7074_v57 = vld [vmem:[%s10119_s4 + $0x4e0] ss:$16 sps:$4 sm:$0xff]   ;;  %v7100_v47 = vld [vmem:[%s10119_s4 + $0x5e4] ss:$16 sps:$4 sm:$0xff]  }
 0x21c   :  { %5437 = vmatprep.subr.bf16.mxu0 %v7016_v62  ;;  %v7079_v62 = vld [vmem:[%s10119_s4 + $0x4c4] ss:$16 sps:$4 sm:$0xff]  }
 0x21d   :  { %5477 = vmatpush1.bf16.msra.mxu1 %v7011_v61  ;;  %v9350_v61 = vpack.c.bf16 %v3851_v50, %v3851_v50  ;;  %v7098_v50 = vld [vmem:[%s10119_s4 + $0x5e0] ss:$16 sps:$4 sm:$0xff]  }
 0x21e   :  { %5478 = vmatprep.subr.bf16.mxu1 %v7019_v63  ;;  %v7134_v63 = vld [vmem:[%s10119_s4 + $0x6e0] ss:$16 sps:$4 sm:$0xff]  }
 0x21f   :  { %5438 = vmatpush1.bf16.msra.mxu0 %v7014_v0  ;;  %v9358_v0 = vpack.c.bf16 %v3853_v52, %v3853_v52  ;;  %v7190_v52 = vld [vmem:[%s10119_s4 + $0x7c4] ss:$16 sps:$4 sm:$0xff]  }
 0x220   :  { %5439 = vmatprep.subr.bf16.mxu0 %v7022_v16  ;;  %v3585_v16 = vadd.f32 %v9163_v39, %v3544_v56  ;;  %v7140_v39 = vld [vmem:[%s10119_s4 + $0x6c0] ss:$16 sps:$4 sm:$0xff]   ;;  %v7106_v56 = vld [vmem:[%s10119_s4 + $0x5a4] ss:$16 sps:$4 sm:$0xff]  }
 0x221   :  { %5479 = vmatpush1.bf16.msra.mxu1 %v7017_v24 }
 0x222   :  { %5480 = vmatprep.subr.bf16.mxu1 %v7025_v20 }
 0x223   :  { %5440 = vmatpush1.bf16.msra.mxu0 %v7020_v2  ;;  %v7077_v2 = vld [vmem:[%s10119_s4 + $0x4c0] ss:$16 sps:$4 sm:$0xff]  }
 0x224   :  { %5441 = vmatprep.subr.bf16.mxu0 %v7028_v4  ;;  %v7082_v4 = vld [vmem:[%s10119_s4 + $0x4a4] ss:$16 sps:$4 sm:$0xff]  }
 0x225   :  { %5481 = vmatpush1.bf16.msra.mxu1 %v7023_v3 }
 0x226   :  { %5482 = vmatprep.subr.bf16.mxu1 %v7031_v6 }
 0x227   :  { %5442 = vmatpush2.bf16.msra.mxu0 %v7026_v7 }
 0x228   :  { %5443 = vmatprep.subr.bf16.mxu0 %v7034_v9 }
 0x229   :  { %5483 = vmatpush2.bf16.msra.mxu1 %v7029_v8  ;;  %v7148_v8 = vld [vmem:[%s10119_s4 + $0x6a4] ss:$16 sps:$4 sm:$0xff]  }
 0x22a   :  { %5484 = vmatprep.subr.bf16.mxu1 %v7037_v26 }
 0x22b   :  { %5444 = vmatpush2.bf16.msra.mxu0 %v7032_v11 }
 0x22c   :  { %5445 = vmatprep.subr.bf16.mxu0 %v7040_v12  ;;  %v3848_v12 = vld [vmem:[%s10120_s3 + $0x28] sm:$0xff] }
 0x22d   :  { %5485 = vmatpush2.bf16.msra.mxu1 %v7035_v1  ;;  %v7080_v1 = vld [vmem:[%s10119_s4 + $0x4a0] ss:$16 sps:$4 sm:$0xff]  }
 0x22e   :  { %5486 = vmatprep.subr.bf16.mxu1 %v7043_v31 }
 0x22f   :  { %5446 = vmatpush2.bf16.msra.mxu0 %v7038_v29  ;;  %v7085_v29 = vld [vmem:[%s10119_s4 + $0x484] ss:$16 sps:$4 sm:$0xff]  }
 0x230   :  { %5447 = vmatprep.subr.bf16.mxu0 %v7046_v15 }
 0x231   :  { %5487 = vmatpush2.bf16.msra.mxu1 %v7041_v14  ;;  %v7146_v14 = vld [vmem:[%s10119_s4 + $0x6a0] ss:$16 sps:$4 sm:$0xff]  }
 0x232   :  { %5488 = vmatprep.subr.bf16.mxu1 %v7049_v18 }
 0x233   :  { %5448 = vmatpush2.bf16.msra.mxu0 %v7044_v53  ;;  %v7154_v53 = vld [vmem:[%s10119_s4 + $0x684] ss:$16 sps:$4 sm:$0xff]  }
 0x234   :  { %5449 = vmatprep.subr.bf16.mxu0 %v7052_v25  ;;  %v7083_v25 = vld [vmem:[%s10119_s4 + $0x480] ss:$16 sps:$4 sm:$0xff]  }
 0x235   :  { %5489 = vmatpush2.bf16.msra.mxu1 %v7047_v22 }
 0x236   :  { %5490 = vmatprep.subr.bf16.mxu1 %v7055_v37  ;;  %v7088_v37 = vld [vmem:[%s10119_s4 + $0x464] ss:$16 sps:$4 sm:$0xff]  }
 0x237   :  { %5450 = vmatpush2.bf16.msra.mxu0 %v7050_v58  ;;  %v7152_v58 = vld [vmem:[%s10119_s4 + $0x680] ss:$16 sps:$4 sm:$0xff]  }
 0x238   :  { %5451 = vmatprep.subr.bf16.mxu0 %v7058_v30  ;;  %v7160_v30 = vld [vmem:[%s10119_s4 + $0x664] ss:$16 sps:$4 sm:$0xff]  }
 0x239   :  { %5491 = vmatpush2.bf16.msra.mxu1 %v7053_v28 }
 0x23a   :  { %5492 = vmatprep.subr.bf16.mxu1 %v7061_v45  ;;  %v7086_v45 = vld [vmem:[%s10119_s4 + $0x460] ss:$16 sps:$4 sm:$0xff]  }
 0x23b   :  { %5452 = vmatpush2.bf16.msra.mxu0 %v7056_v36  ;;  %v7091_v36 = vld [vmem:[%s10119_s4 + $0x444] ss:$16 sps:$4 sm:$0xff]  }
 0x23c   :  { %5453 = vmatprep.subr.bf16.mxu0 %v7064_v34  ;;  %v7166_v34 = vld [vmem:[%s10119_s4 + $0x644] ss:$16 sps:$4 sm:$0xff]  }
 0x23d   :  { %5493 = vmatpush2.bf16.msra.mxu1 %v7059_v32  ;;  %v7158_v32 = vld [vmem:[%s10119_s4 + $0x660] ss:$16 sps:$4 sm:$0xff]  }
 0x23e   :  { %5494 = vmatprep.subr.bf16.mxu1 %v7067_v35  ;;  %v7089_v35 = vld [vmem:[%s10119_s4 + $0x440] ss:$16 sps:$4 sm:$0xff]  }
 0x23f   :  { %5454 = vmatpush2.bf16.msra.mxu0 %v7062_v40  ;;  %v7164_v40 = vld [vmem:[%s10119_s4 + $0x640] ss:$16 sps:$4 sm:$0xff]  }
 0x240   :  { %5455 = vmatprep.subr.bf16.mxu0 %v7070_v43  ;;  %v7097_v43 = vld [vmem:[%s10119_s4 + $0x404] ss:$16 sps:$4 sm:$0xff]  }
 0x241   :  { %5495 = vmatpush2.bf16.msra.mxu1 %v7065_v42  ;;  %v7092_v42 = vld [vmem:[%s10119_s4 + $0x420] ss:$16 sps:$4 sm:$0xff]  }
 0x242   :  { %5496 = vmatprep.subr.bf16.mxu1 %v7073_v23  ;;  %v7095_v23 = vld [vmem:[%s10119_s4 + $0x400] ss:$16 sps:$4 sm:$0xff]  }
 0x243   :  { %5456 = vmatpush2.bf16.msra.mxu0 %v7068_v49  ;;  %v7184_v49 = vld [vmem:[%s10119_s4 + $0x7e4] ss:$16 sps:$4 sm:$0xff]  }
 0x244   :  { %5507 = vmatprep.subr.bf16.mxu0 %v7076_v51  ;;  %v7182_v51 = vld [vmem:[%s10119_s4 + $0x7e0] ss:$16 sps:$4 sm:$0xff]  }
 0x245   :  { %5497 = vmatpush2.bf16.msra.mxu1 %v7071_v13  ;;  %v7103_v13 = vld [vmem:[%s10119_s4 + $0x5c4] ss:$16 sps:$4 sm:$0xff]  }
 0x246   :  { %5548 = vmatprep.subr.bf16.mxu1 %v7136_v55  ;;  %v9363_v24 = vpop.f32.mrf.mxu0  ;;  %5458 = vmatmul.mubr.bf16.vlgmr.msra.gmra.mxu0 %v9350_v61  ;;  %v7101_v55 = vld [vmem:[%s10119_s4 + $0x5c0] ss:$16 sps:$4 sm:$0xff]  }
 0x247   :  { %5508 = vmatpush1.bf16.msra.mxu0 %v7074_v57  ;;  %v7188_v57 = vld [vmem:[%s10119_s4 + $0x7c0] ss:$16 sps:$4 sm:$0xff]  }
 0x248   :  { %v9367_v20 = vpop.f32.mrf.mxu1  ;;  %5499 = vmatmul.mubr.bf16.vlgmr.msra.gmra.mxu1 %v9358_v0  ;;  %v3625_v3 = vpop.f32.mrf.mxu0  ;;  %5509 = vmatprep.subr.bf16.mxu0 %v7079_v62  ;;  %v7196_v62 = vld [vmem:[%s10119_s4 + $0x7a4] ss:$16 sps:$4 sm:$0xff]  }
 0x249   :  { %5549 = vmatpush1.bf16.msra.mxu1 %v7134_v63  ;;  %v3626_v6 = vadd.f32 %v3625_v3, %v3585_v16  ;;  %v7104_v63 = vld [vmem:[%s10119_s4 + $0x5a0] ss:$16 sps:$4 sm:$0xff]  }
 0x24a   :  { %v3666_v7 = vpop.f32.mrf.mxu1  ;;  %5550 = vmatprep.subr.bf16.mxu1 %v7142_v59  ;;  %v3627_v9 = vpop.f32.mrf.mxu0  ;;  %v7109_v59 = vld [vmem:[%s10119_s4 + $0x584] ss:$16 sps:$4 sm:$0xff]   ;;  %v7194_v16 = vld [vmem:[%s10119_s4 + $0x7a0] ss:$16 sps:$4 sm:$0xff]  }
 0x24b   :  { %v3667_v26 = vadd.f32 %v3666_v7, %v3626_v6  ;;  %5510 = vmatpush1.bf16.msra.mxu0 %v7077_v2  ;;  %v7202_v2 = vld [vmem:[%s10119_s4 + $0x784] ss:$16 sps:$4 sm:$0xff]   ;;  %v7107_v3 = vld [vmem:[%s10119_s4 + $0x580] ss:$16 sps:$4 sm:$0xff]  }
 0x24c   :  { %v3668_v11 = vpop.f32.mrf.mxu1  ;;  %v3628_v31 = vpop.f32.mrf.mxu0  ;;  %5511 = vmatprep.subr.bf16.mxu0 %v7082_v4  ;;  %v7112_v4 = vld [vmem:[%s10119_s4 + $0x564] ss:$16 sps:$4 sm:$0xff]   ;;  %v7110_v7 = vld [vmem:[%s10119_s4 + $0x560] ss:$16 sps:$4 sm:$0xff]  }
 0x24d   :  { %5551 = vmatpush1.bf16.msra.mxu1 %v7140_v39  ;;  %v3840_v15 = vmax.f32 %v3667_v26, 0.0  ;;  %v7200_v39 = vld [vmem:[%s10119_s4 + $0x780] ss:$16 sps:$4 sm:$0xff]   ;;  %v7208_v6 = vld [vmem:[%s10119_s4 + $0x764] ss:$16 sps:$4 sm:$0xff]  }
 0x24e   :  { %v3669_v18 = vpop.f32.mrf.mxu1  ;;  %5552 = vmatprep.subr.bf16.mxu1 %v7148_v8  ;;  %v3624_v8 = vadd.f32 %v9363_v24, %v9160_v33  ;;  %v7115_v9 = vld [vmem:[%s10119_s4 + $0x544] ss:$16 sps:$4 sm:$0xff]   ;;  %v7206_v26 = vld [vmem:[%s10119_s4 + $0x760] ss:$16 sps:$4 sm:$0xff]  }
 0x24f   :  { %v3856_v22 = vmul.f32 %v3848_v12, %v3840_v15  ;;  %5512 = vmatpush1.bf16.msra.mxu0 %v7080_v1  ;;  %v7214_v11 = vld [vmem:[%s10119_s4 + $0x744] ss:$16 sps:$4 sm:$0xff]   ;;  %v7113_v33 = vld [vmem:[%s10119_s4 + $0x540] ss:$16 sps:$4 sm:$0xff]  }
 0x250   :  { %5513 = vmatprep.subr.bf16.mxu0 %v7085_v29  ;;  %v3665_v24 = vadd.f32 %v9367_v20, %v3624_v8  ;;  %v7118_v1 = vld [vmem:[%s10119_s4 + $0x524] ss:$16 sps:$4 sm:$0xff]   ;;  %v7212_v12 = vld [vmem:[%s10119_s4 + $0x740] ss:$16 sps:$4 sm:$0xff]   ;;  %v7193_v8 = vld [vmem:[%s10119_s4 + $0x14c] ss:$16 sps:$4 sm:$0xff]  }
 0x251   :  { %5553 = vmatpush1.bf16.msra.mxu1 %v7146_v14  ;;  %v9406_v28 = vpack.c.bf16 %v3856_v22, %v3856_v22  ;;  %v7220_v31 = vld [vmem:[%s10119_s4 + $0x724] ss:$16 sps:$4 sm:$0xff]   ;;  %v7116_v20 = vld [vmem:[%s10119_s4 + $0x520] ss:$16 sps:$4 sm:$0xff]  }
 0x252   :  { %5554 = vmatprep.subr.bf16.mxu1 %v7154_v53  ;;  %v3839_v29 = vmax.f32 %v3665_v24, 0.0  ;;  %v7121_v14 = vld [vmem:[%s10119_s4 + $0x504] ss:$16 sps:$4 sm:$0xff]   ;;  %v7218_v15 = vld [vmem:[%s10119_s4 + $0x720] ss:$16 sps:$4 sm:$0xff]  }
 0x253   :  { %5514 = vmatpush1.bf16.msra.mxu0 %v7083_v25  ;;  %5539 = vmatprep.mubr.bf16.mxu0 %v9406_v28  ;;  %v3847_v18 = vld [vmem:[%s10120_s3 + $0x20] sm:$0xff]  ;;  %v7197_v24 = vld [vmem:[%s10119_s4 + $0x128] ss:$16 sps:$4 sm:$0xff]  }
 0x254   :  { %5515 = vmatprep.subr.bf16.mxu0 %v7088_v37  ;;  %v7226_v53 = vld [vmem:[%s10119_s4 + $0x704] ss:$16 sps:$4 sm:$0xff]   ;;  %v7119_v22 = vld [vmem:[%s10119_s4 + $0x500] ss:$16 sps:$4 sm:$0xff]   ;;  %v3855_v25 = vmul.f32 %v3847_v18, %v3839_v29  ;;  %v7124_v37 = vld [vmem:[%s10119_s4 + $0xec] ss:$16 sps:$4 sm:$0xff]  }
 0x255   :  { %5555 = vmatpush1.bf16.msra.mxu1 %v7152_v58  ;;  %v7224_v58 = vld [vmem:[%s10119_s4 + $0x700] ss:$16 sps:$4 sm:$0xff]   ;;  %v7211_v29 = vld [vmem:[%s10119_s4 + $0x4ec] ss:$16 sps:$4 sm:$0xff]   ;;  %v7209_v18 = vld [vmem:[%s10119_s4 + $0x4e8] ss:$16 sps:$4 sm:$0xff]  }
 0x256   :  { %5556 = vmatprep.subr.bf16.mxu1 %v7160_v30  ;;  %v7232_v30 = vld [vmem:[%s10119_s4 + $0x2ec] ss:$16 sps:$4 sm:$0xff]  }
 0x257   :  { %5516 = vmatpush1.bf16.msra.mxu0 %v7086_v45  ;;  %v7122_v45 = vld [vmem:[%s10119_s4 + $0xe8] ss:$16 sps:$4 sm:$0xff]  }
 0x258   :  { %5517 = vmatprep.subr.bf16.mxu0 %v7091_v36  ;;  %v9565_v36 = vpack.c.bf16 %v3855_v25, %v3855_v25 }
 0x259   :  { %5557 = vmatpush1.bf16.msra.mxu1 %v7158_v32  ;;  %v7127_v32 = vld [vmem:[%s10119_s4 + $0xcc] ss:$16 sps:$4 sm:$0xff]  }
 0x25a   :  { %5558 = vmatprep.subr.bf16.mxu1 %v7166_v34 }
 0x25b   :  { %5518 = vmatpush1.bf16.msra.mxu0 %v7089_v35 }
 0x25c   :  { %5519 = vmatprep.subr.bf16.mxu0 %v7094_v38  ;;  %v7125_v38 = vld [vmem:[%s10119_s4 + $0xc8] ss:$16 sps:$4 sm:$0xff]  }
 0x25d   :  { %5559 = vmatpush1.bf16.msra.mxu1 %v7164_v40 }
 0x25e   :  { %5560 = vmatprep.subr.bf16.mxu1 %v7172_v41  ;;  %v7130_v41 = vld [vmem:[%s10119_s4 + $0xac] ss:$16 sps:$4 sm:$0xff]  }
 0x25f   :  { %5520 = vmatpush1.bf16.msra.mxu0 %v7092_v42 }
 0x260   :  { %5521 = vmatprep.subr.bf16.mxu0 %v7097_v43 }
 0x261   :  { %5561 = vmatpush1.bf16.msra.mxu1 %v7170_v44 }
 0x262   :  { %5562 = vmatprep.subr.bf16.mxu1 %v7178_v21 }
 0x263   :  { %5522 = vmatpush1.bf16.msra.mxu0 %v7095_v23  ;;  %v7133_v23 = vld [vmem:[%s10119_s4 + $0x8c] ss:$16 sps:$4 sm:$0xff]  }
 0x264   :  { %5523 = vmatprep.subr.bf16.mxu0 %v7100_v47 }
 0x265   :  { %5563 = vmatpush1.bf16.msra.mxu1 %v7176_v48  ;;  %v7131_v48 = vld [vmem:[%s10119_s4 + $0x88] ss:$16 sps:$4 sm:$0xff]  }
 0x266   :  { %5564 = vmatprep.subr.bf16.mxu1 %v7184_v49  ;;  %v7139_v49 = vld [vmem:[%s10119_s4 + $0x6c] ss:$16 sps:$4 sm:$0xff]  }
 0x267   :  { %5524 = vmatpush2.bf16.msra.mxu0 %v7098_v50  ;;  %v7137_v50 = vld [vmem:[%s10119_s4 + $0x68] ss:$16 sps:$4 sm:$0xff]  }
 0x268   :  { %5525 = vmatprep.subr.bf16.mxu0 %v7103_v13  ;;  %v7145_v13 = vld [vmem:[%s10119_s4 + $0x4c] ss:$16 sps:$4 sm:$0xff]  }
 0x269   :  { %5565 = vmatpush2.bf16.msra.mxu1 %v7182_v51  ;;  %v7143_v51 = vld [vmem:[%s10119_s4 + $0x48] ss:$16 sps:$4 sm:$0xff]  }
 0x26a   :  { %5566 = vmatprep.subr.bf16.mxu1 %v7190_v52  ;;  %v7151_v52 = vld [vmem:[%s10119_s4 + $0x2c] ss:$16 sps:$4 sm:$0xff]  }
 0x26b   :  { %5526 = vmatpush2.bf16.msra.mxu0 %v7101_v55  ;;  %v7149_v55 = vld [vmem:[%s10119_s4 + $0x28] ss:$16 sps:$4 sm:$0xff]  }
 0x26c   :  { %5527 = vmatprep.subr.bf16.mxu0 %v7106_v56  ;;  %v7157_v56 = vld [vmem:[%s10119_s4 + $0xc] ss:$16 sps:$4 sm:$0xff]  }
 0x26d   :  { %5567 = vmatpush2.bf16.msra.mxu1 %v7188_v57  ;;  %v7155_v57 = vld [vmem:[%s10119_s4 + $0x8] ss:$16 sps:$4 sm:$0xff]  }
 0x26e   :  { %5568 = vmatprep.subr.bf16.mxu1 %v7196_v62  ;;  %v7163_v62 = vld [vmem:[%s10119_s4 + $0x1ec] ss:$16 sps:$4 sm:$0xff]  }
 0x26f   :  { %5528 = vmatpush2.bf16.msra.mxu0 %v7104_v63  ;;  %v7161_v63 = vld [vmem:[%s10119_s4 + $0x1e8] ss:$16 sps:$4 sm:$0xff]  }
 0x270   :  { %5529 = vmatprep.subr.bf16.mxu0 %v7109_v59  ;;  %v7169_v59 = vld [vmem:[%s10119_s4 + $0x1cc] ss:$16 sps:$4 sm:$0xff]  }
 0x271   :  { %5569 = vmatpush2.bf16.msra.mxu1 %v7194_v16  ;;  %v7167_v16 = vld [vmem:[%s10119_s4 + $0x1c8] ss:$16 sps:$4 sm:$0xff]  }
 0x272   :  { %5570 = vmatprep.subr.bf16.mxu1 %v7202_v2  ;;  %v7175_v2 = vld [vmem:[%s10119_s4 + $0x1ac] ss:$16 sps:$4 sm:$0xff]  }
 0x273   :  { %5530 = vmatpush2.bf16.msra.mxu0 %v7107_v3  ;;  %v7173_v3 = vld [vmem:[%s10119_s4 + $0x1a8] ss:$16 sps:$4 sm:$0xff]  }
 0x274   :  { %5531 = vmatprep.subr.bf16.mxu0 %v7112_v4  ;;  %v7181_v4 = vld [vmem:[%s10119_s4 + $0x18c] ss:$16 sps:$4 sm:$0xff]  }
 0x275   :  { %5571 = vmatpush2.bf16.msra.mxu1 %v7200_v39  ;;  %v7179_v39 = vld [vmem:[%s10119_s4 + $0x188] ss:$16 sps:$4 sm:$0xff]  }
 0x276   :  { %5572 = vmatprep.subr.bf16.mxu1 %v7208_v6  ;;  %v7187_v6 = vld [vmem:[%s10119_s4 + $0x16c] ss:$16 sps:$4 sm:$0xff]  }
 0x277   :  { %5532 = vmatpush2.bf16.msra.mxu0 %v7110_v7  ;;  %v7185_v7 = vld [vmem:[%s10119_s4 + $0x168] ss:$16 sps:$4 sm:$0xff]  }
 0x278   :  { %5533 = vmatprep.subr.bf16.mxu0 %v7115_v9  ;;  %v7191_v9 = vld [vmem:[%s10119_s4 + $0x148] ss:$16 sps:$4 sm:$0xff]  }
 0x279   :  { %5573 = vmatpush2.bf16.msra.mxu1 %v7206_v26  ;;  %v7199_v26 = vld [vmem:[%s10119_s4 + $0x12c] ss:$16 sps:$4 sm:$0xff]  }
 0x27a   :  { %5574 = vmatprep.subr.bf16.mxu1 %v7214_v11  ;;  %v577_v11 = vsub.s32 6, %v8279_v60 }
 0x27b   :  { %5534 = vmatpush2.bf16.msra.mxu0 %v7113_v33  ;;  %v581_v33 = vsub.s32 7, %v8279_v60  ;;  %v5759_v60 = vld [vmem:[%s10123_s6 + $0x10] sm:$0xff] }
 0x27c   :  { %5535 = vmatprep.subr.bf16.mxu0 %v7118_v1  ;;  %v7205_v1 = vld [vmem:[%s10119_s4 + $0x10c] ss:$16 sps:$4 sm:$0xff]  }
 0x27d   :  { %5575 = vmatpush2.bf16.msra.mxu1 %v7212_v12  ;;  %v578_v12 = vrot.slane %v9127_v17, %v577_v11  ;;  %v7262_v11 = vld [vmem:[%s10119_s4 + $0x24c] ss:$16 sps:$4 sm:$0xff]  }
 0x27e   :  { %5576 = vmatprep.subr.bf16.mxu1 %v7220_v31  ;;  %v582_v31 = vrot.slane %v9127_v17, %v581_v33  ;;  %v7217_v17 = vld [vmem:[%s10119_s4 + $0x4cc] ss:$16 sps:$4 sm:$0xff]   ;;  %v7257_v33 = vld [vmem:[%s10119_s4 + $0x5e8] ss:$16 sps:$4 sm:$0xff]  }
 0x27f   :  { %5536 = vmatpush2.bf16.msra.mxu0 %v7116_v20  ;;  %v7203_v20 = vld [vmem:[%s10119_s4 + $0x108] ss:$16 sps:$4 sm:$0xff]  }
 0x280   :  { %5537 = vmatprep.subr.bf16.mxu0 %v7121_v14 }
 0x281   :  { %5577 = vmatpush2.bf16.msra.mxu1 %v7218_v15 }
 0x282   :  { %5578 = vmatprep.subr.bf16.mxu1 %v7226_v53 }
 0x283   :  { %5538 = vmatpush2.bf16.msra.mxu0 %v7119_v22 }
 0x284   :  { %5589 = vmatprep.subr.bf16.mxu0 %v7124_v37 }
 0x285   :  { %5579 = vmatpush2.bf16.msra.mxu1 %v7224_v58 }
 0x286   :  { %5630 = vmatprep.subr.bf16.mxu1 %v7232_v30  ;;  %v9570_v34 = vpop.f32.mrf.mxu0  ;;  %5540 = vmatmul.mubr.bf16.vlgmr.msra.gmra.mxu0 %v9565_v36  ;;  %v7215_v30 = vld [vmem:[%s10119_s4 + $0x4c8] ss:$16 sps:$4 sm:$0xff]  }
 0x287   :  { %5590 = vmatpush1.bf16.msra.mxu0 %v7122_v45  ;;  %5621 = vmatprep.mubr.bf16.mxu0 %v9139_v54  ;;  %v7128_v54 = vld [vmem:[%s10119_s4 + $0xa8] ss:$16 sps:$4 sm:$0xff]   ;;  %v3706_v14 = vadd.f32 %v9570_v34, %v578_v12  ;;  %v7268_v12 = vld [vmem:[%s10119_s4 + $0x22c] ss:$16 sps:$4 sm:$0xff]  }
 0x288   :  { %v9573_v35 = vpop.f32.mrf.mxu1  ;;  %v9579_v40 = vpop.f32.mrf.mxu0  ;;  %5591 = vmatprep.subr.bf16.mxu0 %v7127_v32  ;;  %v7223_v32 = vld [vmem:[%s10119_s4 + $0x4ac] ss:$16 sps:$4 sm:$0xff]  }
 0x289   :  { %v3708_v15 = vadd.f32 %v9579_v40, %v582_v31  ;;  %v3747_v53 = vadd.f32 %v9573_v35, %v3706_v14  ;;  %v7263_v31 = vld [vmem:[%s10119_s4 + $0x5c8] ss:$16 sps:$4 sm:$0xff]   ;;  %v7274_v14 = vld [vmem:[%s10119_s4 + $0x20c] ss:$16 sps:$4 sm:$0xff]  }
 0x28a   :  { %v9584_v42 = vpop.f32.mrf.mxu1  ;;  %v3709_v43 = vpop.f32.mrf.mxu0 }
 0x28b   :  { %5592 = vmatpush1.bf16.msra.mxu0 %v7125_v38  ;;  %v3749_v25 = vadd.f32 %v9584_v42, %v3708_v15  ;;  %v7221_v43 = vld [vmem:[%s10119_s4 + $0x4a8] ss:$16 sps:$4 sm:$0xff]  }
 0x28c   :  { %v3750_v44 = vpop.f32.mrf.mxu1  ;;  %v3710_v21 = vpop.f32.mrf.mxu0  ;;  %5593 = vmatprep.subr.bf16.mxu0 %v7130_v41  ;;  %v3849_v41 = vld [vmem:[%s10120_s3 + $0x30] sm:$0xff]  ;;  %v7269_v15 = vld [vmem:[%s10119_s4 + $0x5a8] ss:$16 sps:$4 sm:$0xff]  }
 0x28d   :  { %v3850_v44 = vld [vmem:[%s10120_s3 + $0x38] sm:$0xff] }
 0x28e   :  { %v3751_v47 = vpop.f32.mrf.mxu1  ;;  %v7229_v21 = vld [vmem:[%s10119_s4 + $0x48c] ss:$16 sps:$4 sm:$0xff]  }
 0x28f   :  { %5594 = vmatpush1.bf16.msra.mxu0 %v7128_v54 }
 0x290   :  { %5595 = vmatprep.subr.bf16.mxu0 %v7133_v23 }
 0x293   :  { %5596 = vmatpush1.bf16.msra.mxu0 %v7131_v48 }
 0x294   :  { %5597 = vmatprep.subr.bf16.mxu0 %v7139_v49 }
 0x297   :  { %5598 = vmatpush1.bf16.msra.mxu0 %v7137_v50  ;;  %v7227_v50 = vld [vmem:[%s10119_s4 + $0x488] ss:$16 sps:$4 sm:$0xff]  }
 0x298   :  { %5599 = vmatprep.subr.bf16.mxu0 %v7145_v13  ;;  %v7235_v13 = vld [vmem:[%s10119_s4 + $0x46c] ss:$16 sps:$4 sm:$0xff]  }
 0x29b   :  { %5600 = vmatpush1.bf16.msra.mxu0 %v7143_v51 }
 0x29c   :  { %5601 = vmatprep.subr.bf16.mxu0 %v7151_v52  ;;  %v7230_v52 = vld [vmem:[%s10119_s4 + $0x2e8] ss:$16 sps:$4 sm:$0xff]  }
 0x29f   :  { %5602 = vmatpush1.bf16.msra.mxu0 %v7149_v55 }
 0x2a0   :  { %5603 = vmatprep.subr.bf16.mxu0 %v7157_v56  ;;  %v7238_v56 = vld [vmem:[%s10119_s4 + $0x2cc] ss:$16 sps:$4 sm:$0xff]  }
 0x2a3   :  { %5604 = vmatpush1.bf16.msra.mxu0 %v7155_v57  ;;  %v7233_v57 = vld [vmem:[%s10119_s4 + $0x468] ss:$16 sps:$4 sm:$0xff]  }
 0x2a4   :  { %5605 = vmatprep.subr.bf16.mxu0 %v7163_v62  ;;  %v7236_v62 = vld [vmem:[%s10119_s4 + $0x2c8] ss:$16 sps:$4 sm:$0xff]  }
 0x2a7   :  { %5606 = vmatpush2.bf16.msra.mxu0 %v7161_v63  ;;  %v7241_v63 = vld [vmem:[%s10119_s4 + $0x44c] ss:$16 sps:$4 sm:$0xff]  }
 0x2a8   :  { %5607 = vmatprep.subr.bf16.mxu0 %v7169_v59  ;;  %v7239_v59 = vld [vmem:[%s10119_s4 + $0x448] ss:$16 sps:$4 sm:$0xff]  }
 0x2ab   :  { %5608 = vmatpush2.bf16.msra.mxu0 %v7167_v16  ;;  %v7244_v16 = vld [vmem:[%s10119_s4 + $0x2ac] ss:$16 sps:$4 sm:$0xff]  }
 0x2ac   :  { %5609 = vmatprep.subr.bf16.mxu0 %v7175_v2  ;;  %v7242_v2 = vld [vmem:[%s10119_s4 + $0x2a8] ss:$16 sps:$4 sm:$0xff]  }
 0x2af   :  { %5610 = vmatpush2.bf16.msra.mxu0 %v7173_v3  ;;  %v7247_v3 = vld [vmem:[%s10119_s4 + $0x42c] ss:$16 sps:$4 sm:$0xff]  }
 0x2b0   :  { %5611 = vmatprep.subr.bf16.mxu0 %v7181_v4  ;;  %v7245_v4 = vld [vmem:[%s10119_s4 + $0x428] ss:$16 sps:$4 sm:$0xff]  }
 0x2b3   :  { %5612 = vmatpush2.bf16.msra.mxu0 %v7179_v39  ;;  %v7253_v39 = vld [vmem:[%s10119_s4 + $0x40c] ss:$16 sps:$4 sm:$0xff]  }
 0x2b4   :  { %5613 = vmatprep.subr.bf16.mxu0 %v7187_v6  ;;  %v7248_v6 = vld [vmem:[%s10119_s4 + $0x288] ss:$16 sps:$4 sm:$0xff]  }
 0x2b7   :  { %5614 = vmatpush2.bf16.msra.mxu0 %v7185_v7  ;;  %v7256_v7 = vld [vmem:[%s10119_s4 + $0x26c] ss:$16 sps:$4 sm:$0xff]  }
 0x2b8   :  { %5615 = vmatprep.subr.bf16.mxu0 %v7193_v8  ;;  %v7251_v8 = vld [vmem:[%s10119_s4 + $0x408] ss:$16 sps:$4 sm:$0xff]  }
 0x2bb   :  { %5616 = vmatpush2.bf16.msra.mxu0 %v7191_v9  ;;  %v7259_v9 = vld [vmem:[%s10119_s4 + $0x5ec] ss:$16 sps:$4 sm:$0xff]  }
 0x2bc   :  { %5617 = vmatprep.subr.bf16.mxu0 %v7199_v26  ;;  %v7254_v26 = vld [vmem:[%s10119_s4 + $0x268] ss:$16 sps:$4 sm:$0xff]  }
 0x2bf   :  { %5618 = vmatpush2.bf16.msra.mxu0 %v7197_v24  ;;  %v7265_v24 = vld [vmem:[%s10119_s4 + $0x5cc] ss:$16 sps:$4 sm:$0xff]  }
 0x2c0   :  { %5619 = vmatprep.subr.bf16.mxu0 %v7205_v1  ;;  %v7260_v1 = vld [vmem:[%s10119_s4 + $0x248] ss:$16 sps:$4 sm:$0xff]  }
 0x2c3   :  { %5620 = vmatpush2.bf16.msra.mxu0 %v7203_v20  ;;  %v7271_v20 = vld [vmem:[%s10119_s4 + $0x5ac] ss:$16 sps:$4 sm:$0xff]  }
 0x2c4   :  { %5671 = vmatprep.subr.bf16.mxu0 %v7211_v29  ;;  %v7266_v29 = vld [vmem:[%s10119_s4 + $0x228] ss:$16 sps:$4 sm:$0xff]  }
 0x2c6   :  { %v3787_v22 = vpop.f32.mrf.mxu0  ;;  %5622 = vmatmul.mubr.bf16.vlgmr.msra.gmra.mxu0 %v9350_v61 }
 0x2c7   :  { %v3788_v37 = vadd.f32 %v3787_v22, %v3747_v53  ;;  %5672 = vmatpush1.bf16.msra.mxu0 %v7209_v18  ;;  %5703 = vmatprep.mubr.bf16.mxu0 %v9406_v28  ;;  %v7277_v18 = vld [vmem:[%s10119_s4 + $0x58c] ss:$16 sps:$4 sm:$0xff]   ;;  %v7275_v22 = vld [vmem:[%s10119_s4 + $0x588] ss:$16 sps:$4 sm:$0xff]  }
 0x2c8   :  { %v3828_v58 = vpop.f32.mrf.mxu1  ;;  %v3789_v45 = vpop.f32.mrf.mxu0  ;;  %5673 = vmatprep.subr.bf16.mxu0 %v7217_v17  ;;  %v7272_v17 = vld [vmem:[%s10119_s4 + $0x208] ss:$16 sps:$4 sm:$0xff]   ;;  %v7280_v53 = vld [vmem:[%s10119_s4 + $0x3ec] ss:$16 sps:$4 sm:$0xff]  }
 0x2c9   :  { %v3829_v34 = vadd.f32 %v3828_v58, %v3788_v37  ;;  %v3790_v35 = vadd.f32 %v3789_v45, %v3749_v25  ;;  %v7283_v25 = vld [vmem:[%s10119_s4 + $0x56c] ss:$16 sps:$4 sm:$0xff]   ;;  %v7278_v37 = vld [vmem:[%s10119_s4 + $0x3e8] ss:$16 sps:$4 sm:$0xff]  }
 0x2ca   :  { %v3830_v61 = vpop.f32.mrf.mxu1  ;;  %v3791_v38 = vpop.f32.mrf.mxu0  ;;  %v7286_v58 = vld [vmem:[%s10119_s4 + $0x3cc] ss:$16 sps:$4 sm:$0xff]  }
 0x2cb   :  { %v3841_v40 = vmax.f32 %v3829_v34, 0.0  ;;  %v3831_v28 = vadd.f32 %v3830_v61, %v3790_v35  ;;  %5674 = vmatpush1.bf16.msra.mxu0 %v7215_v30  ;;  %v7281_v30 = vld [vmem:[%s10119_s4 + $0x568] ss:$16 sps:$4 sm:$0xff]   ;;  %v7289_v45 = vld [vmem:[%s10119_s4 + $0x54c] ss:$16 sps:$4 sm:$0xff]  }
 0x2cc   :  { %v3832_v42 = vpop.f32.mrf.mxu1  ;;  %v3792_v54 = vpop.f32.mrf.mxu0  ;;  %5675 = vmatprep.subr.bf16.mxu0 %v7223_v32  ;;  %v7284_v32 = vld [vmem:[%s10119_s4 + $0x3c8] ss:$16 sps:$4 sm:$0xff]   ;;  %v7292_v34 = vld [vmem:[%s10119_s4 + $0x3ac] ss:$16 sps:$4 sm:$0xff]  }
 0x2cd   :  { %v3842_v23 = vmax.f32 %v3831_v28, 0.0  ;;  %v3857_v48 = vmul.f32 %v3849_v41, %v3841_v40  ;;  %v7287_v35 = vld [vmem:[%s10119_s4 + $0x548] ss:$16 sps:$4 sm:$0xff]   ;;  %v7295_v61 = vld [vmem:[%s10119_s4 + $0x52c] ss:$16 sps:$4 sm:$0xff]  }
 0x2ce   :  { %v3833_v47 = vpop.f32.mrf.mxu1  ;;  %v7290_v38 = vld [vmem:[%s10119_s4 + $0x3a8] ss:$16 sps:$4 sm:$0xff]   ;;  %v7298_v40 = vld [vmem:[%s10119_s4 + $0x38c] ss:$16 sps:$4 sm:$0xff]   ;;  %v9861_v54 = vld [vmem:[%s10122_s5] sm:$0xf] }
 0x2cf   :  { %v3858_v49 = vmul.f32 %v3850_v44, %v3842_v23  ;;  %5676 = vmatpush1.bf16.msra.mxu0 %v7221_v43  ;;  %v9715_v55 = vpack.c.bf16 %v3857_v48, %v3857_v48  ;;  %v7293_v41 = vld [vmem:[%s10119_s4 + $0x528] ss:$16 sps:$4 sm:$0xff]   ;;  %v7301_v28 = vld [vmem:[%s10119_s4 + $0x50c] ss:$16 sps:$4 sm:$0xff]   ;;  %v4128_v48 = vrot.slane %v9861_v54, %v553_v5 }
 0x2d0   :  { %5677 = vmatprep.subr.bf16.mxu0 %v7229_v21  ;;  %v7296_v42 = vld [vmem:[%s10119_s4 + $0x388] ss:$16 sps:$4 sm:$0xff]   ;;  %v7304_v43 = vld [vmem:[%s10119_s4 + $0x36c] ss:$16 sps:$4 sm:$0xff]  }
 0x2d1   :  { %v9710_v51 = vpack.c.bf16 %v3858_v49, %v3858_v49  ;;  %v7299_v44 = vld [vmem:[%s10119_s4 + $0x508] ss:$16 sps:$4 sm:$0xff]   ;;  %v7307_v47 = vld [vmem:[%s10119_s4 + $0x34c] ss:$16 sps:$4 sm:$0xff]  }
 0x2d2   :  { %v7362_v21 = vld [vmem:[%s10121_s7 + $0x78] sm:$0xff]  }
 0x2d3   :  { %5580 = vmatprep.mubr.bf16.mxu1 %v9710_v51  ;;  %5678 = vmatpush1.bf16.msra.mxu0 %v7227_v50  ;;  %v7302_v23 = vld [vmem:[%s10119_s4 + $0x368] ss:$16 sps:$4 sm:$0xff]   ;;  %v7364_v50 = vld [vmem:[%s10121_s7 + $0x70] sm:$0xff]   ;;  %v7310_v5 = vld [vmem:[%s10119_s4 + $0x32c] ss:$16 sps:$4 sm:$0xff]  }
 0x2d4   :  { %5581 = vmatmul.mubr.bf16.vlgmr.msra.gmra.mxu1 %v9715_v55  ;;  %5679 = vmatprep.subr.bf16.mxu0 %v7235_v13  ;;  %v7363_v49 = vld [vmem:[%s10121_s7 + $0x38] sm:$0xff]  }
 0x2d5   :  { %5631 = vmatpush1.bf16.msra.mxu1 %v7230_v52  ;;  %5662 = vmatprep.mubr.bf16.mxu1 %v9145_v27  ;;  %v7250_v27 = vld [vmem:[%s10119_s4 + $0x28c] ss:$16 sps:$4 sm:$0xff]   ;;  %v7305_v13 = vld [vmem:[%s10119_s4 + $0x348] ss:$16 sps:$4 sm:$0xff]   ;;  %v4132_v52 = vrot.slane %v9861_v54, %v557_v10 }
 0x2d6   :  { %5632 = vmatprep.subr.bf16.mxu1 %v7238_v56  ;;  %v7366_v10 = vld [vmem:[%s10121_s7 + $0x68] sm:$0xff]  }
 0x2d7   :  { %5680 = vmatpush1.bf16.msra.mxu0 %v7233_v57 }
 0x2d8   :  { %5681 = vmatprep.subr.bf16.mxu0 %v7241_v63  ;;  %v7365_v63 = vld [vmem:[%s10121_s7 + $0x30] sm:$0xff]  }
 0x2d9   :  { %5633 = vmatpush1.bf16.msra.mxu1 %v7236_v62 }
 0x2da   :  { %5634 = vmatprep.subr.bf16.mxu1 %v7244_v16 }
 0x2db   :  { %5682 = vmatpush1.bf16.msra.mxu0 %v7239_v59 }
 0x2dc   :  { %5683 = vmatprep.subr.bf16.mxu0 %v7247_v3  ;;  %v7308_v3 = vld [vmem:[%s10119_s4 + $0x328] ss:$16 sps:$4 sm:$0xff]  }
 0x2dd   :  { %5635 = vmatpush1.bf16.msra.mxu1 %v7242_v2 }
 0x2de   :  { %5636 = vmatprep.subr.bf16.mxu1 %v7250_v27 }
 0x2df   :  { %5684 = vmatpush1.bf16.msra.mxu0 %v7245_v4  ;;  %v7313_v4 = vld [vmem:[%s10119_s4 + $0x30c] ss:$16 sps:$4 sm:$0xff]  }
 0x2e0   :  { %5685 = vmatprep.subr.bf16.mxu0 %v7253_v39 }
 0x2e1   :  { %5637 = vmatpush1.bf16.msra.mxu1 %v7248_v6 }
 0x2e2   :  { %5638 = vmatprep.subr.bf16.mxu1 %v7256_v7  ;;  %v7367_v7 = vld [vmem:[%s10121_s7 + $0x28] sm:$0xff]  }
 0x2e3   :  { %5686 = vmatpush1.bf16.msra.mxu0 %v7251_v8 }
 0x2e4   :  { %5687 = vmatprep.subr.bf16.mxu0 %v7259_v9  ;;  %v7368_v9 = vld [vmem:[%s10121_s7 + $0x60] sm:$0xff]  }
 0x2e5   :  { %5639 = vmatpush1.bf16.msra.mxu1 %v7254_v26 }
 0x2e6   :  { %5640 = vmatprep.subr.bf16.mxu1 %v7262_v11  ;;  %v7311_v11 = vld [vmem:[%s10119_s4 + $0x308] ss:$16 sps:$4 sm:$0xff]  }
 0x2e7   :  { %5688 = vmatpush2.bf16.msra.mxu0 %v7257_v33  ;;  %v7316_v33 = vld [vmem:[%s10119_s4 + $0x6ec] ss:$16 sps:$4 sm:$0xff]  }
 0x2e8   :  { %5689 = vmatprep.subr.bf16.mxu0 %v7265_v24  ;;  %v7369_v24 = vld [vmem:[%s10121_s7 + $0x20] sm:$0xff]  }
 0x2e9   :  { %5641 = vmatpush1.bf16.msra.mxu1 %v7260_v1  ;;  %v7370_v1 = vld [vmem:[%s10121_s7 + $0x58] sm:$0xff]  }
 0x2ea   :  { %5642 = vmatprep.subr.bf16.mxu1 %v7268_v12  ;;  %v7314_v12 = vld [vmem:[%s10119_s4 + $0x6e8] ss:$16 sps:$4 sm:$0xff]  }
 0x2eb   :  { %5690 = vmatpush2.bf16.msra.mxu0 %v7263_v31  ;;  %v7319_v31 = vld [vmem:[%s10119_s4 + $0x6cc] ss:$16 sps:$4 sm:$0xff]  }
 0x2ec   :  { %5691 = vmatprep.subr.bf16.mxu0 %v7271_v20  ;;  %v7371_v20 = vld [vmem:[%s10121_s7 + $0x18] sm:$0xff]  }
 0x2ed   :  { %5643 = vmatpush1.bf16.msra.mxu1 %v7266_v29  ;;  %v7372_v29 = vld [vmem:[%s10121_s7 + $0x50] sm:$0xff]  }
 0x2ee   :  { %5644 = vmatprep.subr.bf16.mxu1 %v7274_v14  ;;  %v7317_v14 = vld [vmem:[%s10119_s4 + $0x6c8] ss:$16 sps:$4 sm:$0xff]  }
 0x2ef   :  { %5692 = vmatpush2.bf16.msra.mxu0 %v7269_v15  ;;  %v7322_v15 = vld [vmem:[%s10119_s4 + $0x6ac] ss:$16 sps:$4 sm:$0xff]  }
 0x2f0   :  { %5693 = vmatprep.subr.bf16.mxu0 %v7277_v18  ;;  %v7374_v18 = vld [vmem:[%s10121_s7 + $0x48] sm:$0xff]  }
 0x2f1   :  { %5645 = vmatpush1.bf16.msra.mxu1 %v7272_v17  ;;  %v7325_v17 = vld [vmem:[%s10119_s4 + $0x68c] ss:$16 sps:$4 sm:$0xff]  }
 0x2f2   :  { %5646 = vmatprep.subr.bf16.mxu1 %v7280_v53  ;;  %v7375_v53 = vld [vmem:[%s10121_s7 + $0x8] sm:$0xff]  }
 0x2f3   :  { %5694 = vmatpush2.bf16.msra.mxu0 %v7275_v22  ;;  %v7376_v22 = vld [vmem:[%s10121_s7 + $0x40] sm:$0xff]  }
 0x2f4   :  { %5695 = vmatprep.subr.bf16.mxu0 %v7283_v25  ;;  %v7323_v25 = vld [vmem:[%s10119_s4 + $0x688] ss:$16 sps:$4 sm:$0xff]  }
 0x2f5   :  { %5647 = vmatpush2.bf16.msra.mxu1 %v7278_v37  ;;  %v7328_v37 = vld [vmem:[%s10119_s4 + $0x66c] ss:$16 sps:$4 sm:$0xff]  }
 0x2f6   :  { %5648 = vmatprep.subr.bf16.mxu1 %v7286_v58  ;;  %v7377_v58 = vld [vmem:[%s10121_s7] sm:$0xff]  }
 0x2f7   :  { %5696 = vmatpush2.bf16.msra.mxu0 %v7281_v30  ;;  %v7326_v30 = vld [vmem:[%s10119_s4 + $0x668] ss:$16 sps:$4 sm:$0xff]  }
 0x2f8   :  { %5697 = vmatprep.subr.bf16.mxu0 %v7289_v45  ;;  %v7331_v45 = vld [vmem:[%s10119_s4 + $0x64c] ss:$16 sps:$4 sm:$0xff]  }
 0x2f9   :  { %5649 = vmatpush2.bf16.msra.mxu1 %v7284_v32  ;;  %v7329_v32 = vld [vmem:[%s10119_s4 + $0x648] ss:$16 sps:$4 sm:$0xff]  }
 0x2fa   :  { %5650 = vmatprep.subr.bf16.mxu1 %v7292_v34  ;;  %v7334_v34 = vld [vmem:[%s10119_s4 + $0x62c] ss:$16 sps:$4 sm:$0xff]  }
 0x2fb   :  { %5698 = vmatpush2.bf16.msra.mxu0 %v7287_v35  ;;  %v7332_v35 = vld [vmem:[%s10119_s4 + $0x628] ss:$16 sps:$4 sm:$0xff]  }
 0x2fc   :  { %5699 = vmatprep.subr.bf16.mxu0 %v7295_v61  ;;  %v7337_v61 = vld [vmem:[%s10119_s4 + $0x60c] ss:$16 sps:$4 sm:$0xff]  }
 0x2fd   :  { %5651 = vmatpush2.bf16.msra.mxu1 %v7290_v38  ;;  %v7335_v38 = vld [vmem:[%s10119_s4 + $0x608] ss:$16 sps:$4 sm:$0xff]  }
 0x2fe   :  { %5652 = vmatprep.subr.bf16.mxu1 %v7298_v40  ;;  %v7340_v40 = vld [vmem:[%s10119_s4 + $0x7ec] ss:$16 sps:$4 sm:$0xff]  }
 0x2ff   :  { %5700 = vmatpush2.bf16.msra.mxu0 %v7293_v41  ;;  %v7338_v41 = vld [vmem:[%s10119_s4 + $0x7e8] ss:$16 sps:$4 sm:$0xff]  }
 0x300   :  { %5701 = vmatprep.subr.bf16.mxu0 %v7301_v28  ;;  %v7343_v28 = vld [vmem:[%s10119_s4 + $0x7cc] ss:$16 sps:$4 sm:$0xff]  }
 0x301   :  { %5653 = vmatpush2.bf16.msra.mxu1 %v7296_v42  ;;  %v7341_v42 = vld [vmem:[%s10119_s4 + $0x7c8] ss:$16 sps:$4 sm:$0xff]  }
 0x302   :  { %5654 = vmatprep.subr.bf16.mxu1 %v7304_v43  ;;  %v7346_v43 = vld [vmem:[%s10119_s4 + $0x7ac] ss:$16 sps:$4 sm:$0xff]  }
 0x303   :  { %5702 = vmatpush2.bf16.msra.mxu0 %v7299_v44  ;;  %v7344_v44 = vld [vmem:[%s10119_s4 + $0x7a8] ss:$16 sps:$4 sm:$0xff]  }
 0x304   :  { %6926 = vmatprep.subr.bf16.mxu0 %v7362_v21  ;;  %v7349_v21 = vld [vmem:[%s10119_s4 + $0x78c] ss:$16 sps:$4 sm:$0xff]  }
 0x305   :  { %5655 = vmatpush2.bf16.msra.mxu1 %v7302_v23  ;;  %v7347_v23 = vld [vmem:[%s10119_s4 + $0x788] ss:$16 sps:$4 sm:$0xff]  }
 0x306   :  { %v5459_v56 = vpop.f32.mrf.mxu0  ;;  %5704 = vmatmul.mubr.bf16.vlgmr.msra.gmra.mxu0 %v9565_v36  ;;  %5656 = vmatprep.subr.bf16.mxu1 %v7307_v47  ;;  %v7352_v47 = vld [vmem:[%s10119_s4 + $0x76c] ss:$16 sps:$4 sm:$0xff]  }
 0x307   :  { %v5460_v57 = vadd.f32 %v5459_v56, %v4128_v48  ;;  %6927 = vmatpush3.bf16.msra.mxu0 %v7363_v49  ;;  %v7350_v48 = vld [vmem:[%s10119_s4 + $0x768] ss:$16 sps:$4 sm:$0xff]   ;;  %v7355_v49 = vld [vmem:[%s10119_s4 + $0x74c] ss:$16 sps:$4 sm:$0xff]  }
 0x308   :  { %v5500_v62 = vpop.f32.mrf.mxu1  ;;  %v5461_v59 = vpop.f32.mrf.mxu0  ;;  %6928 = vmatprep.subr.bf16.mxu0 %v7364_v50  ;;  %v7353_v50 = vld [vmem:[%s10119_s4 + $0x748] ss:$16 sps:$4 sm:$0xff]  }
 0x309   :  { %v9897_v16 = vadd.f32 %v5500_v62, %v5460_v57  ;;  %v5462_v36 = vadd.f32 %v5461_v59, %v4132_v52  ;;  %5657 = vmatpush2.bf16.msra.mxu1 %v7305_v13  ;;  %v7358_v52 = vld [vmem:[%s10119_s4 + $0x72c] ss:$16 sps:$4 sm:$0xff]   ;;  %v7356_v62 = vld [vmem:[%s10119_s4 + $0x728] ss:$16 sps:$4 sm:$0xff]  }
 0x30a   :  { %v5502_v2 = vpop.f32.mrf.mxu1  ;;  %v5463_v27 = vpop.f32.mrf.mxu0  ;;  %5658 = vmatprep.subr.bf16.mxu1 %v7310_v5  ;;  %v7361_v59 = vld [vmem:[%s10119_s4 + $0x70c] ss:$16 sps:$4 sm:$0xff]  }
 0x30b   :  { %v9905_v39 = vadd.f32 %v5502_v2, %v5462_v36  ;;  %6929 = vmatpush3.bf16.msra.mxu0 %v7365_v63  ;;  %v7378_v36 = vld [vmem:[%s10121_s7 + $0xf8] sm:$0xff]   ;;  %v7381_v27 = vld [vmem:[%s10121_s7 + $0xb0] sm:$0xff]  }
 0x30c   :  { %v5504_v6 = vpop.f32.mrf.mxu1  ;;  %v5464_v8 = vpop.f32.mrf.mxu0  ;;  %6930 = vmatprep.subr.bf16.mxu0 %v7366_v10  ;;  %v7379_v2 = vld [vmem:[%s10121_s7 + $0xb8] sm:$0xff]  }
 0x30d   :  { %5659 = vmatpush2.bf16.msra.mxu1 %v7308_v3  ;;  %v7380_v3 = vld [vmem:[%s10121_s7 + $0xf0] sm:$0xff]   ;;  %v7385_v6 = vld [vmem:[%s10121_s7 + $0xa0] sm:$0xff]   ;;  %v7387_v8 = vld [vmem:[%s10121_s7 + $0x98] sm:$0xff]  }
 0x30e   :  { %v5505_v26 = vpop.f32.mrf.mxu1  ;;  %5660 = vmatprep.subr.bf16.mxu1 %v7313_v4  ;;  %v7383_v4 = vld [vmem:[%s10121_s7 + $0xa8] sm:$0xff]  }
 0x30f   :  { %6931 = vmatpush3.bf16.msra.mxu0 %v7367_v7  ;;  %v7386_v7 = vld [vmem:[%s10121_s7 + $0xd8] sm:$0xff]  }
 0x310   :  { %6932 = vmatprep.subr.bf16.mxu0 %v7368_v9 }
 0x311   :  { %5661 = vmatpush2.bf16.msra.mxu1 %v7311_v11 }
 0x312   :  { %5712 = vmatprep.subr.bf16.mxu1 %v7316_v33 }
 0x313   :  { %6933 = vmatpush3.bf16.msra.mxu0 %v7369_v24  ;;  %v7388_v24 = vld [vmem:[%s10121_s7 + $0xd0] sm:$0xff]  }
 0x314   :  { %5663 = vmatmul.mubr.bf16.vlgmr.msra.gmra.mxu1 %v9358_v0  ;;  %6934 = vmatprep.subr.bf16.mxu0 %v7370_v1  ;;  %v7373_v0 = vld [vmem:[%s10121_s7 + $0x10] sm:$0xff]  }
 0x315   :  { %5713 = vmatpush1.bf16.msra.mxu1 %v7314_v12  ;;  %5744 = vmatprep.mubr.bf16.mxu1 %v9710_v51  ;;  %v7320_v51 = vld [vmem:[%s10119_s4 + $0x6a8] ss:$16 sps:$4 sm:$0xff]   ;;  %v7389_v12 = vld [vmem:[%s10121_s7 + $0x90] sm:$0xff]  }
 0x316   :  { %5714 = vmatprep.subr.bf16.mxu1 %v7319_v31 }
 0x317   :  { %6935 = vmatpush3.bf16.msra.mxu0 %v7371_v20 }
 0x318   :  { %6936 = vmatprep.subr.bf16.mxu0 %v7372_v29 }
 0x319   :  { %5715 = vmatpush1.bf16.msra.mxu1 %v7317_v14  ;;  %v5757_v14 = vld [vmem:[%s10123_s6] sm:$0xff] }
 0x31a   :  { %5716 = vmatprep.subr.bf16.mxu1 %v7322_v15 }
 0x31b   :  { %6937 = vmatpush3.bf16.msra.mxu0 %v7373_v0  ;;  %v7390_v0 = vld [vmem:[%s10121_s7 + $0xc8] sm:$0xff]  }
 0x31c   :  { %6938 = vmatprep.subr.bf16.mxu0 %v7374_v18  ;;  %v5758_v18 = vld [vmem:[%s10123_s6 + $0x8] sm:$0xff] }
 0x31d   :  { %5717 = vmatpush1.bf16.msra.mxu1 %v7320_v51 }
 0x31e   :  { %5718 = vmatprep.subr.bf16.mxu1 %v7325_v17  ;;  %v7391_v17 = vld [vmem:[%s10121_s7 + $0x88] sm:$0xff]  }
 0x31f   :  { %6939 = vmatpush3.bf16.msra.mxu0 %v7375_v53 }
 0x320   :  { %6940 = vmatprep.subr.bf16.mxu0 %v7376_v22 }
 0x321   :  { %5719 = vmatpush1.bf16.msra.mxu1 %v7323_v25 }
 0x322   :  { %5720 = vmatprep.subr.bf16.mxu1 %v7328_v37 }
 0x323   :  { %6941 = vmatpush3.bf16.msra.mxu0 %v7377_v58  ;;  %v7392_v58 = vld [vmem:[%s10121_s7 + $0xc0] sm:$0xff]  }
 0x325   :  { %5721 = vmatpush1.bf16.msra.mxu1 %v7326_v30  ;;  %v7393_v30 = vld [vmem:[%s10121_s7 + $0x80] sm:$0xff]  }
 0x326   :  { %5722 = vmatprep.subr.bf16.mxu1 %v7331_v45 }
 0x329   :  { %5723 = vmatpush1.bf16.msra.mxu1 %v7329_v32 }
 0x32a   :  { %5724 = vmatprep.subr.bf16.mxu1 %v7334_v34 }
 0x32d   :  { %5725 = vmatpush1.bf16.msra.mxu1 %v7332_v35 }
 0x32e   :  { %5726 = vmatprep.subr.bf16.mxu1 %v7337_v61 }
 0x331   :  { %5727 = vmatpush1.bf16.msra.mxu1 %v7335_v38 }
 0x332   :  { %5728 = vmatprep.subr.bf16.mxu1 %v7340_v40  ;;  %v4136_v40 = vrot.slane %v9861_v54, %v561_v19 }
 0x335   :  { %5729 = vmatpush2.bf16.msra.mxu1 %v7338_v41  ;;  %v4140_v41 = vrot.slane %v9861_v54, %v565_v46  ;;  %v5760_v46 = vld [vmem:[%s10123_s6 + $0x18] sm:$0xff] }
 0x336   :  { %5730 = vmatprep.subr.bf16.mxu1 %v7343_v28 }
 0x339   :  { %5731 = vmatpush2.bf16.msra.mxu1 %v7341_v42 }
 0x33a   :  { %5732 = vmatprep.subr.bf16.mxu1 %v7346_v43 }
 0x33d   :  { %5733 = vmatpush2.bf16.msra.mxu1 %v7344_v44 }
 0x33e   :  { %5734 = vmatprep.subr.bf16.mxu1 %v7349_v21 }
 0x341   :  { %5735 = vmatpush2.bf16.msra.mxu1 %v7347_v23 }
 0x342   :  { %5736 = vmatprep.subr.bf16.mxu1 %v7352_v47 }
 0x345   :  { %5737 = vmatpush2.bf16.msra.mxu1 %v7350_v48 }
 0x346   :  { %v5541_v13 = vpop.f32.mrf.mxu0  ;;  %5738 = vmatprep.subr.bf16.mxu1 %v7355_v49 }
 0x347   :  { %v5542_v56 = vadd.f32 %v5541_v13, %v9897_v16  ;;  %v7359_v16 = vld [vmem:[%s10119_s4 + $0x708] ss:$16 sps:$4 sm:$0xff]  }
 0x348   :  { %v5543_v5 = vpop.f32.mrf.mxu0 }
 0x349   :  { %v5544_v57 = vadd.f32 %v5543_v5, %v9905_v39  ;;  %5739 = vmatpush2.bf16.msra.mxu1 %v7353_v50  ;;  %v7384_v39 = vld [vmem:[%s10121_s7 + $0xe0] sm:$0xff]  }
 0x34a   :  { %v5545_v63 = vpop.f32.mrf.mxu0  ;;  %5740 = vmatprep.subr.bf16.mxu1 %v7358_v52 }
 0x34c   :  { %v5546_v10 = vpop.f32.mrf.mxu0 }
 0x34d   :  { %5741 = vmatpush2.bf16.msra.mxu1 %v7356_v62 }
 0x34e   :  { %5742 = vmatprep.subr.bf16.mxu1 %v7361_v59 }
 0x351   :  { %5743 = vmatpush2.bf16.msra.mxu1 %v7359_v16 }
 0x352   :  { %6948 = vmatprep.subr.bf16.mxu1 %v7378_v36 }
 0x354   :  { %5745 = vmatmul.mubr.bf16.vlgmr.msra.gmra.mxu1 %v9715_v55  ;;  %v7382_v55 = vld [vmem:[%s10121_s7 + $0xe8] sm:$0xff]  }
 0x355   :  { %6949 = vmatpush3.bf16.msra.mxu1 %v7379_v2 }
 0x356   :  { %6950 = vmatprep.subr.bf16.mxu1 %v7380_v3 }
 0x359   :  { %6951 = vmatpush3.bf16.msra.mxu1 %v7381_v27 }
 0x35a   :  { %6952 = vmatprep.subr.bf16.mxu1 %v7382_v55 }
 0x35d   :  { %6953 = vmatpush3.bf16.msra.mxu1 %v7383_v4  ;;  %v6893_v4 = vld [vmem:[%s10124_s8] ss:$0 sm:$0xff] }
 0x35e   :  { %6954 = vmatprep.subr.bf16.mxu1 %v7384_v39 }
 0x361   :  { %6955 = vmatpush3.bf16.msra.mxu1 %v7385_v6 }
 0x362   :  { %6956 = vmatprep.subr.bf16.mxu1 %v7386_v7 }
 0x365   :  { %6957 = vmatpush3.bf16.msra.mxu1 %v7387_v8 }
 0x366   :  { %6958 = vmatprep.subr.bf16.mxu1 %v7388_v24 }
 0x369   :  { %6959 = vmatpush3.bf16.msra.mxu1 %v7389_v12 }
 0x36a   :  { %6960 = vmatprep.subr.bf16.mxu1 %v7390_v0 }
 0x36d   :  { %6961 = vmatpush3.bf16.msra.mxu1 %v7391_v17 }
 0x36e   :  { %6962 = vmatprep.subr.bf16.mxu1 %v7392_v58 }
 0x371   :  { %6963 = vmatpush3.bf16.msra.mxu1 %v7393_v30 }
 0x386   :  { %v5623_v9 = vpop.f32.mrf.mxu0 }
 0x387   :  { %v5624_v28 = vadd.f32 %v5623_v9, %v4136_v40 }
 0x388   :  { %v5625_v26 = vpop.f32.mrf.mxu0 }
 0x389   :  { %v5626_v43 = vadd.f32 %v5625_v26, %v4140_v41 }
 0x38a   :  { %v5627_v11 = vpop.f32.mrf.mxu0 }
 0x38c   :  { %v5628_v33 = vpop.f32.mrf.mxu0 }
 0x394   :  { %v5582_v1 = vpop.f32.mrf.mxu1 }
 0x395   :  { %v5583_v31 = vadd.f32 %v5582_v1, %v5542_v56 }
 0x396   :  { %v5584_v20 = vpop.f32.mrf.mxu1 }
 0x397   :  { %v5753_v29 = vmax.f32 %v5583_v31, 0.0  ;;  %v5585_v15 = vadd.f32 %v5584_v20, %v5544_v57 }
 0x398   :  { %v5586_v51 = vpop.f32.mrf.mxu1 }
 0x399   :  { %v5754_v53 = vmax.f32 %v5585_v15, 0.0  ;;  %v5761_v22 = vmul.f32 %v5757_v14, %v5753_v29 }
 0x39a   :  { %v5587_v25 = vpop.f32.mrf.mxu1 }
 0x39b   :  { %v5762_v37 = vmul.f32 %v5758_v18, %v5754_v53  ;;  %v5765_v32 = vpack.c.bf16 %v5761_v22, %v5761_v22 }
 0x39d   :  { %v5766_v45 = vpack.c.bf16 %v5762_v37, %v5762_v37 }
 0x39f   :  { %6064 = vmatprep.mubr.bf16.mxu0 %v5766_v45 }
 0x3a0   :  { %6065 = vmatmul.mubr.bf16.vlgmr.msra.gmra.mxu0 %v5765_v32 }
 0x3c6   :  { %v5705_v34 = vpop.f32.mrf.mxu0 }
 0x3c8   :  { %v5707_v35 = vpop.f32.mrf.mxu0 }
 0x3ca   :  { %v5709_v61 = vpop.f32.mrf.mxu0 }
 0x3cc   :  { %v5710_v38 = vpop.f32.mrf.mxu0 }
 0x3d4   :  { %v5664_v42 = vpop.f32.mrf.mxu1 }
 0x3d5   :  { %v5665_v44 = vadd.f32 %v5664_v42, %v5624_v28 }
 0x3d6   :  { %v5666_v21 = vpop.f32.mrf.mxu1 }
 0x3d7   :  { %v5667_v23 = vadd.f32 %v5666_v21, %v5626_v43  ;;  %v5706_v47 = vadd.f32 %v5705_v34, %v5665_v44 }
 0x3d8   :  { %v5668_v48 = vpop.f32.mrf.mxu1 }
 0x3d9   :  { %v5708_v49 = vadd.f32 %v5707_v35, %v5667_v23 }
 0x3da   :  { %v5669_v50 = vpop.f32.mrf.mxu1 }
 0x414   :  { %v5746_v13 = vpop.f32.mrf.mxu1 }
 0x415   :  { %v5747_v52 = vadd.f32 %v5746_v13, %v5706_v47 }
 0x416   :  { %v5748_v56 = vpop.f32.mrf.mxu1 }
 0x417   :  { %v5755_v5 = vmax.f32 %v5747_v52, 0.0  ;;  %v5749_v19 = vadd.f32 %v5748_v56, %v5708_v49 }
 0x418   :  { %v5750_v54 = vpop.f32.mrf.mxu1 }
 0x419   :  { %v5756_v57 = vmax.f32 %v5749_v19, 0.0  ;;  %v5763_v62 = vmul.f32 %v5759_v60, %v5755_v5 }
 0x41a   :  { %v5751_v63 = vpop.f32.mrf.mxu1 }
 0x41b   :  { %v5764_v59 = vmul.f32 %v5760_v46, %v5756_v57  ;;  %v5767_v16 = vpack.c.bf16 %v5763_v62, %v5763_v62 }
 0x41d   :  { %v5768_v10 = vpack.c.bf16 %v5764_v59, %v5764_v59 }
 0x41f   :  { %6104 = vmatprep.mubr.bf16.mxu1 %v5768_v10 }
 0x420   :  { %6105 = vmatmul.mubr.bf16.vlgmr.msra.gmra.mxu1 %v5767_v16 }
 0x460   :  { %v6942_v36 = vpop.f32.mrf.mxu0 }
 0x462   :  { %v6943_v2 = vpop.f32.mrf.mxu0 }
 0x463   :  { %v6944_v3 = vadd.f32 %v6943_v2, %v6942_v36 }
 0x464   :  { %v6945_v27 = vpop.f32.mrf.mxu0 }
 0x465   :  { %v6067_v7 = vadd.f32 %v6944_v3, %v6893_v4 }
 0x466   :  { %v6946_v55 = vpop.f32.mrf.mxu0 }
 0x4e0   :  { %v6964_v39 = vpop.f32.mrf.mxu1 }
 0x4e2   :  { %v6965_v6 = vpop.f32.mrf.mxu1 }
 0x4e3   :  { %v6966_v8 = vadd.f32 %v6965_v6, %v6964_v39 }
 0x4e4   :  { %v6967_v9 = vpop.f32.mrf.mxu1 }
 0x4e5   :  { %v6107_v26 = vadd.f32 %v6966_v8, %v6067_v7 }
 0x4e6   :  { %v6968_v11 = vpop.f32.mrf.mxu1 }
 0x4e7   :  { %6112 = vst [vmem:[%s10125_s9] sm:$0xff] %v6107_v26 }

</bundles_post_ra>
